<compile_context>
chip_gen: v7x
topology: tpu7x:2x2x1
jax: 0.10.0
libtpu: 0.0.40
codegen_flags: <defaults>
</compile_context>

<pallas_src>
import jax
import jax.numpy as jnp
from jax import lax
from jax.experimental import pallas as pl
from jax.experimental.pallas import tpu as pltpu

EPS = 1e-5


# ----------------------------------------------------------------------------
# VMEM bookkeeping helpers
# ----------------------------------------------------------------------------
def _round_up(x, m):
    return (x + m - 1) // m * m


def _padded_nbytes(shape, dtype):
    """VMEM footprint of a tile, including (sublane, lane) padding."""
    s = [int(d) for d in shape]
    if len(s) >= 1:
        s[-1] = _round_up(s[-1], 128)
    if len(s) >= 2:
        s[-2] = _round_up(s[-2], 8)
    n = 1
    for d in s:
        n *= d
    return n * jnp.dtype(dtype).itemsize


def _vmem_capacity_bytes():
    try:
        return int(pltpu.get_tpu_info().vmem_capacity_bytes)
    except Exception:
        return 64 << 20          # conservative default (v7x per-core VMEM)


def _compiler_params(streamed_bytes, resident_bytes):
    """Per-generation VMEM limit: streamed blocks are double-buffered by the
    pipeline; grid-invariant weights / scratch / temporaries are resident
    once.  Clamp to physical VMEM so v5e/v6e can use their 128 MiB while v7x
    stays under its 64 MiB."""
    need = 2 * int(streamed_bytes) + int(resident_bytes) + (4 << 20)
    cap = _vmem_capacity_bytes()
    limit = min(max(need, 32 << 20), cap - (4 << 20))
    return pltpu.CompilerParams(
        dimension_semantics=("parallel",),
        vmem_limit_bytes=int(limit))


# ----------------------------------------------------------------------------
# Kernel helpers
# ----------------------------------------------------------------------------
def _conv3x3_bias_relu_stats(z_flat, w_ref, b_ref, pad_ref, acc_ref,
                             out_ref, s_ref):
    """3x3 'same' conv of z_flat (H*W, C; row-major in W) + bias + ReLU.

    pad_ref ((H+2)*W, C): flattened H-halo scratch; only the 2 halo row-bands
    are memset each step (scratch is core-local under "parallel" megacore
    sharding, so a program_id==0 guard is unsafe), the interior is fully
    overwritten.  W shifts use pltpu.roll on the flattened array + an
    edge-column mask (the wrapped positions are exactly the zero-pad columns).
    9 per-tap MXU matmuls (K=C) accumulate into the f32 acc_ref.  BN partials
    [sum; sum_of_squares] -> s_ref (2, C).
    """
    H, W, C = out_ref.shape
    HW = H * W
    cdt = pad_ref.dtype

    zrow = jnp.zeros((W, C), cdt)
    pad_ref[0:W] = zrow                                    # top halo row
    pad_ref[(H + 1) * W:(H + 2) * W] = zrow                # bottom halo row
    pad_ref[W:(H + 1) * W] = z_flat.astype(cdt)            # interior (aligned)

    # Edge-column masks for the +-1 W shifts.
    wcol = lax.broadcasted_iota(jnp.int32, (H, W, C), 1).reshape(HW, C)
    not_first_col = wcol != 0
    not_last_col = wcol != (W - 1)

    first = True
    for ky in range(3):
        rows = pad_ref[ky * W:ky * W + HW]                 # (HW, C), aligned
        for kx in range(3):
            if kx == 0:          # needs column w-1
                t = pltpu.roll(rows, shift=1, axis=0)
                t = jnp.where(not_first_col, t, jnp.zeros_like(t))
            elif kx == 2:        # needs column w+1
                t = pltpu.roll(rows, shift=HW - 1, axis=0)
                t = jnp.where(not_last_col, t, jnp.zeros_like(t))
            else:
                t = rows
            tap = jnp.dot(t, w_ref[ky, kx, :, :],
                          preferred_element_type=jnp.float32)
            if first:
                acc_ref[...] = tap
                first = False
            else:
                acc_ref[...] += tap

    a = jnp.maximum(acc_ref[...] + b_ref[...], 0.0)        # bias + ReLU, f32
    out_ref[...] = a.reshape(H, W, C).astype(out_ref.dtype)
    # single-pass BN partial statistics for this tile
    s_ref[0:1, :] = jnp.sum(a, axis=0, keepdims=True)
    s_ref[1:2, :] = jnp.sum(a * a, axis=0, keepdims=True)


# ----------------------------------------------------------------------------
# Pallas kernels
# ----------------------------------------------------------------------------
def _stage1_kernel(x_ref, w0_ref, b0_ref, w1_ref, b1_ref,
                   y0_ref, a1_ref, s1_ref, pad_ref, acc_ref):
    """conv0 (1x1) + bias -> y0; conv1 (3x3) + bias + ReLU -> a1; BN1 sums."""
    H, W, C = y0_ref.shape
    Cin = x_ref.shape[-1]
    # 1x1 conv as one MXU matmul; W is a multiple of the sublane tile, so the
    # (H, W, Cin) -> (H*W, Cin) reshape is layout-free.
    x_flat = x_ref[...].reshape(H * W, Cin)
    y0 = jnp.dot(x_flat, w0_ref[...], preferred_element_type=jnp.float32)
    y0 = y0 + b0_ref[...]
    y0_ref[...] = y0.reshape(H, W, C).astype(y0_ref.dtype)

    _conv3x3_bias_relu_stats(y0, w1_ref, b1_ref, pad_ref, acc_ref,
                             a1_ref, s1_ref)


def _stage2_kernel(a1_ref, sc1_ref, sh1_ref, w2_ref, b2_ref,
                   a2_ref, s2_ref, pad_ref, acc_ref):
    """BN1 affine -> conv2 (3x3) + bias + ReLU -> a2; BN2 partial sums."""
    H, W, C = a2_ref.shape
    z1 = (a1_ref[...].astype(jnp.float32).reshape(H * W, C)
          * sc1_ref[...] + sh1_ref[...])
    _conv3x3_bias_relu_stats(z1, w2_ref, b2_ref, pad_ref, acc_ref,
                             a2_ref, s2_ref)


def _epilogue_kernel(a2_ref, sc2_ref, sh2_ref, y0_ref, out_ref):
    """BN2 affine + residual add (NB images per step)."""
    out = (a2_ref[...].astype(jnp.float32) * sc2_ref[...] + sh2_ref[...]
           + y0_ref[...].astype(jnp.float32))
    out_ref[...] = out.astype(out_ref.dtype)


def _epilogue_pool_kernel(a2_ref, sc2_ref, sh2_ref, y0_ref, out_ref, pool_ref):
    """BN2 affine + residual add, with a fused 2x2 max-pool epilogue."""
    NB, H, W, C = out_ref.shape
    Hh, Wh = H // 2, W // 2
    out = (a2_ref[...].astype(jnp.float32) * sc2_ref[...] + sh2_ref[...]
           + y0_ref[...].astype(jnp.float32))
    out_ref[...] = out.astype(out_ref.dtype)
    # 2x2 max-pool.  W direction: documented stride-2 ref reads of the
    # just-written, still-VMEM-resident block; H direction: reduce the value
    # after a layout-free major-dim split.
    w_even = out_ref[:, :, pl.ds(0, Wh, 2), :]
    w_odd = out_ref[:, :, pl.ds(1, Wh, 2), :]
    wmax = jnp.maximum(w_even, w_odd)                      # (NB, H, Wh, C)
    pool_ref[...] = jnp.max(wmax.reshape(NB, Hh, 2, Wh, C),
                            axis=2).astype(pool_ref.dtype)


# ----------------------------------------------------------------------------
# Wrapper helpers
# ----------------------------------------------------------------------------
def _bn_affine(stats, gamma, beta, count):
    """Finalize training-mode BatchNorm from per-tile partial sums.

    stats: (num_tiles, 2, C) rows [sum, sum_of_squares].  Biased variance,
    returns per-channel (scale, shift) so that bn(x) = x * scale + shift.
    """
    tot = jnp.sum(stats.astype(jnp.float32), axis=0)             # (2, C)
    mean = tot[0:1, :] / count
    var = jnp.maximum(tot[1:2, :] / count - mean * mean, 0.0)    # clamp cancel
    scale = gamma * lax.rsqrt(var + EPS)
    shift = beta - mean * scale
    return scale, shift


def _pick_batch_group(n, per_image_bytes, target_bytes=2 << 20):
    """Images per grid step so each pipelined buffer is ~target_bytes."""
    nb = int(max(1, min(n, target_bytes // max(int(per_image_bytes), 1))))
    while n % nb:
        nb -= 1
    return nb


# ----------------------------------------------------------------------------
# Full Resblock forward
# ----------------------------------------------------------------------------
def resblock_forward(x_nchw, params, downsample=False,
                     compute_dtype=jnp.bfloat16):
    f32 = jnp.float32
    cdt = jnp.dtype(compute_dtype)

    # NCHW -> NHWC once at the module boundary (channels on the TPU lane dim).
    x = jnp.transpose(x_nchw, (0, 2, 3, 1)).astype(cdt)
    N, H, W, Cin = x.shape
    C = params["w0"].shape[-1]
    count = float(N * H * W)

    w0 = params["w0"].astype(cdt)                          # (Cin, C)
    w1 = params["w1"].astype(cdt)                          # HWIO (3, 3, C, C)
    w2 = params["w2"].astype(cdt)
    b0, b1, b2 = params["b0"], params["b1"], params["b2"]  # (1, C) f32

    # --- honest, lane/sublane-padded VMEM footprint per grid step -----------
    img_in = _padded_nbytes((H, W, Cin), cdt)
    img = _padded_nbytes((H, W, C), cdt)
    stat = _padded_nbytes((2, C), f32)
    w0b = _padded_nbytes((Cin, C), cdt)
    w3b = _padded_nbytes((3, 3, C, C), cdt)
    vec = _padded_nbytes((1, C), f32)
    pad_b = _padded_nbytes(((H + 2) * W, C), cdt)
    acc_b = _padded_nbytes((H * W, C), f32)
    temps = 4 * _padded_nbytes((H * W, C), f32)   # rolled taps / masks / dots

    # ------------- stage 1: conv0 + conv1 + ReLU + BN1 partial stats --------
    y0, a1, s1 = pl.pallas_call(
        _stage1_kernel,
        grid=(N,),
        in_specs=[
            pl.BlockSpec((None, H, W, Cin), lambda n: (n, 0, 0, 0)),
            pl.BlockSpec((Cin, C), lambda n: (0, 0)),
            pl.BlockSpec((1, C), lambda n: (0, 0)),
            pl.BlockSpec((3, 3, C, C), lambda n: (0, 0, 0, 0)),
            pl.BlockSpec((1, C), lambda n: (0, 0)),
        ],
        out_specs=(
            pl.BlockSpec((None, H, W, C), lambda n: (n, 0, 0, 0)),
            pl.BlockSpec((None, H, W, C), lambda n: (n, 0, 0, 0)),
            pl.BlockSpec((None, 2, C), lambda n: (n, 0, 0)),
        ),
        out_shape=(
            jax.ShapeDtypeStruct((N, H, W, C), cdt),      # y0 (residual)
            jax.ShapeDtypeStruct((N, H, W, C), cdt),      # relu(conv1(y0))
            jax.ShapeDtypeStruct((N, 2, C), f32),         # BN1 [sum; sumsq]
        ),
        scratch_shapes=[pltpu.VMEM(((H + 2) * W, C), cdt),
                        pltpu.VMEM((H * W, C), jnp.float32)],
        compiler_params=_compiler_params(
            streamed_bytes=img_in + 2 * img + stat,
            resident_bytes=w0b + w3b + 2 * vec + pad_b + acc_b + temps),
        cost_estimate=pl.CostEstimate(
            flops=2 * N * H * W * C * (Cin + 9 * C) + 8 * N * H * W * C,
            transcendentals=0,
            bytes_accessed=N * (img_in + 2 * img + stat)),
    )(x, w0, b0, w1, b1)

    sc1, sh1 = _bn_affine(s1, params["gamma1"], params["beta1"], count)

    # ------------- stage 2: BN1 affine + conv2 + ReLU + BN2 stats -----------
    a2, s2 = pl.pallas_call(
        _stage2_kernel,
        grid=(N,),
        in_specs=[
            pl.BlockSpec((None, H, W, C), lambda n: (n, 0, 0, 0)),
            pl.BlockSpec((1, C), lambda n: (0, 0)),
            pl.BlockSpec((1, C), lambda n: (0, 0)),
            pl.BlockSpec((3, 3, C, C), lambda n: (0, 0, 0, 0)),
            pl.BlockSpec((1, C), lambda n: (0, 0)),
        ],
        out_specs=(
            pl.BlockSpec((None, H, W, C), lambda n: (n, 0, 0, 0)),
            pl.BlockSpec((None, 2, C), lambda n: (n, 0, 0)),
        ),
        out_shape=(
            jax.ShapeDtypeStruct((N, H, W, C), cdt),      # relu(conv2)
            jax.ShapeDtypeStruct((N, 2, C), f32),         # BN2 [sum; sumsq]
        ),
        scratch_shapes=[pltpu.VMEM(((H + 2) * W, C), cdt),
                        pltpu.VMEM((H * W, C), jnp.float32)],
        compiler_params=_compiler_params(
            streamed_bytes=2 * img + stat,
            resident_bytes=w3b + 4 * vec + pad_b + acc_b + temps),
        cost_estimate=pl.CostEstimate(
            flops=2 * N * H * W * 9 * C * C + 10 * N * H * W * C,
            transcendentals=0,
            bytes_accessed=N * (2 * img + stat)),
    )(a1, sc1, sh1, w2, b2)

    sc2, sh2 = _bn_affine(s2, params["gamma2"], params["beta2"], count)

    # ------------- stage 3: BN2 affine + residual (+ fused 2x2 maxpool) -----
    # Memory-bound: group NB images per step (amortizes ~0.35 us/step), write
    # outputs in compute dtype to halve HBM writeback.
    nb = _pick_batch_group(N, 3 * img)
    grid3 = (N // nb,)
    in_specs3 = [
        pl.BlockSpec((nb, H, W, C), lambda g: (g, 0, 0, 0)),
        pl.BlockSpec((1, C), lambda g: (0, 0)),
        pl.BlockSpec((1, C), lambda g: (0, 0)),
        pl.BlockSpec((nb, H, W, C), lambda g: (g, 0, 0, 0)),
    ]
    if downsample:
        assert H % 2 == 0 and W % 2 == 0, "max_pool2d(2) needs even H and W"
        out_nhwc, pool_nhwc = pl.pallas_call(
            _epilogue_pool_kernel,
            grid=grid3,
            in_specs=in_specs3,
            out_specs=(
                pl.BlockSpec((nb, H, W, C), lambda g: (g, 0, 0, 0)),
                pl.BlockSpec((nb, H // 2, W // 2, C),
                             lambda g: (g, 0, 0, 0)),
            ),
            out_shape=(
                jax.ShapeDtypeStruct((N, H, W, C), cdt),
                jax.ShapeDtypeStruct((N, H // 2, W // 2, C), cdt),
            ),
            compiler_params=_compiler_params(
                streamed_bytes=nb * (3 * img + img // 4),
                resident_bytes=2 * vec + nb * _padded_nbytes((H, W, C), f32)),
            cost_estimate=pl.CostEstimate(
                flops=9 * N * H * W * C, transcendentals=0,
                bytes_accessed=N * (3 * img + img // 4)),
        )(a2, sc2, sh2, y0)
        out = jnp.transpose(out_nhwc, (0, 3, 1, 2))        # back to NCHW
        pooled = jnp.transpose(pool_nhwc, (0, 3, 1, 2))
        return out, pooled

    out_nhwc = pl.pallas_call(
        _epilogue_kernel,
        grid=grid3,
        in_specs=in_specs3,
        out_specs=pl.BlockSpec((nb, H, W, C), lambda g: (g, 0, 0, 0)),
        out_shape=jax.ShapeDtypeStruct((N, H, W, C), cdt),
        compiler_params=_compiler_params(
            streamed_bytes=nb * 3 * img,
            resident_bytes=2 * vec + nb * _padded_nbytes((H, W, C), f32)),
        cost_estimate=pl.CostEstimate(
            flops=5 * N * H * W * C, transcendentals=0,
            bytes_accessed=N * 3 * img),
    )(a2, sc2, sh2, y0)
    return jnp.transpose(out_nhwc, (0, 3, 1, 2))            # back to NCHW


# ----------------------------------------------------------------------------
# Pure-JAX reference (same semantics), used as a self-check
# ----------------------------------------------------------------------------
def _bn_train(x, gamma, beta):
    mean = jnp.mean(x, axis=(0, 1, 2), keepdims=True)
    var = jnp.mean((x - mean) ** 2, axis=(0, 1, 2), keepdims=True)
    return (x - mean) * lax.rsqrt(var + EPS) * gamma + beta


def resblock_reference(x_nchw, params, downsample=False):
    x = jnp.transpose(x_nchw, (0, 2, 3, 1)).astype(jnp.float32)
    dn = ("NHWC", "HWIO", "NHWC")
    y0 = jnp.einsum("nhwc,cd->nhwd", x, params["w0"]) + params["b0"]
    residual = y0
    z1 = lax.conv_general_dilated(y0, params["w1"], (1, 1), "SAME",
                                  dimension_numbers=dn) + params["b1"]
    z1 = _bn_train(jnp.maximum(z1, 0.0), params["gamma1"], params["beta1"])
    z2 = lax.conv_general_dilated(z1, params["w2"], (1, 1), "SAME",
                                  dimension_numbers=dn) + params["b2"]
    z2 = _bn_train(jnp.maximum(z2, 0.0), params["gamma2"], params["beta2"])
    out = jnp.transpose(z2 + residual, (0, 3, 1, 2))
    if downsample:
        N, C, H, W = out.shape
        pooled = out.reshape(N, C, H // 2, 2, W // 2, 2).max(axis=(3, 5))
        return out, pooled
    return out


# ----------------------------------------------------------------------------
def make_params(key, cin, cout):
    ks = jax.random.split(key, 8)
    f32 = jnp.float32
    return {
        # conv0: PyTorch [Cout,Cin,1,1] -> stored [Cin,Cout]
        "w0": (0.1 * jax.random.normal(ks[0], (cin, cout))).astype(f32),
        "b0": (0.1 * jax.random.normal(ks[1], (1, cout))).astype(f32),
        # conv1/conv2: PyTorch OIHW [Cout,Cout,3,3] -> HWIO [3,3,Cout,Cout]
        "w1": (0.1 * jax.random.normal(ks[2], (3, 3, cout, cout))).astype(f32),
        "b1": (0.1 * jax.random.normal(ks[3], (1, cout))).astype(f32),
        "w2": (0.1 * jax.random.normal(ks[4], (3, 3, cout, cout))).astype(f32),
        "b2": (0.1 * jax.random.normal(ks[5], (1, cout))).astype(f32),
        "gamma1": (1.0 + 0.1 * jax.random.normal(ks[6], (1, cout))).astype(f32),
        "beta1": (0.1 * jax.random.normal(ks[7], (1, cout))).astype(f32),
        "gamma2": jnp.full((1, cout), 1.05, f32),
        "beta2": jnp.full((1, cout), -0.02, f32),
    }


if __name__ == "__main__":
    key = jax.random.PRNGKey(0)
    k_x, k_p = jax.random.split(key)

    N, Cin, Cout, H, W = 2, 4, 8, 16, 16
    x = jax.random.normal(k_x, (N, Cin, H, W), dtype=jnp.float32)
    params = make_params(k_p, Cin, Cout)

    # 1) exact-precision path (f32 matmul operands): tight check vs. reference
    out_f32 = jax.block_until_ready(
        resblock_forward(x, params, downsample=False,
                         compute_dtype=jnp.float32))
    ref = jax.block_until_ready(resblock_reference(x, params, downsample=False))
    assert out_f32.shape == (N, Cout, H, W), out_f32.shape
    assert jnp.allclose(out_f32, ref, rtol=1e-4, atol=1e-4), (
        float(jnp.max(jnp.abs(out_f32 - ref))))

    # 2) downsample path (fused 2x2 max-pool epilogue)
    out_d, pool_d = jax.block_until_ready(
        resblock_forward(x, params, downsample=True,
                         compute_dtype=jnp.float32))
    ref_d, ref_p = resblock_reference(x, params, downsample=True)
    assert pool_d.shape == (N, Cout, H // 2, W // 2), pool_d.shape
    assert jnp.allclose(out_d, ref_d, rtol=1e-4, atol=1e-4)
    assert jnp.allclose(pool_d, ref_p, rtol=1e-4, atol=1e-4)

    # 3) default perf config (bf16 operands/activations, f32 accumulation):
    #    loose sanity check against the f32 reference
    out_bf16 = jax.block_until_ready(
        resblock_forward(x, params, downsample=False))
    assert out_bf16.shape == (N, Cout, H, W)
    assert jnp.allclose(out_bf16.astype(jnp.float32), ref,
                        rtol=5e-2, atol=2.5e-1), (
        float(jnp.max(jnp.abs(out_bf16.astype(jnp.float32) - ref))))

    print("KERNEL_OK")
</pallas_src>

<mosaic_0001>
module attributes {stable_mosaic.version = 11 : i64} {
  func.func @_stage1_kernel(%arg0: i32, %arg1: memref<1x16x16x4xf32, #tpu.memory_space<vmem>>, %arg2: memref<4x8xf32, #tpu.memory_space<vmem>>, %arg3: memref<1x8xf32, #tpu.memory_space<vmem>>, %arg4: memref<3x3x8x8xf32, #tpu.memory_space<vmem>>, %arg5: memref<1x8xf32, #tpu.memory_space<vmem>>, %arg6: memref<1x16x16x8xf32, #tpu.memory_space<vmem>>, %arg7: memref<1x16x16x8xf32, #tpu.memory_space<vmem>>, %arg8: memref<1x2x8xf32, #tpu.memory_space<vmem>>, %arg9: memref<288x8xf32, #tpu.memory_space<vmem>>, %arg10: memref<256x8xf32, #tpu.memory_space<vmem>>) attributes {dimension_semantics = [#tpu.dimension_semantics<parallel>], iteration_bounds = array<i64: 2>, scalar_prefetch = 0 : i64, scratch_operands = 2 : i64, tpu.core_type = #tpu.core_type<tc>, window_params = [{transform_indices = @transform_0, window_bounds = array<i64: 1, 16, 16, 4>}, {pipeline_mode = #tpu.pipeline_mode<synchronous>, transform_indices = @transform_1, window_bounds = array<i64: 4, 8>}, {pipeline_mode = #tpu.pipeline_mode<synchronous>, transform_indices = @transform_2, window_bounds = array<i64: 1, 8>}, {pipeline_mode = #tpu.pipeline_mode<synchronous>, transform_indices = @transform_3, window_bounds = array<i64: 3, 3, 8, 8>}, {pipeline_mode = #tpu.pipeline_mode<synchronous>, transform_indices = @transform_4, window_bounds = array<i64: 1, 8>}, {transform_indices = @transform_5, window_bounds = array<i64: 1, 16, 16, 8>}, {transform_indices = @transform_6, window_bounds = array<i64: 1, 16, 16, 8>}, {transform_indices = @transform_7, window_bounds = array<i64: 1, 2, 8>}]} {
    %c0 = arith.constant 0 : index
    %c0_0 = arith.constant 0 : index
    %c0_1 = arith.constant 0 : index
    %c0_2 = arith.constant 0 : index
    %0 = vector.load %arg1[%c0, %c0_0, %c0_1, %c0_2] : memref<1x16x16x4xf32, #tpu.memory_space<vmem>>, vector<1x16x16x4xf32>
    %1 = vector.shape_cast %0 : vector<1x16x16x4xf32> to vector<16x16x4xf32>
    %2 = vector.shape_cast %1 : vector<16x16x4xf32> to vector<256x4xf32>
    %c0_3 = arith.constant 0 : index
    %c0_4 = arith.constant 0 : index
    %3 = vector.load %arg2[%c0_3, %c0_4] : memref<4x8xf32, #tpu.memory_space<vmem>>, vector<4x8xf32>
    %cst = arith.constant dense<0.000000e+00> : vector<256x8xf32>
    %4 = tpu.matmul %2, %3, %cst {dimension_numbers = #tpu.dot_dimension_numbers<[1], [0], [0], [1], [0, 0, 1, 1], [], []>} : vector<256x4xf32>, vector<4x8xf32>, vector<256x8xf32> -> vector<256x8xf32>
    %c0_5 = arith.constant 0 : index
    %c0_6 = arith.constant 0 : index
    %5 = vector.load %arg3[%c0_5, %c0_6] : memref<1x8xf32, #tpu.memory_space<vmem>>, vector<1x8xf32>
    %6 = vector.broadcast %5 : vector<1x8xf32> to vector<256x8xf32>
    %7 = arith.addf %4, %6 : vector<256x8xf32>
    %8 = vector.shape_cast %7 : vector<256x8xf32> to vector<16x16x8xf32>
    %c0_7 = arith.constant 0 : index
    %c0_8 = arith.constant 0 : index
    %c0_9 = arith.constant 0 : index
    %c0_10 = arith.constant 0 : index
    %9 = vector.load %arg6[%c0_7, %c0_8, %c0_9, %c0_10] : memref<1x16x16x8xf32, #tpu.memory_space<vmem>>, vector<1x16x16x8xf32>
    %10 = vector.shape_cast %9 : vector<1x16x16x8xf32> to vector<16x16x8xf32>
    %11 = vector.shape_cast %8 : vector<16x16x8xf32> to vector<1x16x16x8xf32>
    tpu.vector_store %arg6[%c0_7, %c0_8, %c0_9, %c0_10], %11 {strides = array<i32>} : memref<1x16x16x8xf32, #tpu.memory_space<vmem>>, vector<1x16x16x8xf32>,
    %cst_11 = arith.constant 0.000000e+00 : f32
    %12 = vector.broadcast %cst_11 : f32 to vector<16x8xf32>
    %c0_12 = arith.constant 0 : index
    %c0_13 = arith.constant 0 : index
    %13 = vector.load %arg9[%c0_12, %c0_13] : memref<288x8xf32, #tpu.memory_space<vmem>>, vector<16x8xf32>
    tpu.vector_store %arg9[%c0_12, %c0_13], %12 {strides = array<i32>} : memref<288x8xf32, #tpu.memory_space<vmem>>, vector<16x8xf32>,
    %c272 = arith.constant 272 : index
    %c0_14 = arith.constant 0 : index
    %14 = vector.load %arg9[%c272, %c0_14] : memref<288x8xf32, #tpu.memory_space<vmem>>, vector<16x8xf32>
    tpu.vector_store %arg9[%c272, %c0_14], %12 {strides = array<i32>} : memref<288x8xf32, #tpu.memory_space<vmem>>, vector<16x8xf32>,
    %c16 = arith.constant 16 : index
    %c0_15 = arith.constant 0 : index
    %15 = vector.load %arg9[%c16, %c0_15] : memref<288x8xf32, #tpu.memory_space<vmem>>, vector<256x8xf32>
    tpu.vector_store %arg9[%c16, %c0_15], %7 {strides = array<i32>} : memref<288x8xf32, #tpu.memory_space<vmem>>, vector<256x8xf32>,
    %16 = tpu.iota {dimensions = array<i32: 1>} : vector<16x16x8xi32>
    %17 = vector.shape_cast %16 : vector<16x16x8xi32> to vector<256x8xi32>
    %c0_i32 = arith.constant 0 : i32
    %18 = vector.broadcast %c0_i32 : i32 to vector<256x8xi32>
    %19 = arith.cmpi ne, %17, %18 : vector<256x8xi32>
    %c15_i32 = arith.constant 15 : i32
    %20 = vector.broadcast %c15_i32 : i32 to vector<256x8xi32>
    %21 = arith.cmpi ne, %17, %20 : vector<256x8xi32>
    %c0_16 = arith.constant 0 : index
    %c0_17 = arith.constant 0 : index
    %22 = vector.load %arg9[%c0_16, %c0_17] : memref<288x8xf32, #tpu.memory_space<vmem>>, vector<256x8xf32>
    %c1_i32 = arith.constant 1 : i32
    %23 = tpu.dynamic_rotate %22 by %c1_i32 dim 0 : vector<256x8xf32>, i32 -> vector<256x8xf32>
    %cst_18 = arith.constant 0.000000e+00 : f32
    %24 = vector.broadcast %cst_18 : f32 to vector<256x8xf32>
    %25 = arith.select %19, %23, %24 : vector<256x8xi1>, vector<256x8xf32>
    %c0_19 = arith.constant 0 : index
    %c0_20 = arith.constant 0 : index
    %c0_21 = arith.constant 0 : index
    %c0_22 = arith.constant 0 : index
    %26 = vector.load %arg4[%c0_19, %c0_20, %c0_21, %c0_22] : memref<3x3x8x8xf32, #tpu.memory_space<vmem>>, vector<1x1x8x8xf32>
    %27 = vector.shape_cast %26 : vector<1x1x8x8xf32> to vector<8x8xf32>
    %cst_23 = arith.constant dense<0.000000e+00> : vector<256x8xf32>
    %28 = tpu.matmul %25, %27, %cst_23 {dimension_numbers = #tpu.dot_dimension_numbers<[1], [0], [0], [1], [0, 0, 1, 1], [], []>} : vector<256x8xf32>, vector<8x8xf32>, vector<256x8xf32> -> vector<256x8xf32>
    %c0_24 = arith.constant 0 : index
    %c0_25 = arith.constant 0 : index
    %29 = vector.load %arg10[%c0_24, %c0_25] : memref<256x8xf32, #tpu.memory_space<vmem>>, vector<256x8xf32>
    tpu.vector_store %arg10[%c0_24, %c0_25], %28 {strides = array<i32>} : memref<256x8xf32, #tpu.memory_space<vmem>>, vector<256x8xf32>,
    %c0_26 = arith.constant 0 : index
    %c1 = arith.constant 1 : index
    %c0_27 = arith.constant 0 : index
    %c0_28 = arith.constant 0 : index
    %30 = vector.load %arg4[%c0_26, %c1, %c0_27, %c0_28] : memref<3x3x8x8xf32, #tpu.memory_space<vmem>>, vector<1x1x8x8xf32>
    %31 = vector.shape_cast %30 : vector<1x1x8x8xf32> to vector<8x8xf32>
    %cst_29 = arith.constant dense<0.000000e+00> : vector<256x8xf32>
    %32 = tpu.matmul %22, %31, %cst_29 {dimension_numbers = #tpu.dot_dimension_numbers<[1], [0], [0], [1], [0, 0, 1, 1], [], []>} : vector<256x8xf32>, vector<8x8xf32>, vector<256x8xf32> -> vector<256x8xf32>
    %c0_30 = arith.constant 0 : index
    %c0_31 = arith.constant 0 : index
    %33 = vector.load %arg10[%c0_30, %c0_31] : memref<256x8xf32, #tpu.memory_space<vmem>>, vector<256x8xf32>
    %34 = arith.addf %33, %32 : vector<256x8xf32>
    %c0_32 = arith.constant 0 : index
    %c0_33 = arith.constant 0 : index
    %35 = vector.load %arg10[%c0_32, %c0_33] : memref<256x8xf32, #tpu.memory_space<vmem>>, vector<256x8xf32>
    tpu.vector_store %arg10[%c0_32, %c0_33], %34 {strides = array<i32>} : memref<256x8xf32, #tpu.memory_space<vmem>>, vector<256x8xf32>,
    %c255_i32 = arith.constant 255 : i32
    %36 = tpu.dynamic_rotate %22 by %c255_i32 dim 0 : vector<256x8xf32>, i32 -> vector<256x8xf32>
    %cst_34 = arith.constant 0.000000e+00 : f32
    %37 = vector.broadcast %cst_34 : f32 to vector<256x8xf32>
    %38 = arith.select %21, %36, %37 : vector<256x8xi1>, vector<256x8xf32>
    %c0_35 = arith.constant 0 : index
    %c2 = arith.constant 2 : index
    %c0_36 = arith.constant 0 : index
    %c0_37 = arith.constant 0 : index
    %39 = vector.load %arg4[%c0_35, %c2, %c0_36, %c0_37] : memref<3x3x8x8xf32, #tpu.memory_space<vmem>>, vector<1x1x8x8xf32>
    %40 = vector.shape_cast %39 : vector<1x1x8x8xf32> to vector<8x8xf32>
    %cst_38 = arith.constant dense<0.000000e+00> : vector<256x8xf32>
    %41 = tpu.matmul %38, %40, %cst_38 {dimension_numbers = #tpu.dot_dimension_numbers<[1], [0], [0], [1], [0, 0, 1, 1], [], []>} : vector<256x8xf32>, vector<8x8xf32>, vector<256x8xf32> -> vector<256x8xf32>
    %c0_39 = arith.constant 0 : index
    %c0_40 = arith.constant 0 : index
    %42 = vector.load %arg10[%c0_39, %c0_40] : memref<256x8xf32, #tpu.memory_space<vmem>>, vector<256x8xf32>
    %43 = arith.addf %42, %41 : vector<256x8xf32>
    %c0_41 = arith.constant 0 : index
    %c0_42 = arith.constant 0 : index
    %44 = vector.load %arg10[%c0_41, %c0_42] : memref<256x8xf32, #tpu.memory_space<vmem>>, vector<256x8xf32>
    tpu.vector_store %arg10[%c0_41, %c0_42], %43 {strides = array<i32>} : memref<256x8xf32, #tpu.memory_space<vmem>>, vector<256x8xf32>,
    %c16_43 = arith.constant 16 : index
    %c0_44 = arith.constant 0 : index
    %45 = vector.load %arg9[%c16_43, %c0_44] : memref<288x8xf32, #tpu.memory_space<vmem>>, vector<256x8xf32>
    %c1_i32_45 = arith.constant 1 : i32
    %46 = tpu.dynamic_rotate %45 by %c1_i32_45 dim 0 : vector<256x8xf32>, i32 -> vector<256x8xf32>
    %cst_46 = arith.constant 0.000000e+00 : f32
    %47 = vector.broadcast %cst_46 : f32 to vector<256x8xf32>
    %48 = arith.select %19, %46, %47 : vector<256x8xi1>, vector<256x8xf32>
    %c1_47 = arith.constant 1 : index
    %c0_48 = arith.constant 0 : index
    %c0_49 = arith.constant 0 : index
    %c0_50 = arith.constant 0 : index
    %49 = vector.load %arg4[%c1_47, %c0_48, %c0_49, %c0_50] : memref<3x3x8x8xf32, #tpu.memory_space<vmem>>, vector<1x1x8x8xf32>
    %50 = vector.shape_cast %49 : vector<1x1x8x8xf32> to vector<8x8xf32>
    %cst_51 = arith.constant dense<0.000000e+00> : vector<256x8xf32>
    %51 = tpu.matmul %48, %50, %cst_51 {dimension_numbers = #tpu.dot_dimension_numbers<[1], [0], [0], [1], [0, 0, 1, 1], [], []>} : vector<256x8xf32>, vector<8x8xf32>, vector<256x8xf32> -> vector<256x8xf32>
    %c0_52 = arith.constant 0 : index
    %c0_53 = arith.constant 0 : index
    %52 = vector.load %arg10[%c0_52, %c0_53] : memref<256x8xf32, #tpu.memory_space<vmem>>, vector<256x8xf32>
    %53 = arith.addf %52, %51 : vector<256x8xf32>
    %c0_54 = arith.constant 0 : index
    %c0_55 = arith.constant 0 : index
    %54 = vector.load %arg10[%c0_54, %c0_55] : memref<256x8xf32, #tpu.memory_space<vmem>>, vector<256x8xf32>
    tpu.vector_store %arg10[%c0_54, %c0_55], %53 {strides = array<i32>} : memref<256x8xf32, #tpu.memory_space<vmem>>, vector<256x8xf32>,
    %c1_56 = arith.constant 1 : index
    %c1_57 = arith.constant 1 : index
    %c0_58 = arith.constant 0 : index
    %c0_59 = arith.constant 0 : index
    %55 = vector.load %arg4[%c1_56, %c1_57, %c0_58, %c0_59] : memref<3x3x8x8xf32, #tpu.memory_space<vmem>>, vector<1x1x8x8xf32>
    %56 = vector.shape_cast %55 : vector<1x1x8x8xf32> to vector<8x8xf32>
    %cst_60 = arith.constant dense<0.000000e+00> : vector<256x8xf32>
    %57 = tpu.matmul %45, %56, %cst_60 {dimension_numbers = #tpu.dot_dimension_numbers<[1], [0], [0], [1], [0, 0, 1, 1], [], []>} : vector<256x8xf32>, vector<8x8xf32>, vector<256x8xf32> -> vector<256x8xf32>
    %c0_61 = arith.constant 0 : index
    %c0_62 = arith.constant 0 : index
    %58 = vector.load %arg10[%c0_61, %c0_62] : memref<256x8xf32, #tpu.memory_space<vmem>>, vector<256x8xf32>
    %59 = arith.addf %58, %57 : vector<256x8xf32>
    %c0_63 = arith.constant 0 : index
    %c0_64 = arith.constant 0 : index
    %60 = vector.load %arg10[%c0_63, %c0_64] : memref<256x8xf32, #tpu.memory_space<vmem>>, vector<256x8xf32>
    tpu.vector_store %arg10[%c0_63, %c0_64], %59 {strides = array<i32>} : memref<256x8xf32, #tpu.memory_space<vmem>>, vector<256x8xf32>,
    %c255_i32_65 = arith.constant 255 : i32
    %61 = tpu.dynamic_rotate %45 by %c255_i32_65 dim 0 : vector<256x8xf32>, i32 -> vector<256x8xf32>
    %cst_66 = arith.constant 0.000000e+00 : f32
    %62 = vector.broadcast %cst_66 : f32 to vector<256x8xf32>
    %63 = arith.select %21, %61, %62 : vector<256x8xi1>, vector<256x8xf32>
    %c1_67 = arith.constant 1 : index
    %c2_68 = arith.constant 2 : index
    %c0_69 = arith.constant 0 : index
    %c0_70 = arith.constant 0 : index
    %64 = vector.load %arg4[%c1_67, %c2_68, %c0_69, %c0_70] : memref<3x3x8x8xf32, #tpu.memory_space<vmem>>, vector<1x1x8x8xf32>
    %65 = vector.shape_cast %64 : vector<1x1x8x8xf32> to vector<8x8xf32>
    %cst_71 = arith.constant dense<0.000000e+00> : vector<256x8xf32>
    %66 = tpu.matmul %63, %65, %cst_71 {dimension_numbers = #tpu.dot_dimension_numbers<[1], [0], [0], [1], [0, 0, 1, 1], [], []>} : vector<256x8xf32>, vector<8x8xf32>, vector<256x8xf32> -> vector<256x8xf32>
    %c0_72 = arith.constant 0 : index
    %c0_73 = arith.constant 0 : index
    %67 = vector.load %arg10[%c0_72, %c0_73] : memref<256x8xf32, #tpu.memory_space<vmem>>, vector<256x8xf32>
    %68 = arith.addf %67, %66 : vector<256x8xf32>
    %c0_74 = arith.constant 0 : index
    %c0_75 = arith.constant 0 : index
    %69 = vector.load %arg10[%c0_74, %c0_75] : memref<256x8xf32, #tpu.memory_space<vmem>>, vector<256x8xf32>
    tpu.vector_store %arg10[%c0_74, %c0_75], %68 {strides = array<i32>} : memref<256x8xf32, #tpu.memory_space<vmem>>, vector<256x8xf32>,
    %c32 = arith.constant 32 : index
    %c0_76 = arith.constant 0 : index
    %70 = vector.load %arg9[%c32, %c0_76] : memref<288x8xf32, #tpu.memory_space<vmem>>, vector<256x8xf32>
    %c1_i32_77 = arith.constant 1 : i32
    %71 = tpu.dynamic_rotate %70 by %c1_i32_77 dim 0 : vector<256x8xf32>, i32 -> vector<256x8xf32>
    %cst_78 = arith.constant 0.000000e+00 : f32
    %72 = vector.broadcast %cst_78 : f32 to vector<256x8xf32>
    %73 = arith.select %19, %71, %72 : vector<256x8xi1>, vector<256x8xf32>
    %c2_79 = arith.constant 2 : index
    %c0_80 = arith.constant 0 : index
    %c0_81 = arith.constant 0 : index
    %c0_82 = arith.constant 0 : index
    %74 = vector.load %arg4[%c2_79, %c0_80, %c0_81, %c0_82] : memref<3x3x8x8xf32, #tpu.memory_space<vmem>>, vector<1x1x8x8xf32>
    %75 = vector.shape_cast %74 : vector<1x1x8x8xf32> to vector<8x8xf32>
    %cst_83 = arith.constant dense<0.000000e+00> : vector<256x8xf32>
    %76 = tpu.matmul %73, %75, %cst_83 {dimension_numbers = #tpu.dot_dimension_numbers<[1], [0], [0], [1], [0, 0, 1, 1], [], []>} : vector<256x8xf32>, vector<8x8xf32>, vector<256x8xf32> -> vector<256x8xf32>
    %c0_84 = arith.constant 0 : index
    %c0_85 = arith.constant 0 : index
    %77 = vector.load %arg10[%c0_84, %c0_85] : memref<256x8xf32, #tpu.memory_space<vmem>>, vector<256x8xf32>
    %78 = arith.addf %77, %76 : vector<256x8xf32>
    %c0_86 = arith.constant 0 : index
    %c0_87 = arith.constant 0 : index
    %79 = vector.load %arg10[%c0_86, %c0_87] : memref<256x8xf32, #tpu.memory_space<vmem>>, vector<256x8xf32>
    tpu.vector_store %arg10[%c0_86, %c0_87], %78 {strides = array<i32>} : memref<256x8xf32, #tpu.memory_space<vmem>>, vector<256x8xf32>,
    %c2_88 = arith.constant 2 : index
    %c1_89 = arith.constant 1 : index
    %c0_90 = arith.constant 0 : index
    %c0_91 = arith.constant 0 : index
    %80 = vector.load %arg4[%c2_88, %c1_89, %c0_90, %c0_91] : memref<3x3x8x8xf32, #tpu.memory_space<vmem>>, vector<1x1x8x8xf32>
    %81 = vector.shape_cast %80 : vector<1x1x8x8xf32> to vector<8x8xf32>
    %cst_92 = arith.constant dense<0.000000e+00> : vector<256x8xf32>
    %82 = tpu.matmul %70, %81, %cst_92 {dimension_numbers = #tpu.dot_dimension_numbers<[1], [0], [0], [1], [0, 0, 1, 1], [], []>} : vector<256x8xf32>, vector<8x8xf32>, vector<256x8xf32> -> vector<256x8xf32>
    %c0_93 = arith.constant 0 : index
    %c0_94 = arith.constant 0 : index
    %83 = vector.load %arg10[%c0_93, %c0_94] : memref<256x8xf32, #tpu.memory_space<vmem>>, vector<256x8xf32>
    %84 = arith.addf %83, %82 : vector<256x8xf32>
    %c0_95 = arith.constant 0 : index
    %c0_96 = arith.constant 0 : index
    %85 = vector.load %arg10[%c0_95, %c0_96] : memref<256x8xf32, #tpu.memory_space<vmem>>, vector<256x8xf32>
    tpu.vector_store %arg10[%c0_95, %c0_96], %84 {strides = array<i32>} : memref<256x8xf32, #tpu.memory_space<vmem>>, vector<256x8xf32>,
    %c255_i32_97 = arith.constant 255 : i32
    %86 = tpu.dynamic_rotate %70 by %c255_i32_97 dim 0 : vector<256x8xf32>, i32 -> vector<256x8xf32>
    %cst_98 = arith.constant 0.000000e+00 : f32
    %87 = vector.broadcast %cst_98 : f32 to vector<256x8xf32>
    %88 = arith.select %21, %86, %87 : vector<256x8xi1>, vector<256x8xf32>
    %c2_99 = arith.constant 2 : index
    %c2_100 = arith.constant 2 : index
    %c0_101 = arith.constant 0 : index
    %c0_102 = arith.constant 0 : index
    %89 = vector.load %arg4[%c2_99, %c2_100, %c0_101, %c0_102] : memref<3x3x8x8xf32, #tpu.memory_space<vmem>>, vector<1x1x8x8xf32>
    %90 = vector.shape_cast %89 : vector<1x1x8x8xf32> to vector<8x8xf32>
    %cst_103 = arith.constant dense<0.000000e+00> : vector<256x8xf32>
    %91 = tpu.matmul %88, %90, %cst_103 {dimension_numbers = #tpu.dot_dimension_numbers<[1], [0], [0], [1], [0, 0, 1, 1], [], []>} : vector<256x8xf32>, vector<8x8xf32>, vector<256x8xf32> -> vector<256x8xf32>
    %c0_104 = arith.constant 0 : index
    %c0_105 = arith.constant 0 : index
    %92 = vector.load %arg10[%c0_104, %c0_105] : memref<256x8xf32, #tpu.memory_space<vmem>>, vector<256x8xf32>
    %93 = arith.addf %92, %91 : vector<256x8xf32>
    %c0_106 = arith.constant 0 : index
    %c0_107 = arith.constant 0 : index
    %94 = vector.load %arg10[%c0_106, %c0_107] : memref<256x8xf32, #tpu.memory_space<vmem>>, vector<256x8xf32>
    tpu.vector_store %arg10[%c0_106, %c0_107], %93 {strides = array<i32>} : memref<256x8xf32, #tpu.memory_space<vmem>>, vector<256x8xf32>,
    %c0_108 = arith.constant 0 : index
    %c0_109 = arith.constant 0 : index
    %95 = vector.load %arg10[%c0_108, %c0_109] : memref<256x8xf32, #tpu.memory_space<vmem>>, vector<256x8xf32>
    %c0_110 = arith.constant 0 : index
    %c0_111 = arith.constant 0 : index
    %96 = vector.load %arg5[%c0_110, %c0_111] : memref<1x8xf32, #tpu.memory_space<vmem>>, vector<1x8xf32>
    %97 = vector.broadcast %96 : vector<1x8xf32> to vector<256x8xf32>
    %98 = arith.addf %95, %97 : vector<256x8xf32>
    %cst_112 = arith.constant 0.000000e+00 : f32
    %99 = vector.broadcast %cst_112 : f32 to vector<256x8xf32>
    %100 = arith.maximumf %98, %99 : vector<256x8xf32>
    %101 = vector.shape_cast %100 : vector<256x8xf32> to vector<16x16x8xf32>
    %c0_113 = arith.constant 0 : index
    %c0_114 = arith.constant 0 : index
    %c0_115 = arith.constant 0 : index
    %c0_116 = arith.constant 0 : index
    %102 = vector.load %arg7[%c0_113, %c0_114, %c0_115, %c0_116] : memref<1x16x16x8xf32, #tpu.memory_space<vmem>>, vector<1x16x16x8xf32>
    %103 = vector.shape_cast %102 : vector<1x16x16x8xf32> to vector<16x16x8xf32>
    %104 = vector.shape_cast %101 : vector<16x16x8xf32> to vector<1x16x16x8xf32>
    tpu.vector_store %arg7[%c0_113, %c0_114, %c0_115, %c0_116], %104 {strides = array<i32>} : memref<1x16x16x8xf32, #tpu.memory_space<vmem>>, vector<1x16x16x8xf32>,
    %cst_117 = arith.constant dense<0.000000e+00> : vector<8xf32>
    %105 = vector.multi_reduction <add>, %100, %cst_117 [0] : vector<256x8xf32> to vector<8xf32>
    %106 = vector.shape_cast %105 : vector<8xf32> to vector<1x8xf32>
    %c0_118 = arith.constant 0 : index
    %c0_119 = arith.constant 0 : index
    %c0_120 = arith.constant 0 : index
    %107 = vector.load %arg8[%c0_118, %c0_119, %c0_120] : memref<1x2x8xf32, #tpu.memory_space<vmem>>, vector<1x1x8xf32>
    %108 = vector.shape_cast %107 : vector<1x1x8xf32> to vector<1x8xf32>
    %109 = vector.shape_cast %106 : vector<1x8xf32> to vector<1x1x8xf32>
    tpu.vector_store %arg8[%c0_118, %c0_119, %c0_120], %109 {strides = array<i32>} : memref<1x2x8xf32, #tpu.memory_space<vmem>>, vector<1x1x8xf32>,
    %110 = arith.mulf %100, %100 : vector<256x8xf32>
    %cst_121 = arith.constant dense<0.000000e+00> : vector<8xf32>
    %111 = vector.multi_reduction <add>, %110, %cst_121 [0] : vector<256x8xf32> to vector<8xf32>
    %112 = vector.shape_cast %111 : vector<8xf32> to vector<1x8xf32>
    %c0_122 = arith.constant 0 : index
    %c1_123 = arith.constant 1 : index
    %c0_124 = arith.constant 0 : index
    %113 = vector.load %arg8[%c0_122, %c1_123, %c0_124] : memref<1x2x8xf32, #tpu.memory_space<vmem>>, vector<1x1x8xf32>
    %114 = vector.shape_cast %113 : vector<1x1x8xf32> to vector<1x8xf32>
    %115 = vector.shape_cast %112 : vector<1x8xf32> to vector<1x1x8xf32>
    tpu.vector_store %arg8[%c0_122, %c1_123, %c0_124], %115 {strides = array<i32>} : memref<1x2x8xf32, #tpu.memory_space<vmem>>, vector<1x1x8xf32>,
    return
  }
  func.func @transform_0(%arg0: i32) -> (i32, i32, i32, i32) {
    %c0_i32 = arith.constant 0 : i32
    %c0_i32_0 = arith.constant 0 : i32
    %c0_i32_1 = arith.constant 0 : i32
    %c0_i32_2 = arith.constant 0 : i32
    return %arg0, %c0_i32, %c0_i32_0, %c0_i32_1 : i32, i32, i32, i32
  }
  func.func @transform_1(%arg0: i32) -> (i32, i32) {
    %c0_i32 = arith.constant 0 : i32
    %c0_i32_0 = arith.constant 0 : i32
    %c0_i32_1 = arith.constant 0 : i32
    return %c0_i32, %c0_i32_0 : i32, i32
  }
  func.func @transform_2(%arg0: i32) -> (i32, i32) {
    %c0_i32 = arith.constant 0 : i32
    %c0_i32_0 = arith.constant 0 : i32
    %c0_i32_1 = arith.constant 0 : i32
    return %c0_i32, %c0_i32_0 : i32, i32
  }
  func.func @transform_3(%arg0: i32) -> (i32, i32, i32, i32) {
    %c0_i32 = arith.constant 0 : i32
    %c0_i32_0 = arith.constant 0 : i32
    %c0_i32_1 = arith.constant 0 : i32
    %c0_i32_2 = arith.constant 0 : i32
    %c0_i32_3 = arith.constant 0 : i32
    return %c0_i32, %c0_i32_0, %c0_i32_1, %c0_i32_2 : i32, i32, i32, i32
  }
  func.func @transform_4(%arg0: i32) -> (i32, i32) {
    %c0_i32 = arith.constant 0 : i32
    %c0_i32_0 = arith.constant 0 : i32
    %c0_i32_1 = arith.constant 0 : i32
    return %c0_i32, %c0_i32_0 : i32, i32
  }
  func.func @transform_5(%arg0: i32) -> (i32, i32, i32, i32) {
    %c0_i32 = arith.constant 0 : i32
    %c0_i32_0 = arith.constant 0 : i32
    %c0_i32_1 = arith.constant 0 : i32
    %c0_i32_2 = arith.constant 0 : i32
    return %arg0, %c0_i32, %c0_i32_0, %c0_i32_1 : i32, i32, i32, i32
  }
  func.func @transform_6(%arg0: i32) -> (i32, i32, i32, i32) {
    %c0_i32 = arith.constant 0 : i32
    %c0_i32_0 = arith.constant 0 : i32
    %c0_i32_1 = arith.constant 0 : i32
    %c0_i32_2 = arith.constant 0 : i32
    return %arg0, %c0_i32, %c0_i32_0, %c0_i32_1 : i32, i32, i32, i32
  }
  func.func @transform_7(%arg0: i32) -> (i32, i32, i32) {
    %c0_i32 = arith.constant 0 : i32
    %c0_i32_0 = arith.constant 0 : i32
    %c0_i32_1 = arith.constant 0 : i32
    return %arg0, %c0_i32, %c0_i32_0 : i32, i32, i32
  }
}

</mosaic_0001>

<bundles_post_ra>
// kernel: tpu_custom_call.1
= control target key start
LH: loop header
LB: loop body
LE: loop exit
PB: predicated region body
PF: predicated region fallthrough
CT: control target
= control target key end

     0   :  { %13 = vsyncpa [#allocation5], 0  ;;  %s9218_s0 = inlined_call_operand.vmem [shape: f32[2,16,16,4], index: 0, kind: input, shape index: {}]   ;;  %s9219_s1 = inlined_call_operand.vmem [shape: f32[4,8], index: 1, kind: input, shape index: {}]   ;;  %s9220_s2 = inlined_call_operand.vmem [shape: f32[1,8], index: 2, kind: input, shape index: {}]   ;;  %s9221_s3 = inlined_call_operand.vmem [shape: f32[3,3,8,8], index: 3, kind: input, shape index: {}]   ;;  %s9222_s4 = inlined_call_operand.vmem [shape: f32[1,8], index: 4, kind: input, shape index: {}]   ;;  %s9223_s5 = inlined_call_operand.vmem [shape: f32[2,16,16,8], index: 5, kind: output, shape index: {0}]   ;;  %s9224_s6 = inlined_call_operand.vmem [shape: f32[2,16,16,8], index: 6, kind: output, shape index: {1}]   ;;  %s9225_s7 = inlined_call_operand.hbm [shape: f32[2,2,8], index: 7, kind: output, shape index: {2}]  }
   0x1   :  { %15 = vsyncpa [#allocation5 + $0x1], 0  ;;  %s6897_s24 = smov 0   ;;  %s6899_s25 = smov 0  }
   0x2   :  { %s6901_s26 = smov 0   ;;  %s6903_s27 = smov 0  }
   0x3 LB: > { %s6918_s28 = sadd.s32 4294967295, %s6853_s27   ;;  %s5571_s29 = sadd.s32 4294967294, %s6853_s27   ;;  %s6853_s27 = sphi %s6903_s27, %s9289_s27   ;;  %s6849_s26 = sphi %s6901_s26, %s9288_s26   ;;  %s6845_s25 = sphi %s6899_s25, %s9287_s25   ;;  %s6841_s24 = sphi %s6897_s24, %s9286_s24  }
   0x4   : > { %s6922_s30 = sadd.s32 1, %s6853_s27   ;;  %s190_s8 = sadd.s32 1, %s6849_s26 }
   0x5   : > { %s187_s9 = ssub.s32 %s6853_s27, %s6922_s30  ;;  %p200_p0 = scmp.ne.s32.totalorder %s6849_s26, %s6845_s25 }
   0x6   : > { %p188_p1 = scmp.eq.s32.totalorder %s187_s9, 0  ;;  %p201_p2 = scmp.eq.s32.totalorder %s6918_s28, 1 }
   0x7   : > { %p206_p3 = scmp.ne.s32.totalorder %s6845_s25, %s6841_s24  ;;  %p207_p4 = scmp.eq.s32.totalorder %s5571_s29, 1 }
   0x8   : > { %s6933_s10 = scalar_select %p188_p1, %s6849_s26, %s190_s8  }
   0x9   : > { %p6935_p5 = por %p201_p2, %p200_p0  ;;  %p6939_p6 = por %p207_p4, %p206_p3 }
   0xa   : > { %p5574_p7 = scmp.ge.s32.totalorder %s6853_s27, 1  ;;  %p245_p8 = scmp.lt.s32.totalorder %s6853_s27, 3 }
   0xc   : > { %p246_p9 = pnand %p5574_p7, %p245_p8 }
   0xe   : > { %249 = sbr.rel (%p246_p9) target bundleno = 892 (0x37c), region = 40 }
  0x15   : > { %v334_v0 = vld [vmem:[%s9219_s1] sm:$0xf]  ;;  %vm439_vm0 = vcmask 1043456   ;;  %p287_p10 = scmp.lt.s32.totalorder %s6918_s28, 1  ;;  %vm342_vm1 = vcmask 31744   ;;  %vm668_vm2 = vcmask 64512   ;;  %v737_v37 = vlaneseq }
  0x16   : > { %6250 = vmatprep.subr.msk.mxu0 %vm439_vm0, %v334_v0  ;;  %v6855_v33 = vmov 0.0   ;;  %v5648_v34 = vld [vmem:[%s9221_s3 + $0x8] sm:$0xff]  ;;  %v873_v39 = vld [vmem:[%s9221_s3] sm:$0xff]  ;;  %v7048_v42 = vld [vmem:[%s9221_s3 + $0x10] sm:$0xff]  ;;  %vm5328_vm7 = vcmask 57344   ;;  %s5914_s29 = sshll.u32 %s6918_s28, 5 }
  0x17   : > { %6251 = vmatpush3.msk.msra.mxu0 %vm439_vm0, %v334_v0  ;;  %s288_s15 = scalar_select %p287_p10, %s6918_s28, 1  ;;  %701 = vst.msk [vmem:[#allocation2] sm:$0xff] %vm668_vm2, %v6855_v33  ;;  %702 = vst.msk [vmem:[#allocation2 + $0x8] sm:$0xff] %vm668_vm2, %v6855_v33  ;;  %v7037_v38 = vshrl.u32 %v737_v37, 7  ;;  %6300 = vmatprep.subr.mxu1 %v873_v39  ;;  %v5714_v44 = vld [vmem:[%s9221_s3 + $0x18] sm:$0xff]  ;;  %v7105_v61 = vld [vmem:[%s9221_s3 + $0x28] sm:$0xff] }
  0x18   : > { %703 = vst.msk [vmem:[#allocation2 + $0x110] sm:$0xff] %vm668_vm2, %v6855_v33  ;;  %704 = vst.msk [vmem:[#allocation2 + $0x118] sm:$0xff] %vm668_vm2, %v6855_v33  ;;  %6350 = vmatprep.subr.mxu0 %v5648_v34  ;;  %6301 = vmatpush3.msra.mxu1 %v873_v39  ;;  %v7065_v45 = vld [vmem:[%s9220_s2] ss:$0 sm:$0xff]  ;;  %s9176_s14 = scalar_lea.hbm %s9225_s7, %s5914_s29  ;;  %s6856_s28 = smov [#allocation4]  }
  0x19   : > { %s6950_s16 = sshll.u32 %s288_s15, 8  ;;  %vm808_vm3 = vcmp.lt.s32.totalorder %v7037_v38, 1  ;;  %6400 = vmatprep.subr.mxu1 %v7048_v42  ;;  %vm1678_vm4 = vcmp.lt.s32.totalorder %v7037_v38, 7  ;;  %vm740_vm5 = vcmp.ne.s32.totalorder %v7037_v38, 0  ;;  %s6795_s18 = sshll.u32 %s6856_s28, 4  ;;  %s6796_s18 = int_to_ptr.vmem [resolvable:$false] %s6795_s18 }
  0x1a   : > { %s6956_s19 = scalar_lea.vmem %s9218_s0, %s6950_s16  ;;  %s8983_s21 = scalar_lea.vmem %s9224_s6, %s6950_s16 }
  0x1b   : > { %v302_v1 = vld [vmem:[%s6956_s19] sm:$0xff]  ;;  %v303_v2 = vld [vmem:[%s6956_s19 + $0x8] sm:$0xff]  ;;  %v304_v3 = vld [vmem:[%s6956_s19 + $0x10] sm:$0xff] }
  0x1c   : > { %6252 = vmatprep.mubr.msk.f32.mxu0 %vm342_vm1, %v302_v1  ;;  %v305_v4 = vld [vmem:[%s6956_s19 + $0x18] sm:$0xff]  ;;  %v306_v5 = vld [vmem:[%s6956_s19 + $0x20] sm:$0xff]  ;;  %v307_v6 = vld [vmem:[%s6956_s19 + $0x28] sm:$0xff] }
  0x1d   : > { %6253 = vmatmul.mubr.msk.f32.vlgmr.msra.gmra.mrb[0].mxu0 %vm342_vm1, %v303_v2  ;;  %v308_v7 = vld [vmem:[%s6956_s19 + $0x30] sm:$0xff]  ;;  %v309_v8 = vld [vmem:[%s6956_s19 + $0x38] sm:$0xff]  ;;  %v310_v9 = vld [vmem:[%s6956_s19 + $0x40] sm:$0xff] }
  0x1e   : > { %6255 = vmatprep.mubr.msk.f32.mxu0 %vm342_vm1, %v304_v3  ;;  %v311_v10 = vld [vmem:[%s6956_s19 + $0x48] sm:$0xff]  ;;  %v312_v11 = vld [vmem:[%s6956_s19 + $0x50] sm:$0xff]  ;;  %v313_v12 = vld [vmem:[%s6956_s19 + $0x58] sm:$0xff]  ;;  %6351 = vmatpush3.msra.mxu0 %v5648_v34 }
  0x1f   : > { %v314_v13 = vld [vmem:[%s6956_s19 + $0x60] sm:$0xff]  ;;  %v315_v14 = vld [vmem:[%s6956_s19 + $0x68] sm:$0xff]  ;;  %v316_v15 = vld [vmem:[%s6956_s19 + $0x70] sm:$0xff]  ;;  %6450 = vmatprep.subr.mxu0 %v5714_v44 }
  0x20   : > { %v317_v16 = vld [vmem:[%s6956_s19 + $0x78] sm:$0xff]  ;;  %v318_v17 = vld [vmem:[%s6956_s19 + $0x80] sm:$0xff]  ;;  %v319_v18 = vld [vmem:[%s6956_s19 + $0x88] sm:$0xff] }
  0x21   : > { %6256 = vmatmul.mubr.msk.f32.gmra.mrb[2].mxu0 %vm342_vm1, %v305_v4  ;;  %v320_v19 = vld [vmem:[%s6956_s19 + $0x90] sm:$0xff]  ;;  %v321_v20 = vld [vmem:[%s6956_s19 + $0x98] sm:$0xff]  ;;  %v322_v21 = vld [vmem:[%s6956_s19 + $0xa0] sm:$0xff] }
  0x22   : > { %6258 = vmatprep.mubr.msk.f32.mxu0 %vm342_vm1, %v306_v5  ;;  %v323_v22 = vld [vmem:[%s6956_s19 + $0xa8] sm:$0xff]  ;;  %v324_v23 = vld [vmem:[%s6956_s19 + $0xb0] sm:$0xff]  ;;  %v325_v24 = vld [vmem:[%s6956_s19 + $0xb8] sm:$0xff] }
  0x23   : > { %v326_v25 = vld [vmem:[%s6956_s19 + $0xc0] sm:$0xff]  ;;  %v327_v26 = vld [vmem:[%s6956_s19 + $0xc8] sm:$0xff]  ;;  %v328_v27 = vld [vmem:[%s6956_s19 + $0xd0] sm:$0xff] }
  0x24   : > { %v329_v28 = vld [vmem:[%s6956_s19 + $0xd8] sm:$0xff]  ;;  %v330_v29 = vld [vmem:[%s6956_s19 + $0xe0] sm:$0xff]  ;;  %v331_v30 = vld [vmem:[%s6956_s19 + $0xe8] sm:$0xff] }
  0x25   : > { %6259 = vmatmul.mubr.msk.f32.gmra.mrb[4].mxu0 %vm342_vm1, %v307_v6  ;;  %v332_v31 = vld [vmem:[%s6956_s19 + $0xf0] sm:$0xff]  ;;  %v333_v32 = vld [vmem:[%s6956_s19 + $0xf8] sm:$0xff]  ;;  %v7029_v35 = vld [vmem:[#allocation2] sm:$0xff]  ;;  %s7071_s19 = scalar_lea.vmem %s9223_s5, %s6950_s16  ;;  %s284_s16 = sand.u32 1, %s6845_s25  }
  0x26   : > { %6261 = vmatprep.mubr.msk.f32.mxu0 %vm342_vm1, %v308_v7  ;;  %v7033_v36 = vld [vmem:[#allocation2 + $0x8] sm:$0xff]  ;;  %v776_v40 = vrot.slane %v7029_v35, 7  ;;  %v1646_v50 = vrot.slane %v7029_v35, 1  ;;  %s5575_s22 = sshll.u32 %s284_s16, 1  ;;  %s5443_s15 = scalar_lea.sflag [#allocation5], %s284_s16 }
  0x27   : > { %v777_v41 = vrot.slane %v7033_v36, 7  ;;  %v1647_v51 = vrot.slane %v7033_v36, 1  ;;  %s286_s23 = scalar_lea.vmem [#allocation4], %s5575_s22 }
  0x28   : > { %s5462_s8 = sshll.u32 %s286_s23, 4  ;;  %s9178_s8 = int_to_ptr.vmem [resolvable:$true] %s5462_s8 }
  0x29   : > { %6262 = vmatmul.mubr.msk.f32.gmra.mrb[6].mxu0 %vm342_vm1, %v309_v8  ;;  %v7056_v43 = vsel %vm808_vm3, %v776_v40, %v777_v41  ;;  %v7091_v55 = vsel %vm1678_vm4, %v1646_v50, %v1647_v51  ;;  %s6791_s17 = scalar_lea.vmem %s9178_s8, 32  ;;  %p6798_p0 = scmp.lt.s32.totalorder %s9178_s8, %s6796_s18 }
  0x2a   : > { %6264 = vmatprep.mubr.msk.f32.mxu0 %vm342_vm1, %v310_v9  ;;  %p6792_p11 = scmp.ne.s32.totalorder %s9178_s8, %s6791_s17 }
  0x2c   : > { %p6793_p12 = pnand %p6792_p11, %p6935_p5 }
  0x2d   : > { %6265 = vmatmul.mubr.msk.f32.gmra.mrb[8].mxu0 %vm342_vm1, %v311_v10 }
  0x2e   : > { %6267 = vmatprep.mubr.msk.f32.mxu0 %vm342_vm1, %v312_v11  ;;  %p6794_p13 = pneg %p6793_p12 }
  0x31   : > { %6268 = vmatmul.mubr.msk.f32.gmra.mrb[10].mxu0 %vm342_vm1, %v313_v12 }
  0x32   : > { %6270 = vmatprep.mubr.msk.f32.mxu0 %vm342_vm1, %v314_v13 }
  0x35   : > { %6271 = vmatmul.mubr.msk.f32.gmra.mrb[12].mxu0 %vm342_vm1, %v315_v14 }
  0x36   : > { %6273 = vmatprep.mubr.msk.f32.mxu0 %vm342_vm1, %v316_v15 }
  0x39   : > { %6274 = vmatmul.mubr.msk.f32.gmra.mrb[14].mxu0 %vm342_vm1, %v317_v16 }
  0x3a   : > { %6276 = vmatprep.mubr.msk.f32.mxu0 %vm342_vm1, %v318_v17 }
  0x3d   : > { %6277 = vmatmul.mubr.msk.f32.gmra.mrb[16].mxu0 %vm342_vm1, %v319_v18 }
  0x3e   : > { %6279 = vmatprep.mubr.msk.f32.mxu0 %vm342_vm1, %v320_v19 }
  0x41   : > { %6280 = vmatmul.mubr.msk.f32.gmra.mrb[18].mxu0 %vm342_vm1, %v321_v20 }
  0x42   : > { %6282 = vmatprep.mubr.msk.f32.mxu0 %vm342_vm1, %v322_v21 }
  0x45   : > { %6283 = vmatmul.mubr.msk.f32.gmra.mrb[20].mxu0 %vm342_vm1, %v323_v22 }
  0x46   : > { %6285 = vmatprep.mubr.msk.f32.mxu0 %vm342_vm1, %v324_v23 }
  0x49   : > { %6286 = vmatmul.mubr.msk.f32.gmra.mrb[22].mxu0 %vm342_vm1, %v325_v24 }
  0x4a   : > { %6288 = vmatprep.mubr.msk.f32.mxu0 %vm342_vm1, %v326_v25 }
  0x4d   : > { %6289 = vmatmul.mubr.msk.f32.gmra.mrb[24].mxu0 %vm342_vm1, %v327_v26 }
  0x4e   : > { %6291 = vmatprep.mubr.msk.f32.mxu0 %vm342_vm1, %v328_v27 }
  0x51   : > { %6292 = vmatmul.mubr.msk.f32.gmra.mrb[26].mxu0 %vm342_vm1, %v329_v28 }
  0x52   : > { %6294 = vmatprep.mubr.msk.f32.mxu0 %vm342_vm1, %v330_v29 }
  0x55   : > { %6295 = vmatmul.mubr.msk.f32.gmra.mrb[28].mxu0 %vm342_vm1, %v331_v30 }
  0x56   : > { %6297 = vmatprep.mubr.msk.f32.mxu0 %vm342_vm1, %v332_v31 }
  0x59   : > { %6298 = vmatmul.mubr.msk.f32.gmra.mrb[30].mxu0 %vm342_vm1, %v333_v32 }
  0x5a   : > { %6352 = vmatprep.mubr.msk.f32.mxu0 %vm668_vm2, %v7029_v35 }
  0x5d   : > { %6353 = vmatmul.mubr.msk.f32.vlgmr.msra.gmra.mrb[32].mxu0 %vm668_vm2, %v7033_v36  ;;  %v7599_v36 = vld [vmem:[%s9221_s3 + $0x30] sm:$0xff] }
  0x5e   : > { %6451 = vmatpush3.msra.mxu0 %v5714_v44 }
  0x5f   : > { %6550 = vmatprep.subr.mxu0 %v7105_v61 }
  0xf0   : > { %v6254_v46 = vpop.f32.mrb[0].mxu0 }
  0xf1   : > { %v515_v47 = vadd.f32 %v6254_v46, %v7065_v45  ;;  %v509_v48 = vpop.f32.mrb[1].mxu0 }
  0xf2   : > { %v510_v49 = vadd.f32 %v7065_v45, %v509_v48 }
  0xf3   : > { %670 = vst.msk [vmem:[%s7071_s19 + $0x8] sm:$0xff] %vm668_vm2, %v515_v47  ;;  %706 = vst.msk [vmem:[#allocation2 + $0x18] sm:$0xff] %vm668_vm2, %v515_v47 }
  0xf4   : > { %669 = vst.msk [vmem:[%s7071_s19] sm:$0xff] %vm668_vm2, %v510_v49  ;;  %705 = vst.msk [vmem:[#allocation2 + $0x10] sm:$0xff] %vm668_vm2, %v510_v49  ;;  %v6257_v52 = vpop.f32.mrb[2].mxu0 }
  0xf5   : > { %v525_v53 = vadd.f32 %v6257_v52, %v7065_v45  ;;  %v519_v54 = vpop.f32.mrb[3].mxu0 }
  0xf6   : > { %v520_v56 = vadd.f32 %v7065_v45, %v519_v54 }
  0xf7   : > { %672 = vst.msk [vmem:[%s7071_s19 + $0x18] sm:$0xff] %vm668_vm2, %v525_v53  ;;  %708 = vst.msk [vmem:[#allocation2 + $0x28] sm:$0xff] %vm668_vm2, %v525_v53 }
  0xf8   : > { %671 = vst.msk [vmem:[%s7071_s19 + $0x10] sm:$0xff] %vm668_vm2, %v520_v56  ;;  %707 = vst.msk [vmem:[#allocation2 + $0x20] sm:$0xff] %vm668_vm2, %v520_v56  ;;  %v6260_v57 = vpop.f32.mrb[4].mxu0 }
  0xf9   : > { %v535_v58 = vadd.f32 %v6260_v57, %v7065_v45  ;;  %v529_v59 = vpop.f32.mrb[5].mxu0 }
  0xfa   : > { %v530_v60 = vadd.f32 %v7065_v45, %v529_v59  ;;  %v7118_v0 = vld [vmem:[#allocation2 + $0x18] sm:$0xff] }
  0xfb   : > { %674 = vst.msk [vmem:[%s7071_s19 + $0x28] sm:$0xff] %vm668_vm2, %v535_v58  ;;  %710 = vst.msk [vmem:[#allocation2 + $0x38] sm:$0xff] %vm668_vm2, %v535_v58  ;;  %v7110_v62 = vld [vmem:[#allocation2 + $0x10] sm:$0xff] }
  0xfc   : > { %673 = vst.msk [vmem:[%s7071_s19 + $0x20] sm:$0xff] %vm668_vm2, %v530_v60  ;;  %709 = vst.msk [vmem:[#allocation2 + $0x30] sm:$0xff] %vm668_vm2, %v530_v60  ;;  %v6263_v63 = vpop.f32.mrb[6].mxu0  ;;  %6355 = vmatprep.mubr.msk.f32.mxu0 %vm668_vm2, %v7110_v62 }
  0xfd   : > { %v545_v1 = vadd.f32 %v6263_v63, %v7065_v45  ;;  %v539_v2 = vpop.f32.mrb[7].mxu0  ;;  %6356 = vmatmul.mubr.msk.f32.gmra.mrb[34].mxu0 %vm668_vm2, %v7118_v0 }
  0xfe   : > { %v540_v3 = vadd.f32 %v7065_v45, %v539_v2  ;;  %v7134_v6 = vld [vmem:[#allocation2 + $0x28] sm:$0xff] }
  0xff   : > { %676 = vst.msk [vmem:[%s7071_s19 + $0x38] sm:$0xff] %vm668_vm2, %v545_v1  ;;  %712 = vst.msk [vmem:[#allocation2 + $0x48] sm:$0xff] %vm668_vm2, %v545_v1  ;;  %v7127_v4 = vld [vmem:[#allocation2 + $0x20] sm:$0xff] }
 0x100   : > { %675 = vst.msk [vmem:[%s7071_s19 + $0x30] sm:$0xff] %vm668_vm2, %v540_v3  ;;  %711 = vst.msk [vmem:[#allocation2 + $0x40] sm:$0xff] %vm668_vm2, %v540_v3  ;;  %v6266_v5 = vpop.f32.mrb[8].mxu0  ;;  %6358 = vmatprep.mubr.msk.f32.mxu0 %vm668_vm2, %v7127_v4 }
 0x101   : > { %v555_v7 = vadd.f32 %v6266_v5, %v7065_v45  ;;  %v549_v8 = vpop.f32.mrb[9].mxu0  ;;  %6359 = vmatmul.mubr.msk.f32.gmra.mrb[36].mxu0 %vm668_vm2, %v7134_v6 }
 0x102   : > { %v550_v9 = vadd.f32 %v7065_v45, %v549_v8  ;;  %v7150_v12 = vld [vmem:[#allocation2 + $0x38] sm:$0xff] }
 0x103   : > { %678 = vst.msk [vmem:[%s7071_s19 + $0x48] sm:$0xff] %vm668_vm2, %v555_v7  ;;  %714 = vst.msk [vmem:[#allocation2 + $0x58] sm:$0xff] %vm668_vm2, %v555_v7  ;;  %v7143_v10 = vld [vmem:[#allocation2 + $0x30] sm:$0xff] }
 0x104   : > { %677 = vst.msk [vmem:[%s7071_s19 + $0x40] sm:$0xff] %vm668_vm2, %v550_v9  ;;  %713 = vst.msk [vmem:[#allocation2 + $0x50] sm:$0xff] %vm668_vm2, %v550_v9  ;;  %v6269_v11 = vpop.f32.mrb[10].mxu0  ;;  %6361 = vmatprep.mubr.msk.f32.mxu0 %vm668_vm2, %v7143_v10 }
 0x105   : > { %v565_v13 = vadd.f32 %v6269_v11, %v7065_v45  ;;  %v559_v14 = vpop.f32.mrb[11].mxu0  ;;  %6362 = vmatmul.mubr.msk.f32.gmra.mrb[38].mxu0 %vm668_vm2, %v7150_v12 }
 0x106   : > { %v560_v15 = vadd.f32 %v7065_v45, %v559_v14  ;;  %v7166_v18 = vld [vmem:[#allocation2 + $0x48] sm:$0xff] }
 0x107   : > { %680 = vst.msk [vmem:[%s7071_s19 + $0x58] sm:$0xff] %vm668_vm2, %v565_v13  ;;  %716 = vst.msk [vmem:[#allocation2 + $0x68] sm:$0xff] %vm668_vm2, %v565_v13  ;;  %v7159_v16 = vld [vmem:[#allocation2 + $0x40] sm:$0xff] }
 0x108   : > { %679 = vst.msk [vmem:[%s7071_s19 + $0x50] sm:$0xff] %vm668_vm2, %v560_v15  ;;  %715 = vst.msk [vmem:[#allocation2 + $0x60] sm:$0xff] %vm668_vm2, %v560_v15  ;;  %v6272_v17 = vpop.f32.mrb[12].mxu0  ;;  %6364 = vmatprep.mubr.msk.f32.mxu0 %vm668_vm2, %v7159_v16 }
 0x109   : > { %v575_v19 = vadd.f32 %v6272_v17, %v7065_v45  ;;  %v569_v20 = vpop.f32.mrb[13].mxu0  ;;  %6365 = vmatmul.mubr.msk.f32.gmra.mrb[40].mxu0 %vm668_vm2, %v7166_v18 }
 0x10a   : > { %v570_v21 = vadd.f32 %v7065_v45, %v569_v20  ;;  %v7182_v24 = vld [vmem:[#allocation2 + $0x58] sm:$0xff] }
 0x10b   : > { %682 = vst.msk [vmem:[%s7071_s19 + $0x68] sm:$0xff] %vm668_vm2, %v575_v19  ;;  %718 = vst.msk [vmem:[#allocation2 + $0x78] sm:$0xff] %vm668_vm2, %v575_v19  ;;  %v7175_v22 = vld [vmem:[#allocation2 + $0x50] sm:$0xff] }
 0x10c   : > { %681 = vst.msk [vmem:[%s7071_s19 + $0x60] sm:$0xff] %vm668_vm2, %v570_v21  ;;  %717 = vst.msk [vmem:[#allocation2 + $0x70] sm:$0xff] %vm668_vm2, %v570_v21  ;;  %v6275_v23 = vpop.f32.mrb[14].mxu0  ;;  %6367 = vmatprep.mubr.msk.f32.mxu0 %vm668_vm2, %v7175_v22 }
 0x10d   : > { %v585_v25 = vadd.f32 %v6275_v23, %v7065_v45  ;;  %v579_v26 = vpop.f32.mrb[15].mxu0  ;;  %6368 = vmatmul.mubr.msk.f32.gmra.mrb[42].mxu0 %vm668_vm2, %v7182_v24 }
 0x10e   : > { %v580_v27 = vadd.f32 %v7065_v45, %v579_v26  ;;  %v7198_v30 = vld [vmem:[#allocation2 + $0x68] sm:$0xff] }
 0x10f   : > { %684 = vst.msk [vmem:[%s7071_s19 + $0x78] sm:$0xff] %vm668_vm2, %v585_v25  ;;  %720 = vst.msk [vmem:[#allocation2 + $0x88] sm:$0xff] %vm668_vm2, %v585_v25  ;;  %v7191_v28 = vld [vmem:[#allocation2 + $0x60] sm:$0xff] }
 0x110   : > { %683 = vst.msk [vmem:[%s7071_s19 + $0x70] sm:$0xff] %vm668_vm2, %v580_v27  ;;  %719 = vst.msk [vmem:[#allocation2 + $0x80] sm:$0xff] %vm668_vm2, %v580_v27  ;;  %v6278_v29 = vpop.f32.mrb[16].mxu0  ;;  %6370 = vmatprep.mubr.msk.f32.mxu0 %vm668_vm2, %v7191_v28 }
 0x111   : > { %v595_v31 = vadd.f32 %v6278_v29, %v7065_v45  ;;  %v589_v32 = vpop.f32.mrb[17].mxu0  ;;  %6371 = vmatmul.mubr.msk.f32.gmra.mrb[44].mxu0 %vm668_vm2, %v7198_v30 }
 0x112   : > { %v590_v33 = vadd.f32 %v7065_v45, %v589_v32  ;;  %v7214_v39 = vld [vmem:[#allocation2 + $0x78] sm:$0xff] }
 0x113   : > { %686 = vst.msk [vmem:[%s7071_s19 + $0x88] sm:$0xff] %vm668_vm2, %v595_v31  ;;  %722 = vst.msk [vmem:[#allocation2 + $0x98] sm:$0xff] %vm668_vm2, %v595_v31  ;;  %v7207_v34 = vld [vmem:[#allocation2 + $0x70] sm:$0xff] }
 0x114   : > { %685 = vst.msk [vmem:[%s7071_s19 + $0x80] sm:$0xff] %vm668_vm2, %v590_v33  ;;  %721 = vst.msk [vmem:[#allocation2 + $0x90] sm:$0xff] %vm668_vm2, %v590_v33  ;;  %v6281_v37 = vpop.f32.mrb[18].mxu0  ;;  %6373 = vmatprep.mubr.msk.f32.mxu0 %vm668_vm2, %v7207_v34 }
 0x115   : > { %v605_v44 = vadd.f32 %v6281_v37, %v7065_v45  ;;  %v599_v46 = vpop.f32.mrb[19].mxu0  ;;  %6374 = vmatmul.mubr.msk.f32.gmra.mrb[46].mxu0 %vm668_vm2, %v7214_v39 }
 0x116   : > { %v600_v47 = vadd.f32 %v7065_v45, %v599_v46  ;;  %v7230_v52 = vld [vmem:[#allocation2 + $0x88] sm:$0xff] }
 0x117   : > { %688 = vst.msk [vmem:[%s7071_s19 + $0x98] sm:$0xff] %vm668_vm2, %v605_v44  ;;  %724 = vst.msk [vmem:[#allocation2 + $0xa8] sm:$0xff] %vm668_vm2, %v605_v44  ;;  %v7223_v48 = vld [vmem:[#allocation2 + $0x80] sm:$0xff] }
 0x118   : > { %687 = vst.msk [vmem:[%s7071_s19 + $0x90] sm:$0xff] %vm668_vm2, %v600_v47  ;;  %723 = vst.msk [vmem:[#allocation2 + $0xa0] sm:$0xff] %vm668_vm2, %v600_v47  ;;  %v6284_v49 = vpop.f32.mrb[20].mxu0  ;;  %6376 = vmatprep.mubr.msk.f32.mxu0 %vm668_vm2, %v7223_v48 }
 0x119   : > { %v615_v53 = vadd.f32 %v6284_v49, %v7065_v45  ;;  %v609_v54 = vpop.f32.mrb[21].mxu0  ;;  %6377 = vmatmul.mubr.msk.f32.gmra.mrb[48].mxu0 %vm668_vm2, %v7230_v52  ;;  %v778_v49 = vrot.slane %v7110_v62, 7 }
 0x11a   : > { %v610_v56 = vadd.f32 %v7065_v45, %v609_v54  ;;  %v7246_v59 = vld [vmem:[#allocation2 + $0x98] sm:$0xff] }
 0x11b   : > { %690 = vst.msk [vmem:[%s7071_s19 + $0xa8] sm:$0xff] %vm668_vm2, %v615_v53  ;;  %726 = vst.msk [vmem:[#allocation2 + $0xb8] sm:$0xff] %vm668_vm2, %v615_v53  ;;  %v7239_v57 = vld [vmem:[#allocation2 + $0x90] sm:$0xff] }
 0x11c   : > { %689 = vst.msk [vmem:[%s7071_s19 + $0xa0] sm:$0xff] %vm668_vm2, %v610_v56  ;;  %725 = vst.msk [vmem:[#allocation2 + $0xb0] sm:$0xff] %vm668_vm2, %v610_v56  ;;  %v6287_v58 = vpop.f32.mrb[22].mxu0  ;;  %6379 = vmatprep.mubr.msk.f32.mxu0 %vm668_vm2, %v7239_v57  ;;  %v780_v56 = vrot.slane %v7127_v4, 7 }
 0x11d   : > { %v625_v60 = vadd.f32 %v6287_v58, %v7065_v45  ;;  %v619_v63 = vpop.f32.mrb[23].mxu0  ;;  %6380 = vmatmul.mubr.msk.f32.gmra.mrb[50].mxu0 %vm668_vm2, %v7246_v59 }
 0x11e   : > { %v620_v1 = vadd.f32 %v7065_v45, %v619_v63  ;;  %v7262_v5 = vld [vmem:[#allocation2 + $0xa8] sm:$0xff] }
 0x11f   : > { %692 = vst.msk [vmem:[%s7071_s19 + $0xb8] sm:$0xff] %vm668_vm2, %v625_v60  ;;  %728 = vst.msk [vmem:[#allocation2 + $0xc8] sm:$0xff] %vm668_vm2, %v625_v60  ;;  %v7255_v2 = vld [vmem:[#allocation2 + $0xa0] sm:$0xff]  ;;  %v838_v60 = vsel %vm808_vm3, %v777_v41, %v778_v49 }
 0x120   : > { %691 = vst.msk [vmem:[%s7071_s19 + $0xb0] sm:$0xff] %vm668_vm2, %v620_v1  ;;  %727 = vst.msk [vmem:[#allocation2 + $0xc0] sm:$0xff] %vm668_vm2, %v620_v1  ;;  %v6290_v3 = vpop.f32.mrb[24].mxu0  ;;  %6382 = vmatprep.mubr.msk.f32.mxu0 %vm668_vm2, %v7255_v2  ;;  %v843_v41 = vsel %vm740_vm5, %v838_v60, 0.0  ;;  %v787_v60 = vrot.slane %v7182_v24, 7 }
 0x121   : > { %v635_v7 = vadd.f32 %v6290_v3, %v7065_v45  ;;  %v629_v8 = vpop.f32.mrb[25].mxu0  ;;  %6383 = vmatmul.mubr.msk.f32.gmra.mrb[52].mxu0 %vm668_vm2, %v7262_v5  ;;  %v779_v3 = vrot.slane %v7118_v0, 7 }
 0x122   : > { %v630_v9 = vadd.f32 %v7065_v45, %v629_v8  ;;  %v7278_v14 = vld [vmem:[#allocation2 + $0xb8] sm:$0xff]  ;;  %v782_v8 = vrot.slane %v7143_v10, 7 }
 0x123   : > { %694 = vst.msk [vmem:[%s7071_s19 + $0xc8] sm:$0xff] %vm668_vm2, %v635_v7  ;;  %730 = vst.msk [vmem:[#allocation2 + $0xd8] sm:$0xff] %vm668_vm2, %v635_v7  ;;  %v7271_v11 = vld [vmem:[#allocation2 + $0xb0] sm:$0xff] }
 0x124   : > { %693 = vst.msk [vmem:[%s7071_s19 + $0xc0] sm:$0xff] %vm668_vm2, %v630_v9  ;;  %729 = vst.msk [vmem:[#allocation2 + $0xd0] sm:$0xff] %vm668_vm2, %v630_v9  ;;  %v6293_v13 = vpop.f32.mrb[26].mxu0  ;;  %6385 = vmatprep.mubr.msk.f32.mxu0 %vm668_vm2, %v7271_v11 }
 0x125   : > { %v645_v15 = vadd.f32 %v6293_v13, %v7065_v45  ;;  %v639_v17 = vpop.f32.mrb[27].mxu0  ;;  %6386 = vmatmul.mubr.msk.f32.gmra.mrb[54].mxu0 %vm668_vm2, %v7278_v14  ;;  %v836_v13 = vsel %vm808_vm3, %v779_v3, %v780_v56 }
 0x126   : > { %v640_v19 = vadd.f32 %v7065_v45, %v639_v17  ;;  %v7294_v23 = vld [vmem:[#allocation2 + $0xc8] sm:$0xff]  ;;  %v845_v17 = vsel %vm740_vm5, %v836_v13, 0.0 }
 0x127   : > { %696 = vst.msk [vmem:[%s7071_s19 + $0xd8] sm:$0xff] %vm668_vm2, %v645_v15  ;;  %732 = vst.msk [vmem:[#allocation2 + $0xe8] sm:$0xff] %vm668_vm2, %v645_v15  ;;  %v7287_v20 = vld [vmem:[#allocation2 + $0xc0] sm:$0xff]  ;;  %v781_v15 = vrot.slane %v7134_v6, 7 }
 0x128   : > { %695 = vst.msk [vmem:[%s7071_s19 + $0xd0] sm:$0xff] %vm668_vm2, %v640_v19  ;;  %731 = vst.msk [vmem:[#allocation2 + $0xe0] sm:$0xff] %vm668_vm2, %v640_v19  ;;  %v6296_v21 = vpop.f32.mrb[28].mxu0  ;;  %6388 = vmatprep.mubr.msk.f32.mxu0 %vm668_vm2, %v7287_v20  ;;  %v7392_v19 = vld [vmem:[%s9221_s3 + $0x38] sm:$0xff] }
 0x129   : > { %v655_v25 = vadd.f32 %v6296_v21, %v7065_v45  ;;  %v649_v26 = vpop.f32.mrb[29].mxu0  ;;  %6389 = vmatmul.mubr.msk.f32.gmra.mrb[56].mxu0 %vm668_vm2, %v7294_v23  ;;  %v784_v21 = vrot.slane %v7159_v16, 7 }
 0x12a   : > { %v650_v27 = vadd.f32 %v7065_v45, %v649_v26  ;;  %v7310_v32 = vld [vmem:[#allocation2 + $0xd8] sm:$0xff]  ;;  %v783_v26 = vrot.slane %v7150_v12, 7 }
 0x12b   : > { %698 = vst.msk [vmem:[%s7071_s19 + $0xe8] sm:$0xff] %vm668_vm2, %v655_v25  ;;  %734 = vst.msk [vmem:[#allocation2 + $0xf8] sm:$0xff] %vm668_vm2, %v655_v25  ;;  %v7303_v29 = vld [vmem:[#allocation2 + $0xd0] sm:$0xff]  ;;  %v834_v25 = vsel %vm808_vm3, %v781_v15, %v782_v8 }
 0x12c   : > { %697 = vst.msk [vmem:[%s7071_s19 + $0xe0] sm:$0xff] %vm668_vm2, %v650_v27  ;;  %733 = vst.msk [vmem:[#allocation2 + $0xf0] sm:$0xff] %vm668_vm2, %v650_v27  ;;  %v6299_v31 = vpop.f32.mrb[30].mxu0  ;;  %6391 = vmatprep.mubr.msk.f32.mxu0 %vm668_vm2, %v7303_v29  ;;  %v835_v27 = vsel %vm808_vm3, %v780_v56, %v781_v15  ;;  %v788_v56 = vrot.slane %v7191_v28, 7  ;;  %v792_v15 = vrot.slane %v7223_v48, 7 }
 0x12d   : > { %v665_v33 = vadd.f32 %v6299_v31, %v7065_v45  ;;  %v659_v37 = vpop.f32.mrb[31].mxu0  ;;  %6392 = vmatmul.mubr.msk.f32.gmra.mrb[58].mxu0 %vm668_vm2, %v7310_v32  ;;  %v847_v31 = vsel %vm740_vm5, %v834_v25, 0.0  ;;  %v791_v25 = vrot.slane %v7214_v39, 7 }
 0x12e   : > { %v660_v44 = vadd.f32 %v7065_v45, %v659_v37  ;;  %v7326_v47 = vld [vmem:[#allocation2 + $0xe8] sm:$0xff]  ;;  %v785_v37 = vrot.slane %v7166_v18, 7 }
 0x12f   : > { %700 = vst.msk [vmem:[%s7071_s19 + $0xf8] sm:$0xff] %vm668_vm2, %v665_v33  ;;  %736 = vst.msk [vmem:[#allocation2 + $0x108] sm:$0xff] %vm668_vm2, %v665_v33  ;;  %v7319_v46 = vld [vmem:[#allocation2 + $0xe0] sm:$0xff]  ;;  %v786_v33 = vrot.slane %v7175_v22, 7 }
 0x130   : > { %699 = vst.msk [vmem:[%s7071_s19 + $0xf0] sm:$0xff] %vm668_vm2, %v660_v44  ;;  %735 = vst.msk [vmem:[#allocation2 + $0x100] sm:$0xff] %vm668_vm2, %v660_v44  ;;  %6394 = vmatprep.mubr.msk.f32.mxu0 %vm668_vm2, %v7319_v46  ;;  %v833_v44 = vsel %vm808_vm3, %v782_v8, %v783_v26  ;;  %v828_v8 = vsel %vm808_vm3, %v787_v60, %v788_v56  ;;  %s6797_s19 = scalar_lea.vmem %s6796_s18, 64 }
 0x131   : > { %6395 = vmatmul.mubr.msk.f32.gmra.mrb[60].mxu0 %vm668_vm2, %v7326_v47  ;;  %v829_v13 = vsel %vm808_vm3, %v786_v33, %v787_v60  ;;  %p6799_p1 = scmp.lt.s32.totalorder %s6797_s19, %s6791_s17 }
 0x132   : > { %v7331_v45 = vld [vmem:[#allocation2 + $0xf8] sm:$0xff] }
 0x133   : > { %v7333_v53 = vld [vmem:[#allocation2 + $0xf0] sm:$0xff]  ;;  %v7336_v54 = vrot.slane %v7331_v45, 7  ;;  %p6800_p2 = por %p6799_p1, %p6798_p0 }
 0x134   : > { %6397 = vmatprep.mubr.msk.f32.mxu0 %vm668_vm2, %v7333_v53 }
 0x135   : > { %6398 = vmatmul.mubr.msk.f32.gmra.mrb[62].mxu0 %vm668_vm2, %v7331_v45  ;;  %v840_v58 = vsel %vm808_vm3, %v7336_v54, %v776_v40  ;;  %v7363_v40 = vld [vmem:[%s9221_s3 + $0x20] sm:$0xff]  ;;  %p6801_p3 = pnand %p6800_p2, %p6794_p13 }
 0x136   : > { %v841_v63 = vsel %vm740_vm5, %v840_v58, 0.0  ;;  %v7355_v1 = vld [vmem:[#allocation2 + $0x108] sm:$0xff]  ;;  %v830_v58 = vsel %vm808_vm3, %v785_v37, %v786_v33  ;;  %v824_v33 = vsel %vm808_vm3, %v791_v25, %v792_v15 }
 0x137   : > { %6302 = vmatprep.mubr.msk.f32.mxu1 %vm668_vm2, %v841_v63  ;;  %v2225_v7 = vrot.slane %v7355_v1, 7  ;;  %v831_v63 = vsel %vm808_vm3, %v784_v21, %v785_v37 }
 0x138   : > { %6303 = vmatmul.mubr.msk.f32.vlgmr.msra.gmra.mrb[0].mxu1 %vm668_vm2, %v7056_v43 }
 0x139   : > { %6401 = vmatpush3.msra.mxu1 %v7048_v42  ;;  %6305 = vmatprep.mubr.msk.f32.mxu1 %vm668_vm2, %v843_v41  ;;  %v2257_v9 = vsel %vm808_vm3, %v2225_v7, %v778_v49  ;;  %v837_v42 = vsel %vm808_vm3, %v778_v49, %v779_v3  ;;  %v851_v3 = vsel %vm740_vm5, %v830_v58, 0.0  ;;  %v790_v41 = vrot.slane %v7207_v34, 7 }
 0x13a   : > { %v2258_v43 = vsel %vm740_vm5, %v2257_v9, 0.0  ;;  %6500 = vmatprep.subr.mxu1 %v7363_v40  ;;  %v789_v9 = vrot.slane %v7198_v30, 7  ;;  %v795_v58 = vrot.slane %v7246_v59, 7 }
 0x13b   : > { %6452 = vmatprep.mubr.msk.f32.mxu0 %vm668_vm2, %v2258_v43  ;;  %v853_v43 = vsel %vm740_vm5, %v828_v8, 0.0  ;;  %v825_v37 = vsel %vm808_vm3, %v790_v41, %v791_v25  ;;  %v797_v8 = vrot.slane %v7262_v5, 7 }
 0x13c   : > { %6306 = vmatmul.mubr.msk.f32.gmra.mrb[2].mxu1 %vm668_vm2, %v837_v42  ;;  %6453 = vmatmul.mubr.msk.f32.vlgmr.msra.gmra.mrb[64].mxu0 %vm668_vm2, %v837_v42  ;;  %v826_v42 = vsel %vm808_vm3, %v789_v9, %v790_v41 }
 0x13d   : > { %6308 = vmatprep.mubr.msk.f32.mxu1 %vm668_vm2, %v845_v17  ;;  %6455 = vmatprep.mubr.msk.f32.mxu0 %vm668_vm2, %v845_v17  ;;  %v7449_v17 = vpop.f32.mrb[32].mxu0 }
 0x13e   : > { %6551 = vmatpush3.msra.mxu0 %v7105_v61  ;;  %v832_v61 = vsel %vm808_vm3, %v783_v26, %v784_v21  ;;  %v7451_v21 = vpop.f32.mrb[33].mxu0  ;;  %v827_v26 = vsel %vm808_vm3, %v788_v56, %v789_v9 }
 0x13f   : > { %6650 = vmatprep.subr.mxu0 %v7392_v19  ;;  %v849_v49 = vsel %vm740_vm5, %v832_v61, 0.0  ;;  %v793_v61 = vrot.slane %v7230_v52, 7 }
 0x140   : > { %6309 = vmatmul.mubr.msk.f32.gmra.mrb[4].mxu1 %vm668_vm2, %v835_v27  ;;  %6456 = vmatmul.mubr.msk.f32.gmra.mrb[66].mxu0 %vm668_vm2, %v835_v27  ;;  %v855_v27 = vsel %vm740_vm5, %v826_v42, 0.0  ;;  %v799_v42 = vrot.slane %v7278_v14, 7 }
 0x141   : > { %6311 = vmatprep.mubr.msk.f32.mxu1 %vm668_vm2, %v847_v31  ;;  %6458 = vmatprep.mubr.msk.f32.mxu0 %vm668_vm2, %v847_v31  ;;  %v794_v31 = vrot.slane %v7239_v57, 7  ;;  %v823_v60 = vsel %vm808_vm3, %v792_v15, %v793_v61 }
 0x143   : > { %v822_v56 = vsel %vm808_vm3, %v793_v61, %v794_v31  ;;  %v821_v9 = vsel %vm808_vm3, %v794_v31, %v795_v58 }
 0x144   : > { %6312 = vmatmul.mubr.msk.f32.gmra.mrb[6].mxu1 %vm668_vm2, %v833_v44  ;;  %6459 = vmatmul.mubr.msk.f32.gmra.mrb[68].mxu0 %vm668_vm2, %v833_v44  ;;  %v857_v44 = vsel %vm740_vm5, %v824_v33, 0.0  ;;  %v801_v33 = vrot.slane %v7294_v23, 7 }
 0x145   : > { %6314 = vmatprep.mubr.msk.f32.mxu1 %vm668_vm2, %v849_v49  ;;  %6461 = vmatprep.mubr.msk.f32.mxu0 %vm668_vm2, %v849_v49  ;;  %v796_v49 = vrot.slane %v7255_v2, 7 }
 0x147   : > { %v820_v41 = vsel %vm808_vm3, %v795_v58, %v796_v49  ;;  %v819_v25 = vsel %vm808_vm3, %v796_v49, %v797_v8 }
 0x148   : > { %6315 = vmatmul.mubr.msk.f32.gmra.mrb[8].mxu1 %vm668_vm2, %v831_v63  ;;  %6462 = vmatmul.mubr.msk.f32.gmra.mrb[70].mxu0 %vm668_vm2, %v831_v63  ;;  %v859_v63 = vsel %vm740_vm5, %v822_v56, 0.0  ;;  %v803_v56 = vrot.slane %v7310_v32, 7 }
 0x149   : > { %6317 = vmatprep.mubr.msk.f32.mxu1 %vm668_vm2, %v851_v3  ;;  %6464 = vmatprep.mubr.msk.f32.mxu0 %vm668_vm2, %v851_v3  ;;  %v798_v3 = vrot.slane %v7271_v11, 7 }
 0x14b   : > { %v818_v15 = vsel %vm808_vm3, %v797_v8, %v798_v3  ;;  %v817_v61 = vsel %vm808_vm3, %v798_v3, %v799_v42  ;;  %v805_v8 = vrot.slane %v7326_v47, 7 }
 0x14c   : > { %6318 = vmatmul.mubr.msk.f32.gmra.mrb[10].mxu1 %vm668_vm2, %v829_v13  ;;  %6465 = vmatmul.mubr.msk.f32.gmra.mrb[72].mxu0 %vm668_vm2, %v829_v13  ;;  %v861_v13 = vsel %vm740_vm5, %v820_v41, 0.0  ;;  %v7537_v41 = vld [vmem:[#allocation2 + $0x100] sm:$0xff] }
 0x14d   : > { %6320 = vmatprep.mubr.msk.f32.mxu1 %vm668_vm2, %v853_v43  ;;  %6467 = vmatprep.mubr.msk.f32.mxu0 %vm668_vm2, %v853_v43  ;;  %v800_v43 = vrot.slane %v7287_v20, 7 }
 0x14f   : > { %v816_v31 = vsel %vm808_vm3, %v799_v42, %v800_v43  ;;  %v815_v58 = vsel %vm808_vm3, %v800_v43, %v801_v33 }
 0x150   : > { %6321 = vmatmul.mubr.msk.f32.gmra.mrb[12].mxu1 %vm668_vm2, %v827_v26  ;;  %6468 = vmatmul.mubr.msk.f32.gmra.mrb[74].mxu0 %vm668_vm2, %v827_v26  ;;  %v863_v26 = vsel %vm740_vm5, %v818_v15, 0.0  ;;  %v7551_v15 = vrot.slane %v7537_v41, 7 }
 0x151   : > { %6323 = vmatprep.mubr.msk.f32.mxu1 %vm668_vm2, %v855_v27  ;;  %6470 = vmatprep.mubr.msk.f32.mxu0 %vm668_vm2, %v855_v27  ;;  %v802_v27 = vrot.slane %v7303_v29, 7 }
 0x153   : > { %v814_v49 = vsel %vm808_vm3, %v801_v33, %v802_v27 }
 0x154   : > { %6324 = vmatmul.mubr.msk.f32.gmra.mrb[14].mxu1 %vm668_vm2, %v825_v37  ;;  %6471 = vmatmul.mubr.msk.f32.gmra.mrb[76].mxu0 %vm668_vm2, %v825_v37  ;;  %v865_v37 = vsel %vm740_vm5, %v816_v31, 0.0  ;;  %v2227_v31 = vsel %vm808_vm3, %v7336_v54, %v7551_v15 }
 0x155   : > { %6326 = vmatprep.mubr.msk.f32.mxu1 %vm668_vm2, %v857_v44  ;;  %6473 = vmatprep.mubr.msk.f32.mxu0 %vm668_vm2, %v857_v44  ;;  %v804_v44 = vrot.slane %v7319_v46, 7 }
 0x157   : > { %v812_v3 = vsel %vm808_vm3, %v803_v56, %v804_v44  ;;  %v811_v42 = vsel %vm808_vm3, %v804_v44, %v805_v8  ;;  %v2288_v44 = vsel %vm740_vm5, %v2227_v31, 0.0  ;;  %v1657_v31 = vrot.slane %v7182_v24, 1 }
 0x158   : > { %6327 = vmatmul.mubr.msk.f32.gmra.mrb[16].mxu1 %vm668_vm2, %v823_v60  ;;  %6474 = vmatmul.mubr.msk.f32.gmra.mrb[78].mxu0 %vm668_vm2, %v823_v60  ;;  %v867_v60 = vsel %vm740_vm5, %v814_v49, 0.0 }
 0x159   : > { %6329 = vmatprep.mubr.msk.f32.mxu1 %vm668_vm2, %v859_v63  ;;  %6476 = vmatprep.mubr.msk.f32.mxu0 %vm668_vm2, %v859_v63  ;;  %v806_v63 = vrot.slane %v7333_v53, 7 }
 0x15b   : > { %v810_v43 = vsel %vm808_vm3, %v805_v8, %v806_v63  ;;  %v809_v33 = vsel %vm808_vm3, %v806_v63, %v7336_v54  ;;  %v2226_v54 = vsel %vm808_vm3, %v7551_v15, %v2225_v7  ;;  %v1653_v63 = vrot.slane %v7150_v12, 1 }
 0x15c   : > { %6330 = vmatmul.mubr.msk.f32.gmra.mrb[18].mxu1 %vm668_vm2, %v821_v9  ;;  %6477 = vmatmul.mubr.msk.f32.gmra.mrb[80].mxu0 %vm668_vm2, %v821_v9  ;;  %v813_v9 = vsel %vm808_vm3, %v802_v27, %v803_v56  ;;  %v871_v27 = vsel %vm740_vm5, %v810_v43, 0.0  ;;  %v1656_v43 = vrot.slane %v7175_v22, 1 }
 0x15d   : > { %6332 = vmatprep.mubr.msk.f32.mxu1 %vm668_vm2, %v861_v13  ;;  %6479 = vmatprep.mubr.msk.f32.mxu0 %vm668_vm2, %v861_v13  ;;  %v869_v13 = vsel %vm740_vm5, %v812_v3, 0.0  ;;  %v1654_v3 = vrot.slane %v7159_v16, 1 }
 0x160   : > { %6333 = vmatmul.mubr.msk.f32.gmra.mrb[20].mxu1 %vm668_vm2, %v819_v25  ;;  %6480 = vmatmul.mubr.msk.f32.gmra.mrb[82].mxu0 %vm668_vm2, %v819_v25  ;;  %v7556_v25 = vadd.s32 8, %v7037_v38 }
 0x161   : > { %6335 = vmatprep.mubr.msk.f32.mxu1 %vm668_vm2, %v863_v26  ;;  %6482 = vmatprep.mubr.msk.f32.mxu0 %vm668_vm2, %v863_v26  ;;  %v7559_v26 = vrot.slane %v7110_v62, 1 }
 0x162   : > { %vm743_vm6 = vcmp.ne.s32.totalorder %v7556_v25, 15 }
 0x163   : > { %v1708_v49 = vsel %vm1678_vm4, %v1647_v51, %v7559_v26  ;;  %v1651_v51 = vrot.slane %v7134_v6, 1 }
 0x164   : > { %6336 = vmatmul.mubr.msk.f32.gmra.mrb[22].mxu1 %vm668_vm2, %v817_v61  ;;  %6483 = vmatmul.mubr.msk.f32.gmra.mrb[84].mxu0 %vm668_vm2, %v817_v61  ;;  %v1649_v61 = vrot.slane %v7118_v0, 1  ;;  %v1712_v56 = vsel %vm743_vm6, %v1708_v49, 0.0  ;;  %v1659_v49 = vrot.slane %v7198_v30, 1 }
 0x165   : > { %6338 = vmatprep.mubr.msk.f32.mxu1 %vm668_vm2, %v865_v37  ;;  %6485 = vmatprep.mubr.msk.f32.mxu0 %vm668_vm2, %v865_v37  ;;  %v1650_v37 = vrot.slane %v7127_v4, 1 }
 0x167   : > { %v1706_v7 = vsel %vm1678_vm4, %v1649_v61, %v1650_v37 }
 0x168   : > { %6339 = vmatmul.mubr.msk.f32.gmra.mrb[24].mxu1 %vm668_vm2, %v815_v58  ;;  %6486 = vmatmul.mubr.msk.f32.gmra.mrb[86].mxu0 %vm668_vm2, %v815_v58  ;;  %v1652_v58 = vrot.slane %v7143_v10, 1 }
 0x169   : > { %6341 = vmatprep.mubr.msk.f32.mxu1 %vm668_vm2, %v867_v60  ;;  %6488 = vmatprep.mubr.msk.f32.mxu0 %vm668_vm2, %v867_v60  ;;  %v1714_v60 = vsel %vm743_vm6, %v1706_v7, 0.0  ;;  %v1662_v7 = vrot.slane %v7223_v48, 1 }
 0x16a   : > { %v1704_v8 = vsel %vm1678_vm4, %v1651_v51, %v1652_v58 }
 0x16c   : > { %6342 = vmatmul.mubr.msk.f32.gmra.mrb[26].mxu1 %vm668_vm2, %v813_v9  ;;  %6489 = vmatmul.mubr.msk.f32.gmra.mrb[88].mxu0 %vm668_vm2, %v813_v9  ;;  %v1716_v9 = vsel %vm743_vm6, %v1704_v8, 0.0  ;;  %v1664_v8 = vrot.slane %v7239_v57, 1 }
 0x16d   : > { %6344 = vmatprep.mubr.msk.f32.mxu1 %vm668_vm2, %v869_v13  ;;  %6491 = vmatprep.mubr.msk.f32.mxu0 %vm668_vm2, %v869_v13  ;;  %v1655_v13 = vrot.slane %v7166_v18, 1 }
 0x170   : > { %6345 = vmatmul.mubr.msk.f32.gmra.mrb[28].mxu1 %vm668_vm2, %v811_v42  ;;  %6492 = vmatmul.mubr.msk.f32.gmra.mrb[90].mxu0 %vm668_vm2, %v811_v42  ;;  %v1703_v42 = vsel %vm1678_vm4, %v1652_v58, %v1653_v63 }
 0x171   : > { %6347 = vmatprep.mubr.msk.f32.mxu1 %vm668_vm2, %v871_v27  ;;  %6494 = vmatprep.mubr.msk.f32.mxu0 %vm668_vm2, %v871_v27  ;;  %v1702_v27 = vsel %vm1678_vm4, %v1653_v63, %v1654_v3 }
 0x174   : > { %6348 = vmatmul.mubr.msk.f32.gmra.mrb[30].mxu1 %vm668_vm2, %v809_v33  ;;  %6495 = vmatmul.mubr.msk.f32.gmra.mrb[92].mxu0 %vm668_vm2, %v809_v33  ;;  %v1658_v33 = vrot.slane %v7191_v28, 1 }
 0x175   : > { %6497 = vmatprep.mubr.msk.f32.mxu0 %vm668_vm2, %v2288_v44  ;;  %6402 = vmatprep.mubr.msk.f32.mxu1 %vm668_vm2, %v7091_v55  ;;  %v1707_v55 = vsel %vm1678_vm4, %v7559_v26, %v1649_v61  ;;  %v1701_v61 = vsel %vm1678_vm4, %v1654_v3, %v1655_v13 }
 0x178   : > { %6403 = vmatmul.mubr.msk.f32.vlgmr.msra.gmra.mrb[32].mxu1 %vm668_vm2, %v1712_v56  ;;  %6498 = vmatmul.mubr.msk.f32.gmra.mrb[94].mxu0 %vm668_vm2, %v2226_v54  ;;  %v1660_v54 = vrot.slane %v7207_v34, 1  ;;  %v1699_v56 = vsel %vm1678_vm4, %v1656_v43, %v1657_v31 }
 0x179   : > { %6501 = vmatpush3.msra.mxu1 %v7363_v40  ;;  %6405 = vmatprep.mubr.msk.f32.mxu1 %vm668_vm2, %v1707_v55  ;;  %v1705_v40 = vsel %vm1678_vm4, %v1650_v37, %v1651_v51  ;;  %v1700_v37 = vsel %vm1678_vm4, %v1655_v13, %v1656_v43  ;;  %v1698_v51 = vsel %vm1678_vm4, %v1657_v31, %v1658_v33 }
 0x17a   : > { %6552 = vmatprep.mubr.msk.f32.mxu0 %vm668_vm2, %v1707_v55  ;;  %6600 = vmatprep.subr.mxu1 %v7599_v36  ;;  %v1720_v44 = vsel %vm743_vm6, %v1700_v37, 0.0  ;;  %v1722_v58 = vsel %vm743_vm6, %v1698_v51, 0.0  ;;  %v1661_v55 = vrot.slane %v7214_v39, 1  ;;  %v1696_v63 = vsel %vm1678_vm4, %v1659_v49, %v1660_v54 }
 0x17b   : > { %v1724_v3 = vsel %vm743_vm6, %v1696_v63, 0.0  ;;  %v1668_v37 = vrot.slane %v7271_v11, 1  ;;  %v1670_v51 = vrot.slane %v7287_v20, 1  ;;  %v1672_v63 = vrot.slane %v7303_v29, 1 }
 0x17c   : > { %6406 = vmatmul.mubr.msk.f32.gmra.mrb[34].mxu1 %vm668_vm2, %v1714_v60  ;;  %6553 = vmatmul.mubr.msk.f32.vlgmr.msra.gmra.mrb[96].mxu0 %vm668_vm2, %v1714_v60  ;;  %v1697_v60 = vsel %vm1678_vm4, %v1658_v33, %v1659_v49  ;;  %v1694_v13 = vsel %vm1678_vm4, %v1661_v55, %v1662_v7 }
 0x17d   : > { %6408 = vmatprep.mubr.msk.f32.mxu1 %vm668_vm2, %v1705_v40  ;;  %6555 = vmatprep.mubr.msk.f32.mxu0 %vm668_vm2, %v1705_v40  ;;  %v1663_v40 = vrot.slane %v7230_v52, 1  ;;  %v1726_v43 = vsel %vm743_vm6, %v1694_v13, 0.0  ;;  %v1674_v13 = vrot.slane %v7319_v46, 1 }
 0x17e   : > { %6651 = vmatpush3.msra.mxu0 %v7392_v19  ;;  %v1718_v19 = vsel %vm743_vm6, %v1702_v27, 0.0  ;;  %v1666_v27 = vrot.slane %v7255_v2, 1 }
 0x17f   : > { %v1692_v31 = vsel %vm1678_vm4, %v1663_v40, %v1664_v8 }
 0x180   : > { %6409 = vmatmul.mubr.msk.f32.gmra.mrb[36].mxu1 %vm668_vm2, %v1716_v9  ;;  %6556 = vmatmul.mubr.msk.f32.gmra.mrb[98].mxu0 %vm668_vm2, %v1716_v9  ;;  %v1695_v9 = vsel %vm1678_vm4, %v1660_v54, %v1661_v55  ;;  %v1728_v33 = vsel %vm743_vm6, %v1692_v31, 0.0  ;;  %v1676_v31 = vrot.slane %v7333_v53, 1 }
 0x181   : > { %6411 = vmatprep.mubr.msk.f32.mxu1 %vm668_vm2, %v1703_v42  ;;  %6558 = vmatprep.mubr.msk.f32.mxu0 %vm668_vm2, %v1703_v42  ;;  %v1665_v42 = vrot.slane %v7246_v59, 1 }
 0x183   : > { %v1690_v49 = vsel %vm1678_vm4, %v1665_v42, %v1666_v27 }
 0x184   : > { %6412 = vmatmul.mubr.msk.f32.gmra.mrb[38].mxu1 %vm668_vm2, %v1718_v19  ;;  %6559 = vmatmul.mubr.msk.f32.gmra.mrb[100].mxu0 %vm668_vm2, %v1718_v19  ;;  %v1693_v19 = vsel %vm1678_vm4, %v1662_v7, %v1663_v40  ;;  %v1730_v54 = vsel %vm743_vm6, %v1690_v49, 0.0 }
 0x185   : > { %6414 = vmatprep.mubr.msk.f32.mxu1 %vm668_vm2, %v1701_v61  ;;  %6561 = vmatprep.mubr.msk.f32.mxu0 %vm668_vm2, %v1701_v61  ;;  %v1667_v61 = vrot.slane %v7262_v5, 1 }
 0x187   : > { %v1688_v55 = vsel %vm1678_vm4, %v1667_v61, %v1668_v37 }
 0x188   : > { %6415 = vmatmul.mubr.msk.f32.gmra.mrb[40].mxu1 %vm668_vm2, %v1720_v44  ;;  %6562 = vmatmul.mubr.msk.f32.gmra.mrb[102].mxu0 %vm668_vm2, %v1720_v44  ;;  %v1691_v44 = vsel %vm1678_vm4, %v1664_v8, %v1665_v42  ;;  %v1732_v7 = vsel %vm743_vm6, %v1688_v55, 0.0 }
 0x189   : > { %6417 = vmatprep.mubr.msk.f32.mxu1 %vm668_vm2, %v1699_v56  ;;  %6564 = vmatprep.mubr.msk.f32.mxu0 %vm668_vm2, %v1699_v56  ;;  %v1669_v56 = vrot.slane %v7278_v14, 1 }
 0x18b   : > { %v1686_v40 = vsel %vm1678_vm4, %v1669_v56, %v1670_v51 }
 0x18c   : > { %6418 = vmatmul.mubr.msk.f32.gmra.mrb[42].mxu1 %vm668_vm2, %v1722_v58  ;;  %6565 = vmatmul.mubr.msk.f32.gmra.mrb[104].mxu0 %vm668_vm2, %v1722_v58  ;;  %v1689_v58 = vsel %vm1678_vm4, %v1666_v27, %v1667_v61  ;;  %v1734_v8 = vsel %vm743_vm6, %v1686_v40, 0.0 }
 0x18d   : > { %6420 = vmatprep.mubr.msk.f32.mxu1 %vm668_vm2, %v1697_v60  ;;  %6567 = vmatprep.mubr.msk.f32.mxu0 %vm668_vm2, %v1697_v60  ;;  %v1671_v60 = vrot.slane %v7294_v23, 1 }
 0x18f   : > { %v1684_v42 = vsel %vm1678_vm4, %v1671_v60, %v1672_v63 }
 0x190   : > { %6421 = vmatmul.mubr.msk.f32.gmra.mrb[44].mxu1 %vm668_vm2, %v1724_v3  ;;  %6568 = vmatmul.mubr.msk.f32.gmra.mrb[106].mxu0 %vm668_vm2, %v1724_v3  ;;  %v1687_v3 = vsel %vm1678_vm4, %v1668_v37, %v1669_v56  ;;  %v1736_v27 = vsel %vm743_vm6, %v1684_v42, 0.0  ;;  %v7769_v56 = vrot.slane %v7537_v41, 1 }
 0x191   : > { %6423 = vmatprep.mubr.msk.f32.mxu1 %vm668_vm2, %v1695_v9  ;;  %6570 = vmatprep.mubr.msk.f32.mxu0 %vm668_vm2, %v1695_v9  ;;  %v1673_v9 = vrot.slane %v7310_v32, 1 }
 0x192   : > { %9236 = vst [vmem:[#allocation7_spill] sm:$0xff] %v7769_v56 }
 0x193   : > { %v1682_v61 = vsel %vm1678_vm4, %v1673_v9, %v1674_v13 }
 0x194   : > { %6424 = vmatmul.mubr.msk.f32.gmra.mrb[46].mxu1 %vm668_vm2, %v1726_v43  ;;  %6571 = vmatmul.mubr.msk.f32.gmra.mrb[108].mxu0 %vm668_vm2, %v1726_v43  ;;  %v1685_v43 = vsel %vm1678_vm4, %v1670_v51, %v1671_v60  ;;  %v1738_v37 = vsel %vm743_vm6, %v1682_v61, 0.0  ;;  %v3159_v60 = vrot.slane %v7355_v1, 1 }
 0x195   : > { %6426 = vmatprep.mubr.msk.f32.mxu1 %vm668_vm2, %v1693_v19  ;;  %6573 = vmatprep.mubr.msk.f32.mxu0 %vm668_vm2, %v1693_v19  ;;  %v1675_v19 = vrot.slane %v7326_v47, 1 }
 0x196   : > { %v3160_v35 = vsel %vm1678_vm4, %v7769_v56, %v3159_v60 }
 0x197   : > { %v1681_v49 = vsel %vm1678_vm4, %v1674_v13, %v1675_v19 }
 0x198   : > { %6427 = vmatmul.mubr.msk.f32.gmra.mrb[48].mxu1 %vm668_vm2, %v1728_v33  ;;  %6574 = vmatmul.mubr.msk.f32.gmra.mrb[110].mxu0 %vm668_vm2, %v1728_v33  ;;  %v1683_v33 = vsel %vm1678_vm4, %v1672_v63, %v1673_v9 }
 0x199   : > { %6429 = vmatprep.mubr.msk.f32.mxu1 %vm668_vm2, %v1691_v44  ;;  %6576 = vmatprep.mubr.msk.f32.mxu0 %vm668_vm2, %v1691_v44  ;;  %v1677_v44 = vrot.slane %v7331_v45, 1 }
 0x19b   : > { %v1710_v55 = vsel %vm1678_vm4, %v1677_v44, %v1646_v50  ;;  %v3191_v50 = vsel %vm1678_vm4, %v3159_v60, %v7559_v26  ;;  %v7822_v26 = vld [vmem:[#allocation2 + $0x28] sm:$0xff]  ;;  %v8014_v60 = vld [vmem:[#allocation2 + $0xf8] sm:$0xff] }
 0x19c   : > { %6430 = vmatmul.mubr.msk.f32.gmra.mrb[50].mxu1 %vm668_vm2, %v1730_v54  ;;  %6577 = vmatmul.mubr.msk.f32.gmra.mrb[112].mxu0 %vm668_vm2, %v1730_v54  ;;  %v1680_v54 = vsel %vm1678_vm4, %v1675_v19, %v1676_v31  ;;  %v1742_v63 = vsel %vm743_vm6, %v1710_v55, 0.0  ;;  %v3223_v40 = vsel %vm743_vm6, %v3191_v50, 0.0 }
 0x19d   : > { %6432 = vmatprep.mubr.msk.f32.mxu1 %vm668_vm2, %v1689_v58  ;;  %6579 = vmatprep.mubr.msk.f32.mxu0 %vm668_vm2, %v1689_v58  ;;  %v1740_v51 = vsel %vm743_vm6, %v1680_v54, 0.0  ;;  %v1679_v58 = vsel %vm1678_vm4, %v1676_v31, %v1677_v44 }
 0x1a0   : > { %6433 = vmatmul.mubr.msk.f32.gmra.mrb[52].mxu1 %vm668_vm2, %v1732_v7  ;;  %6580 = vmatmul.mubr.msk.f32.gmra.mrb[114].mxu0 %vm668_vm2, %v1732_v7  ;;  %v3161_v7 = vsel %vm1678_vm4, %v1677_v44, %v7769_v56 }
 0x1a1   : > { %6435 = vmatprep.mubr.msk.f32.mxu1 %vm668_vm2, %v1687_v3  ;;  %6582 = vmatprep.mubr.msk.f32.mxu0 %vm668_vm2, %v1687_v3  ;;  %v3221_v3 = vsel %vm743_vm6, %v3161_v7, 0.0 }
 0x1a4   : > { %6436 = vmatmul.mubr.msk.f32.gmra.mrb[54].mxu1 %vm668_vm2, %v1734_v8  ;;  %6583 = vmatmul.mubr.msk.f32.gmra.mrb[116].mxu0 %vm668_vm2, %v1734_v8  ;;  %v7809_v8 = vld [vmem:[%s9221_s3 + $0x40] sm:$0xff] }
 0x1a5   : > { %6438 = vmatprep.mubr.msk.f32.mxu1 %vm668_vm2, %v1685_v43  ;;  %6585 = vmatprep.mubr.msk.f32.mxu0 %vm668_vm2, %v1685_v43 }
 0x1a8   : > { %6439 = vmatmul.mubr.msk.f32.gmra.mrb[56].mxu1 %vm668_vm2, %v1736_v27  ;;  %6586 = vmatmul.mubr.msk.f32.gmra.mrb[118].mxu0 %vm668_vm2, %v1736_v27 }
 0x1a9   : > { %6441 = vmatprep.mubr.msk.f32.mxu1 %vm668_vm2, %v1683_v33  ;;  %6588 = vmatprep.mubr.msk.f32.mxu0 %vm668_vm2, %v1683_v33 }
 0x1ac   : > { %6442 = vmatmul.mubr.msk.f32.gmra.mrb[58].mxu1 %vm668_vm2, %v1738_v37  ;;  %6589 = vmatmul.mubr.msk.f32.gmra.mrb[120].mxu0 %vm668_vm2, %v1738_v37 }
 0x1ad   : > { %6444 = vmatprep.mubr.msk.f32.mxu1 %vm668_vm2, %v1681_v49  ;;  %6591 = vmatprep.mubr.msk.f32.mxu0 %vm668_vm2, %v1681_v49 }
 0x1b0   : > { %6445 = vmatmul.mubr.msk.f32.gmra.mrb[60].mxu1 %vm668_vm2, %v1740_v51  ;;  %6592 = vmatmul.mubr.msk.f32.gmra.mrb[122].mxu0 %vm668_vm2, %v1740_v51  ;;  %v7996_v51 = vld [vmem:[#allocation2 + $0xe8] sm:$0xff] }
 0x1b1   : > { %6447 = vmatprep.mubr.msk.f32.mxu1 %vm668_vm2, %v1679_v58  ;;  %6594 = vmatprep.mubr.msk.f32.mxu0 %vm668_vm2, %v1679_v58 }
 0x1b4   : > { %6448 = vmatmul.mubr.msk.f32.gmra.mrb[62].mxu1 %vm668_vm2, %v1742_v63  ;;  %6595 = vmatmul.mubr.msk.f32.gmra.mrb[124].mxu0 %vm668_vm2, %v3221_v3 }
 0x1b5   : > { %6502 = vmatprep.mubr.msk.f32.mxu1 %vm668_vm2, %v7110_v62  ;;  %6597 = vmatprep.mubr.msk.f32.mxu0 %vm668_vm2, %v3160_v35  ;;  %v7817_v62 = vld [vmem:[#allocation2 + $0x20] sm:$0xff]  ;;  %v8034_v35 = vld [vmem:[#allocation2 + $0x108] sm:$0xff] }
 0x1b6   : > { %v3675_v55 = vrot.slane %v7817_v62, 7 }
 0x1b8   : > { %6503 = vmatmul.mubr.msk.f32.vlgmr.msra.gmra.mrb[64].mxu1 %vm668_vm2, %v7118_v0  ;;  %6598 = vmatmul.mubr.msk.f32.gmra.mrb[126].mxu0 %vm668_vm2, %v3223_v40  ;;  %v7828_v0 = vld [vmem:[#allocation2 + $0x30] sm:$0xff] }
 0x1b9   : > { %6601 = vmatpush3.msra.mxu1 %v7599_v36  ;;  %6505 = vmatprep.mubr.msk.f32.mxu1 %vm668_vm2, %v7127_v4  ;;  %v7834_v4 = vld [vmem:[#allocation2 + $0x38] sm:$0xff]  ;;  %v3677_v63 = vrot.slane %v7828_v0, 7  ;;  %v8044_v40 = vld [vmem:[#allocation2 + $0x110] sm:$0xff] }
 0x1ba   : > { %6652 = vmatprep.mubr.msk.f32.mxu0 %vm668_vm2, %v7817_v62  ;;  %6700 = vmatprep.subr.mxu1 %v7809_v8 }
 0x1bc   : > { %6506 = vmatmul.mubr.msk.f32.gmra.mrb[66].mxu1 %vm668_vm2, %v7134_v6  ;;  %6653 = vmatmul.mubr.msk.f32.vlgmr.msra.gmra.mrb[128].mxu0 %vm668_vm2, %v7822_v26  ;;  %v7840_v6 = vld [vmem:[#allocation2 + $0x40] sm:$0xff] }
 0x1bd   : > { %6508 = vmatprep.mubr.msk.f32.mxu1 %vm668_vm2, %v7143_v10  ;;  %6655 = vmatprep.mubr.msk.f32.mxu0 %vm668_vm2, %v7828_v0  ;;  %v7846_v10 = vld [vmem:[#allocation2 + $0x48] sm:$0xff]  ;;  %v3679_v56 = vrot.slane %v7840_v6, 7 }
 0x1c0   : > { %6509 = vmatmul.mubr.msk.f32.gmra.mrb[68].mxu1 %vm668_vm2, %v7150_v12  ;;  %6656 = vmatmul.mubr.msk.f32.gmra.mrb[130].mxu0 %vm668_vm2, %v7834_v4  ;;  %v7852_v12 = vld [vmem:[#allocation2 + $0x50] sm:$0xff] }
 0x1c1   : > { %6511 = vmatprep.mubr.msk.f32.mxu1 %vm668_vm2, %v7159_v16  ;;  %6658 = vmatprep.mubr.msk.f32.mxu0 %vm668_vm2, %v7840_v6  ;;  %9237 = vst [vmem:[#allocation8_spill] sm:$0xff] %v7852_v12  ;;  %v7858_v16 = vld [vmem:[#allocation2 + $0x58] sm:$0xff] }
 0x1c4   : > { %6512 = vmatmul.mubr.msk.f32.gmra.mrb[70].mxu1 %vm668_vm2, %v7166_v18  ;;  %6659 = vmatmul.mubr.msk.f32.gmra.mrb[132].mxu0 %vm668_vm2, %v7846_v10  ;;  %v7864_v18 = vld [vmem:[#allocation2 + $0x60] sm:$0xff] }
 0x1c5   : > { %6514 = vmatprep.mubr.msk.f32.mxu1 %vm668_vm2, %v7175_v22  ;;  %6661 = vmatprep.mubr.msk.f32.mxu0 %vm668_vm2, %v7852_v12  ;;  %v7870_v22 = vld [vmem:[#allocation2 + $0x68] sm:$0xff] }
 0x1c8   : > { %6515 = vmatmul.mubr.msk.f32.gmra.mrb[72].mxu1 %vm668_vm2, %v7182_v24  ;;  %6662 = vmatmul.mubr.msk.f32.gmra.mrb[134].mxu0 %vm668_vm2, %v7858_v16  ;;  %v7876_v24 = vld [vmem:[#allocation2 + $0x70] sm:$0xff] }
 0x1c9   : > { %6517 = vmatprep.mubr.msk.f32.mxu1 %vm668_vm2, %v7191_v28  ;;  %6664 = vmatprep.mubr.msk.f32.mxu0 %vm668_vm2, %v7864_v18  ;;  %v7882_v28 = vld [vmem:[#allocation2 + $0x78] sm:$0xff] }
 0x1cc   : > { %6518 = vmatmul.mubr.msk.f32.gmra.mrb[74].mxu1 %vm668_vm2, %v7198_v30  ;;  %6665 = vmatmul.mubr.msk.f32.gmra.mrb[136].mxu0 %vm668_vm2, %v7870_v22  ;;  %v7890_v30 = vld [vmem:[#allocation2 + $0x80] sm:$0xff] }
 0x1cd   : > { %6520 = vmatprep.mubr.msk.f32.mxu1 %vm668_vm2, %v7207_v34  ;;  %6667 = vmatprep.mubr.msk.f32.mxu0 %vm668_vm2, %v7876_v24  ;;  %9238 = vst [vmem:[#allocation9_spill] sm:$0xff] %v7890_v30  ;;  %v7898_v34 = vld [vmem:[#allocation2 + $0x88] sm:$0xff] }
 0x1d0   : > { %v7884_v36 = vpop.f32.mrb[34].mxu0  ;;  %6521 = vmatmul.mubr.msk.f32.gmra.mrb[76].mxu1 %vm668_vm2, %v7214_v39  ;;  %6668 = vmatmul.mubr.msk.f32.gmra.mrb[138].mxu0 %vm668_vm2, %v7882_v28  ;;  %v7906_v39 = vld [vmem:[#allocation2 + $0x90] sm:$0xff] }
 0x1d1   : > { %v7892_v9 = vpop.f32.mrb[35].mxu0  ;;  %6523 = vmatprep.mubr.msk.f32.mxu1 %vm668_vm2, %v7223_v48  ;;  %6670 = vmatprep.mubr.msk.f32.mxu0 %vm668_vm2, %v7890_v30  ;;  %v7914_v48 = vld [vmem:[#allocation2 + $0x98] sm:$0xff] }
 0x1d4   : > { %v7900_v13 = vpop.f32.mrb[36].mxu0  ;;  %6524 = vmatmul.mubr.msk.f32.gmra.mrb[78].mxu1 %vm668_vm2, %v7230_v52  ;;  %6671 = vmatmul.mubr.msk.f32.gmra.mrb[140].mxu0 %vm668_vm2, %v7898_v34  ;;  %v7922_v52 = vld [vmem:[#allocation2 + $0xa0] sm:$0xff] }
 0x1d5   : > { %v7908_v43 = vpop.f32.mrb[37].mxu0  ;;  %6526 = vmatprep.mubr.msk.f32.mxu1 %vm668_vm2, %v7239_v57  ;;  %6673 = vmatprep.mubr.msk.f32.mxu0 %vm668_vm2, %v7906_v39  ;;  %v7930_v57 = vld [vmem:[#allocation2 + $0xa8] sm:$0xff] }
 0x1d6   : > { %9239 = vst [vmem:[#allocation10_spill] sm:$0xff] %v7930_v57 }
 0x1d8   : > { %v7916_v42 = vpop.f32.mrb[38].mxu0  ;;  %6527 = vmatmul.mubr.msk.f32.gmra.mrb[80].mxu1 %vm668_vm2, %v7246_v59  ;;  %6674 = vmatmul.mubr.msk.f32.gmra.mrb[142].mxu0 %vm668_vm2, %v7914_v48  ;;  %v7938_v59 = vld [vmem:[#allocation2 + $0xb0] sm:$0xff] }
 0x1d9   : > { %v7924_v27 = vpop.f32.mrb[39].mxu0  ;;  %6529 = vmatprep.mubr.msk.f32.mxu1 %vm668_vm2, %v7255_v2  ;;  %6676 = vmatprep.mubr.msk.f32.mxu0 %vm668_vm2, %v7922_v52  ;;  %9240 = vst [vmem:[#allocation11_spill] sm:$0xff] %v7938_v59  ;;  %v7946_v2 = vld [vmem:[#allocation2 + $0xb8] sm:$0xff] }
 0x1dc   : > { %v7932_v19 = vpop.f32.mrb[40].mxu0  ;;  %6530 = vmatmul.mubr.msk.f32.gmra.mrb[82].mxu1 %vm668_vm2, %v7262_v5  ;;  %6677 = vmatmul.mubr.msk.f32.gmra.mrb[144].mxu0 %vm668_vm2, %v7930_v57  ;;  %v7954_v5 = vld [vmem:[#allocation2 + $0xc0] sm:$0xff] }
 0x1dd   : > { %v7940_v31 = vpop.f32.mrb[41].mxu0  ;;  %6532 = vmatprep.mubr.msk.f32.mxu1 %vm668_vm2, %v7271_v11  ;;  %6679 = vmatprep.mubr.msk.f32.mxu0 %vm668_vm2, %v7938_v59  ;;  %v7962_v11 = vld [vmem:[#allocation2 + $0xc8] sm:$0xff] }
 0x1e0   : > { %v7948_v33 = vpop.f32.mrb[42].mxu0  ;;  %6533 = vmatmul.mubr.msk.f32.gmra.mrb[84].mxu1 %vm668_vm2, %v7278_v14  ;;  %6680 = vmatmul.mubr.msk.f32.gmra.mrb[146].mxu0 %vm668_vm2, %v7946_v2  ;;  %v7970_v14 = vld [vmem:[#allocation2 + $0xd0] sm:$0xff] }
 0x1e1   : > { %v7956_v61 = vpop.f32.mrb[43].mxu0  ;;  %6535 = vmatprep.mubr.msk.f32.mxu1 %vm668_vm2, %v7287_v20  ;;  %6682 = vmatprep.mubr.msk.f32.mxu0 %vm668_vm2, %v7954_v5  ;;  %v7978_v20 = vld [vmem:[#allocation2 + $0xd8] sm:$0xff] }
 0x1e4   : > { %v7964_v37 = vpop.f32.mrb[44].mxu0  ;;  %6536 = vmatmul.mubr.msk.f32.gmra.mrb[86].mxu1 %vm668_vm2, %v7294_v23  ;;  %6683 = vmatmul.mubr.msk.f32.gmra.mrb[148].mxu0 %vm668_vm2, %v7962_v11  ;;  %v7986_v23 = vld [vmem:[#allocation2 + $0xe0] sm:$0xff] }
 0x1e5   : > { %v7972_v44 = vpop.f32.mrb[45].mxu0  ;;  %6538 = vmatprep.mubr.msk.f32.mxu1 %vm668_vm2, %v7303_v29  ;;  %6685 = vmatprep.mubr.msk.f32.mxu0 %vm668_vm2, %v7970_v14  ;;  %v7994_v29 = vld [vmem:[#allocation2 + $0x118] sm:$0xff] }
 0x1e6   : > { %v9228_v7 = vrot.slane %v7994_v29, 7 }
 0x1e8   : > { %v7980_v49 = vpop.f32.mrb[46].mxu0  ;;  %6539 = vmatmul.mubr.msk.f32.gmra.mrb[88].mxu1 %vm668_vm2, %v7310_v32  ;;  %6686 = vmatmul.mubr.msk.f32.gmra.mrb[150].mxu0 %vm668_vm2, %v7978_v20  ;;  %v8004_v32 = vld [vmem:[#allocation2 + $0xf0] sm:$0xff] }
 0x1e9   : > { %v7988_v54 = vpop.f32.mrb[47].mxu0  ;;  %6541 = vmatprep.mubr.msk.f32.mxu1 %vm668_vm2, %v7319_v46  ;;  %6688 = vmatprep.mubr.msk.f32.mxu0 %vm668_vm2, %v7986_v23 }
 0x1ec   : > { %v7998_v58 = vpop.f32.mrb[48].mxu0  ;;  %6542 = vmatmul.mubr.msk.f32.gmra.mrb[90].mxu1 %vm668_vm2, %v7326_v47  ;;  %6689 = vmatmul.mubr.msk.f32.gmra.mrb[152].mxu0 %vm668_vm2, %v7996_v51 }
 0x1ed   : > { %v8007_v46 = vpop.f32.mrb[49].mxu0  ;;  %6544 = vmatprep.mubr.msk.f32.mxu1 %vm668_vm2, %v7333_v53  ;;  %6691 = vmatprep.mubr.msk.f32.mxu0 %vm668_vm2, %v8004_v32  ;;  %v3738_v53 = vsel %vm808_vm3, %v9228_v7, %v3675_v55 }
 0x1f0   : > { %v8016_v47 = vpop.f32.mrb[50].mxu0  ;;  %6545 = vmatmul.mubr.msk.f32.gmra.mrb[92].mxu1 %vm668_vm2, %v7331_v45  ;;  %6692 = vmatmul.mubr.msk.f32.gmra.mrb[154].mxu0 %vm668_vm2, %v8014_v60  ;;  %v3676_v45 = vrot.slane %v7822_v26, 7 }
 0x1f1   : > { %9241 = vst [vmem:[#allocation12_spill] sm:$0xff] %v8016_v47  ;;  %v8023_v3 = vpop.f32.mrb[51].mxu0  ;;  %6547 = vmatprep.mubr.msk.f32.mxu1 %vm668_vm2, %v7537_v41  ;;  %6694 = vmatprep.mubr.msk.f32.mxu0 %vm668_vm2, %v7537_v41  ;;  %v3739_v41 = vsel %vm740_vm5, %v3738_v53, 0.0 }
 0x1f2   : > { %9242 = vst [vmem:[#allocation13_spill] sm:$0xff] %v8023_v3  ;;  %v3737_v3 = vsel %vm808_vm3, %v3675_v55, %v3676_v45 }
 0x1f4   : > { %v8036_v50 = vpop.f32.mrb[52].mxu0  ;;  %6548 = vmatmul.mubr.msk.f32.gmra.mrb[94].mxu1 %vm668_vm2, %v7355_v1  ;;  %6695 = vmatmul.mubr.msk.f32.gmra.mrb[156].mxu0 %vm668_vm2, %v8034_v35  ;;  %v3678_v1 = vrot.slane %v7834_v4, 7 }
 0x1f5   : > { %9243 = vst [vmem:[#allocation14_spill] sm:$0xff] %v8036_v50  ;;  %v8047_v7 = vpop.f32.mrb[53].mxu0  ;;  %6602 = vmatprep.mubr.msk.f32.mxu1 %vm668_vm2, %v3739_v41  ;;  %v3736_v50 = vsel %vm808_vm3, %v3676_v45, %v3677_v63  ;;  %6697 = vmatprep.mubr.msk.f32.mxu0 %vm668_vm2, %v8044_v40  ;;  %v3681_v41 = vrot.slane %v7852_v12, 7  ;;  %v3680_v45 = vrot.slane %v7846_v10, 7  ;;  %v3682_v12 = vrot.slane %v7858_v16, 7 }
 0x1f6   : > { %9244 = vst [vmem:[#allocation15_spill] sm:$0xff] %v8047_v7  ;;  %v3741_v7 = vsel %vm740_vm5, %v3736_v50, 0.0  ;;  %v3734_v55 = vsel %vm808_vm3, %v3678_v1, %v3679_v56 }
 0x1f8   : > { %v8057_v53 = vpop.f32.mrb[54].mxu0  ;;  %6603 = vmatmul.mubr.msk.f32.vlgmr.msra.gmra.mrb[96].mxu1 %vm668_vm2, %v3737_v3  ;;  %6698 = vmatmul.mubr.msk.f32.gmra.mrb[158].mxu0 %vm668_vm2, %v7994_v29  ;;  %v3735_v3 = vsel %vm808_vm3, %v3677_v63, %v3678_v1  ;;  %v3733_v63 = vsel %vm808_vm3, %v3679_v56, %v3680_v45  ;;  %v3731_v56 = vsel %vm808_vm3, %v3681_v41, %v3682_v12 }
 0x1f9   : > { %9245 = vst [vmem:[#allocation16_spill] sm:$0xff] %v8057_v53  ;;  %6701 = vmatpush3.msra.mxu1 %v7809_v8  ;;  %v8066_v47 = vpop.f32.mrb[55].mxu0  ;;  %6605 = vmatprep.mubr.msk.f32.mxu1 %vm668_vm2, %v3741_v7  ;;  %v3743_v53 = vsel %vm740_vm5, %v3734_v55, 0.0  ;;  %v3683_v8 = vrot.slane %v7864_v18, 7  ;;  %v3732_v7 = vsel %vm808_vm3, %v3680_v45, %v3681_v41 }
 0x1fa   : > { %9246 = vst [vmem:[#allocation17_spill] sm:$0xff] %v8066_v47  ;;  %v3745_v55 = vsel %vm740_vm5, %v3732_v7, 0.0 }
 0x1fc   : > { %v8074_v50 = vpop.f32.mrb[56].mxu0  ;;  %6606 = vmatmul.mubr.msk.f32.gmra.mrb[98].mxu1 %vm668_vm2, %v3735_v3  ;;  %v3685_v3 = vrot.slane %v7876_v24, 7 }
 0x1fd   : > { %9247 = vst [vmem:[#allocation18_spill] sm:$0xff] %v8074_v50  ;;  %v8080_v47 = vpop.f32.mrb[57].mxu0  ;;  %6608 = vmatprep.mubr.msk.f32.mxu1 %vm668_vm2, %v3743_v53  ;;  %v3730_v53 = vsel %vm808_vm3, %v3682_v12, %v3683_v8  ;;  %v3684_v50 = vrot.slane %v7870_v22, 7 }
 0x1fe   : > { %9248 = vst [vmem:[#allocation19_spill] sm:$0xff] %v8080_v47  ;;  %v3747_v7 = vsel %vm740_vm5, %v3730_v53, 0.0 }
 0x1ff   : > { %v3729_v12 = vsel %vm808_vm3, %v3683_v8, %v3684_v50 }
 0x200   : > { %v8088_v1 = vpop.f32.mrb[58].mxu0  ;;  %6609 = vmatmul.mubr.msk.f32.gmra.mrb[100].mxu1 %vm668_vm2, %v3733_v63  ;;  %v3687_v63 = vrot.slane %v7890_v30, 7 }
 0x201   : > { %9249 = vst [vmem:[#allocation20_spill] sm:$0xff] %v8088_v1  ;;  %v8094_v47 = vpop.f32.mrb[59].mxu0  ;;  %6611 = vmatprep.mubr.msk.f32.mxu1 %vm668_vm2, %v3745_v55  ;;  %v3728_v55 = vsel %vm808_vm3, %v3684_v50, %v3685_v3  ;;  %v3686_v1 = vrot.slane %v7882_v28, 7 }
 0x202   : > { %9250 = vst [vmem:[#allocation21_spill] sm:$0xff] %v8094_v47  ;;  %v3749_v53 = vsel %vm740_vm5, %v3728_v55, 0.0 }
 0x203   : > { %v3727_v50 = vsel %vm808_vm3, %v3685_v3, %v3686_v1 }
 0x204   : > { %v8102_v45 = vpop.f32.mrb[60].mxu0  ;;  %6612 = vmatmul.mubr.msk.f32.gmra.mrb[102].mxu1 %vm668_vm2, %v3731_v56  ;;  %v3689_v56 = vrot.slane %v7906_v39, 7 }
 0x205   : > { %9251 = vst [vmem:[#allocation22_spill] sm:$0xff] %v8102_v45  ;;  %v8108_v47 = vpop.f32.mrb[61].mxu0  ;;  %6614 = vmatprep.mubr.msk.f32.mxu1 %vm668_vm2, %v3747_v7  ;;  %v3726_v7 = vsel %vm808_vm3, %v3686_v1, %v3687_v63  ;;  %v3688_v45 = vrot.slane %v7898_v34, 7 }
 0x206   : > { %9252 = vst [vmem:[#allocation23_spill] sm:$0xff] %v8108_v47  ;;  %v3751_v55 = vsel %vm740_vm5, %v3726_v7, 0.0 }
 0x208   : > { %v8116_v41 = vpop.f32.mrb[62].mxu0  ;;  %6615 = vmatmul.mubr.msk.f32.gmra.mrb[104].mxu1 %vm668_vm2, %v3729_v12  ;;  %v3691_v12 = vrot.slane %v7922_v52, 7 }
 0x209   : > { %9253 = vst [vmem:[#allocation24_spill] sm:$0xff] %v8116_v41  ;;  %v8122_v47 = vpop.f32.mrb[63].mxu0  ;;  %6617 = vmatprep.mubr.msk.f32.mxu1 %vm668_vm2, %v3749_v53  ;;  %v3724_v53 = vsel %vm808_vm3, %v3688_v45, %v3689_v56 }
 0x20a   : > { %9254 = vst [vmem:[#allocation25_spill] sm:$0xff] %v8122_v47  ;;  %v3690_v47 = vrot.slane %v7914_v48, 7 }
 0x20b   : > { %v6304_v30 = vpop.f32.mrb[0].mxu1 }
 0x20c   : > { %1196 = vst.msk [vmem:[#allocation3 + $0x8] sm:$0xff] %vm668_vm2, %v6304_v30  ;;  %v1036_v8 = vpop.f32.mrb[1].mxu1  ;;  %6618 = vmatmul.mubr.msk.f32.gmra.mrb[106].mxu1 %vm668_vm2, %v3727_v50  ;;  %v3725_v30 = vsel %vm808_vm3, %v3687_v63, %v3688_v45  ;;  %v3692_v45 = vrot.slane %v7930_v57, 7  ;;  %v3695_v57 = vrot.slane %v7954_v5, 7 }
 0x20d   : > { %1195 = vst.msk [vmem:[#allocation3] sm:$0xff] %vm668_vm2, %v1036_v8  ;;  %6620 = vmatprep.mubr.msk.f32.mxu1 %vm668_vm2, %v3751_v55  ;;  %v3753_v8 = vsel %vm740_vm5, %v3724_v53, 0.0  ;;  %v3693_v55 = vrot.slane %v7938_v59, 7 }
 0x20f   : > { %v6307_v1 = vpop.f32.mrb[2].mxu1  ;;  %v8140_v3 = vpop.f32.mrb[64].mxu0 }
 0x210   : > { %9255 = vst [vmem:[#allocation26_spill] sm:$0xff] %v8140_v3  ;;  %1198 = vst.msk [vmem:[#allocation3 + $0x18] sm:$0xff] %vm668_vm2, %v6307_v1  ;;  %v1046_v7 = vpop.f32.mrb[3].mxu1  ;;  %v8145_v50 = vpop.f32.mrb[65].mxu0  ;;  %6621 = vmatmul.mubr.msk.f32.gmra.mrb[108].mxu1 %vm668_vm2, %v3725_v30  ;;  %v3722_v3 = vsel %vm808_vm3, %v3690_v47, %v3691_v12  ;;  %v3723_v30 = vsel %vm808_vm3, %v3689_v56, %v3690_v47  ;;  %v3694_v47 = vrot.slane %v7946_v2, 7 }
 0x211   : > { %9256 = vst [vmem:[#allocation27_spill] sm:$0xff] %v8145_v50  ;;  %1197 = vst.msk [vmem:[#allocation3 + $0x10] sm:$0xff] %vm668_vm2, %v1046_v7  ;;  %6623 = vmatprep.mubr.msk.f32.mxu1 %vm668_vm2, %v3753_v8  ;;  %v3755_v8 = vsel %vm740_vm5, %v3722_v3, 0.0 }
 0x213   : > { %v1551_v63 = vld [vmem:[#allocation3 + $0x8] sm:$0xff]  ;;  %v6310_v1 = vpop.f32.mrb[4].mxu1  ;;  %v8156_v41 = vpop.f32.mrb[66].mxu0 }
 0x214   : > { %9257 = vst [vmem:[#allocation28_spill] sm:$0xff] %v8156_v41  ;;  %v1583_v53 = vadd.f32 %v7449_v17, %v1551_v63  ;;  %v1550_v50 = vld [vmem:[#allocation3] sm:$0xff]  ;;  %1200 = vst.msk [vmem:[#allocation3 + $0x28] sm:$0xff] %vm668_vm2, %v6310_v1  ;;  %v1056_v7 = vpop.f32.mrb[5].mxu1  ;;  %v8162_v59 = vpop.f32.mrb[67].mxu0  ;;  %6624 = vmatmul.mubr.msk.f32.gmra.mrb[110].mxu1 %vm668_vm2, %v3723_v30  ;;  %v3720_v17 = vsel %vm808_vm3, %v3692_v45, %v3693_v55 }
 0x215   : > { %v1582_v41 = vadd.f32 %v1550_v50, %v7451_v21  ;;  %1199 = vst.msk [vmem:[#allocation3 + $0x20] sm:$0xff] %vm668_vm2, %v1056_v7  ;;  %6626 = vmatprep.mubr.msk.f32.mxu1 %vm668_vm2, %v3755_v8  ;;  %v3721_v21 = vsel %vm808_vm3, %v3691_v12, %v3692_v45  ;;  %v3696_v12 = vrot.slane %v7962_v11, 7 }
 0x216   : > { %1615 = vst.msk [vmem:[#allocation3 + $0x8] sm:$0xff] %vm668_vm2, %v1583_v53  ;;  %v3697_v53 = vrot.slane %v7970_v14, 7 }
 0x217   : > { %1614 = vst.msk [vmem:[#allocation3] sm:$0xff] %vm668_vm2, %v1582_v41  ;;  %v1553_v56 = vld [vmem:[#allocation3 + $0x18] sm:$0xff]  ;;  %v6313_v63 = vpop.f32.mrb[6].mxu1  ;;  %v8176_v3 = vpop.f32.mrb[68].mxu0  ;;  %v3757_v41 = vsel %vm740_vm5, %v3720_v17, 0.0 }
 0x218   : > { %v1585_v50 = vadd.f32 %v7884_v36, %v1553_v56  ;;  %v1552_v1 = vld [vmem:[#allocation3 + $0x10] sm:$0xff]  ;;  %1202 = vst.msk [vmem:[#allocation3 + $0x38] sm:$0xff] %vm668_vm2, %v6313_v63  ;;  %v1066_v30 = vpop.f32.mrb[7].mxu1  ;;  %v8182_v7 = vpop.f32.mrb[69].mxu0  ;;  %6627 = vmatmul.mubr.msk.f32.gmra.mrb[112].mxu1 %vm668_vm2, %v3721_v21  ;;  %v3718_v36 = vsel %vm808_vm3, %v3694_v47, %v3695_v57 }
 0x219   : > { %v1584_v8 = vadd.f32 %v1552_v1, %v7892_v9  ;;  %1201 = vst.msk [vmem:[#allocation3 + $0x30] sm:$0xff] %vm668_vm2, %v1066_v30  ;;  %6629 = vmatprep.mubr.msk.f32.mxu1 %vm668_vm2, %v3757_v41  ;;  %v3719_v9 = vsel %vm808_vm3, %v3693_v55, %v3694_v47  ;;  %v3699_v41 = vrot.slane %v7986_v23, 7  ;;  %v3698_v55 = vrot.slane %v7978_v20, 7 }
 0x21a   : > { %1617 = vst.msk [vmem:[#allocation3 + $0x18] sm:$0xff] %vm668_vm2, %v1585_v50  ;;  %v3759_v50 = vsel %vm740_vm5, %v3718_v36, 0.0 }
 0x21b   : > { %1616 = vst.msk [vmem:[#allocation3 + $0x10] sm:$0xff] %vm668_vm2, %v1584_v8  ;;  %v1555_v45 = vld [vmem:[#allocation3 + $0x28] sm:$0xff]  ;;  %v6316_v56 = vpop.f32.mrb[8].mxu1  ;;  %v8196_v17 = vpop.f32.mrb[70].mxu0 }
 0x21c   : > { %v1587_v63 = vadd.f32 %v7900_v13, %v1555_v45  ;;  %v1554_v21 = vld [vmem:[#allocation3 + $0x20] sm:$0xff]  ;;  %1204 = vst.msk [vmem:[#allocation3 + $0x48] sm:$0xff] %vm668_vm2, %v6316_v56  ;;  %v1076_v1 = vpop.f32.mrb[9].mxu1  ;;  %v8202_v30 = vpop.f32.mrb[71].mxu0  ;;  %6630 = vmatmul.mubr.msk.f32.gmra.mrb[114].mxu1 %vm668_vm2, %v3719_v9  ;;  %v3716_v13 = vsel %vm808_vm3, %v3696_v12, %v3697_v53 }
 0x21d   : > { %v1586_v8 = vadd.f32 %v1554_v21, %v7908_v43  ;;  %1203 = vst.msk [vmem:[#allocation3 + $0x40] sm:$0xff] %vm668_vm2, %v1076_v1  ;;  %6632 = vmatprep.mubr.msk.f32.mxu1 %vm668_vm2, %v3759_v50  ;;  %v3717_v43 = vsel %vm808_vm3, %v3695_v57, %v3696_v12  ;;  %v3701_v50 = vrot.slane %v8004_v32, 7  ;;  %v3700_v57 = vrot.slane %v7996_v51, 7 }
 0x21e   : > { %1619 = vst.msk [vmem:[#allocation3 + $0x28] sm:$0xff] %vm668_vm2, %v1587_v63  ;;  %v3761_v63 = vsel %vm740_vm5, %v3716_v13, 0.0 }
 0x21f   : > { %1618 = vst.msk [vmem:[#allocation3 + $0x20] sm:$0xff] %vm668_vm2, %v1586_v8  ;;  %v1557_v47 = vld [vmem:[#allocation3 + $0x38] sm:$0xff]  ;;  %v6319_v45 = vpop.f32.mrb[10].mxu1  ;;  %v8216_v36 = vpop.f32.mrb[72].mxu0 }
 0x220   : > { %v1589_v56 = vadd.f32 %v7916_v42, %v1557_v47  ;;  %v1556_v9 = vld [vmem:[#allocation3 + $0x30] sm:$0xff]  ;;  %1206 = vst.msk [vmem:[#allocation3 + $0x58] sm:$0xff] %vm668_vm2, %v6319_v45  ;;  %v1086_v21 = vpop.f32.mrb[11].mxu1  ;;  %v8222_v1 = vpop.f32.mrb[73].mxu0  ;;  %6633 = vmatmul.mubr.msk.f32.gmra.mrb[116].mxu1 %vm668_vm2, %v3717_v43  ;;  %v3714_v42 = vsel %vm808_vm3, %v3698_v55, %v3699_v41 }
 0x221   : > { %v1588_v8 = vadd.f32 %v1556_v9, %v7924_v27  ;;  %1205 = vst.msk [vmem:[#allocation3 + $0x50] sm:$0xff] %vm668_vm2, %v1086_v21  ;;  %6635 = vmatprep.mubr.msk.f32.mxu1 %vm668_vm2, %v3761_v63  ;;  %v3715_v27 = vsel %vm808_vm3, %v3697_v53, %v3698_v55  ;;  %v3702_v53 = vrot.slane %v8014_v60, 7 }
 0x222   : > { %1621 = vst.msk [vmem:[#allocation3 + $0x38] sm:$0xff] %vm668_vm2, %v1589_v56  ;;  %v3763_v56 = vsel %vm740_vm5, %v3714_v42, 0.0 }
 0x223   : > { %1620 = vst.msk [vmem:[#allocation3 + $0x30] sm:$0xff] %vm668_vm2, %v1588_v8  ;;  %v1559_v12 = vld [vmem:[#allocation3 + $0x48] sm:$0xff]  ;;  %v6322_v47 = vpop.f32.mrb[12].mxu1  ;;  %v8236_v13 = vpop.f32.mrb[74].mxu0 }
 0x224   : > { %v1591_v45 = vadd.f32 %v7932_v19, %v1559_v12  ;;  %v1558_v43 = vld [vmem:[#allocation3 + $0x40] sm:$0xff]  ;;  %1208 = vst.msk [vmem:[#allocation3 + $0x68] sm:$0xff] %vm668_vm2, %v6322_v47  ;;  %v1096_v9 = vpop.f32.mrb[13].mxu1  ;;  %v8242_v21 = vpop.f32.mrb[75].mxu0  ;;  %6636 = vmatmul.mubr.msk.f32.gmra.mrb[118].mxu1 %vm668_vm2, %v3715_v27  ;;  %v3712_v19 = vsel %vm808_vm3, %v3700_v57, %v3701_v50 }
 0x225   : > { %v1590_v63 = vadd.f32 %v1558_v43, %v7940_v31  ;;  %1207 = vst.msk [vmem:[#allocation3 + $0x60] sm:$0xff] %vm668_vm2, %v1096_v9  ;;  %6638 = vmatprep.mubr.msk.f32.mxu1 %vm668_vm2, %v3763_v56  ;;  %v3713_v31 = vsel %vm808_vm3, %v3699_v41, %v3700_v57  ;;  %v3704_v9 = vrot.slane %v8034_v35, 7  ;;  %v3705_v41 = vrot.slane %v8044_v40, 7 }
 0x226   : > { %1623 = vst.msk [vmem:[#allocation3 + $0x48] sm:$0xff] %vm668_vm2, %v1591_v45  ;;  %v3765_v45 = vsel %vm740_vm5, %v3712_v19, 0.0 }
 0x227   : > { %1622 = vst.msk [vmem:[#allocation3 + $0x40] sm:$0xff] %vm668_vm2, %v1590_v63  ;;  %v1561_v55 = vld [vmem:[#allocation3 + $0x58] sm:$0xff]  ;;  %v6325_v8 = vpop.f32.mrb[14].mxu1  ;;  %v8255_v12 = vpop.f32.mrb[76].mxu0 }
 0x228   : > { %v1593_v42 = vadd.f32 %v7948_v33, %v1561_v55  ;;  %v1560_v47 = vld [vmem:[#allocation3 + $0x50] sm:$0xff]  ;;  %1210 = vst.msk [vmem:[#allocation3 + $0x78] sm:$0xff] %vm668_vm2, %v6325_v8  ;;  %v1106_v27 = vpop.f32.mrb[15].mxu1  ;;  %v8261_v43 = vpop.f32.mrb[77].mxu0  ;;  %6639 = vmatmul.mubr.msk.f32.gmra.mrb[120].mxu1 %vm668_vm2, %v3713_v31  ;;  %v3710_v33 = vsel %vm808_vm3, %v3702_v53, %v7551_v15 }
 0x229   : > { %v1592_v56 = vadd.f32 %v1560_v47, %v7956_v61  ;;  %1209 = vst.msk [vmem:[#allocation3 + $0x70] sm:$0xff] %vm668_vm2, %v1106_v27  ;;  %6641 = vmatprep.mubr.msk.f32.mxu1 %vm668_vm2, %v3765_v45  ;;  %v3711_v61 = vsel %vm808_vm3, %v3701_v50, %v3702_v53  ;;  %v9233_v50 = vrot.slane %v7817_v62, 1 }
 0x22a   : > { %1625 = vst.msk [vmem:[#allocation3 + $0x58] sm:$0xff] %vm668_vm2, %v1593_v42  ;;  %v3767_v42 = vsel %vm740_vm5, %v3710_v33, 0.0  ;;  %v4611_v33 = vrot.slane %v7828_v0, 1 }
 0x22b   : > { %1624 = vst.msk [vmem:[#allocation3 + $0x50] sm:$0xff] %vm668_vm2, %v1592_v56  ;;  %v1563_v57 = vld [vmem:[#allocation3 + $0x68] sm:$0xff]  ;;  %v6328_v63 = vpop.f32.mrb[16].mxu1  ;;  %v8276_v19 = vpop.f32.mrb[78].mxu0 }
 0x22c   : > { %v1595_v55 = vadd.f32 %v7964_v37, %v1563_v57  ;;  %v1562_v8 = vld [vmem:[#allocation3 + $0x60] sm:$0xff]  ;;  %1212 = vst.msk [vmem:[#allocation3 + $0x88] sm:$0xff] %vm668_vm2, %v6328_v63  ;;  %v1116_v31 = vpop.f32.mrb[17].mxu1  ;;  %v8282_v47 = vpop.f32.mrb[79].mxu0  ;;  %6642 = vmatmul.mubr.msk.f32.gmra.mrb[122].mxu1 %vm668_vm2, %v3711_v61  ;;  %v3708_v37 = vsel %vm808_vm3, %v3704_v9, %v3705_v41 }
 0x22d   : > { %v1594_v27 = vadd.f32 %v1562_v8, %v7972_v44  ;;  %1211 = vst.msk [vmem:[#allocation3 + $0x80] sm:$0xff] %vm668_vm2, %v1116_v31  ;;  %6644 = vmatprep.mubr.msk.f32.mxu1 %vm668_vm2, %v3767_v42  ;;  %v3709_v44 = vsel %vm808_vm3, %v7551_v15, %v3704_v9  ;;  %v3769_v8 = vsel %vm740_vm5, %v3708_v37, 0.0  ;;  %v4610_v31 = vrot.slane %v7822_v26, 1 }
 0x22e   : > { %1627 = vst.msk [vmem:[#allocation3 + $0x68] sm:$0xff] %vm668_vm2, %v1595_v55  ;;  %v9258_v15 = vrot.slane %v7994_v29, 7 }
 0x22f   : > { %1626 = vst.msk [vmem:[#allocation3 + $0x60] sm:$0xff] %vm668_vm2, %v1594_v27  ;;  %v1565_v53 = vld [vmem:[#allocation3 + $0x78] sm:$0xff]  ;;  %v6331_v45 = vpop.f32.mrb[18].mxu1  ;;  %v8295_v56 = vpop.f32.mrb[80].mxu0 }
 0x230   : > { %v1597_v57 = vadd.f32 %v7980_v49, %v1565_v53  ;;  %v1564_v63 = vld [vmem:[#allocation3 + $0x70] sm:$0xff]  ;;  %1214 = vst.msk [vmem:[#allocation3 + $0x98] sm:$0xff] %vm668_vm2, %v6331_v45  ;;  %v1126_v61 = vpop.f32.mrb[19].mxu1  ;;  %v8303_v55 = vpop.f32.mrb[81].mxu0  ;;  %6645 = vmatmul.mubr.msk.f32.gmra.mrb[124].mxu1 %vm668_vm2, %v3709_v44  ;;  %v3707_v0 = vsel %vm808_vm3, %v3705_v41, %v9258_v15  ;;  %v4612_v49 = vrot.slane %v7834_v4, 1  ;;  %v4671_v4 = vsel %vm1678_vm4, %v9233_v50, %v4610_v31 }
 0x231   : > { %v1596_v42 = vadd.f32 %v1564_v63, %v7988_v54  ;;  %1213 = vst.msk [vmem:[#allocation3 + $0x90] sm:$0xff] %vm668_vm2, %v1126_v61  ;;  %6647 = vmatprep.mubr.msk.f32.mxu1 %vm668_vm2, %v3769_v8  ;;  %v4613_v54 = vrot.slane %v7840_v6, 1  ;;  %v4670_v41 = vsel %vm1678_vm4, %v4610_v31, %v4611_v33  ;;  %v9259_v8 = vld [vmem:[#allocation8_spill] sm:$0xff] }
 0x232   : > { %1629 = vst.msk [vmem:[#allocation3 + $0x78] sm:$0xff] %vm668_vm2, %v1597_v57  ;;  %v4674_v61 = vsel %vm743_vm6, %v4670_v41, 0.0  ;;  %v4615_v31 = vrot.slane %v9259_v8, 1 }
 0x233   : > { %1628 = vst.msk [vmem:[#allocation3 + $0x70] sm:$0xff] %vm668_vm2, %v1596_v42  ;;  %v1567_v9 = vld [vmem:[#allocation3 + $0x88] sm:$0xff]  ;;  %v6334_v27 = vpop.f32.mrb[20].mxu1  ;;  %v8319_v26 = vpop.f32.mrb[82].mxu0 }
 0x234   : > { %v1599_v37 = vadd.f32 %v7998_v58, %v1567_v9  ;;  %v1566_v53 = vld [vmem:[#allocation3 + $0x80] sm:$0xff]  ;;  %1216 = vst.msk [vmem:[#allocation3 + $0xa8] sm:$0xff] %vm668_vm2, %v6334_v27  ;;  %v1136_v29 = vpop.f32.mrb[21].mxu1  ;;  %v8324_v45 = vpop.f32.mrb[83].mxu0  ;;  %6648 = vmatmul.mubr.msk.f32.gmra.mrb[126].mxu1 %vm668_vm2, %v3707_v0  ;;  %v4614_v58 = vrot.slane %v7846_v10, 1  ;;  %v4669_v10 = vsel %vm1678_vm4, %v4611_v33, %v4612_v49  ;;  %v4668_v27 = vsel %vm1678_vm4, %v4612_v49, %v4613_v54 }
 0x235   : > { %v1598_v6 = vadd.f32 %v1566_v53, %v8007_v46  ;;  %1215 = vst.msk [vmem:[#allocation3 + $0xa0] sm:$0xff] %vm668_vm2, %v1136_v29  ;;  %6702 = vmatprep.mubr.msk.f32.mxu1 %vm668_vm2, %v4671_v4  ;;  %v9260_v46 = vld [vmem:[#allocation12_spill] sm:$0xff]  ;;  %v4616_v29 = vrot.slane %v7858_v16, 1  ;;  %v4676_v33 = vsel %vm743_vm6, %v4668_v27, 0.0  ;;  %v4617_v49 = vrot.slane %v7864_v18, 1 }
 0x236   : > { %1631 = vst.msk [vmem:[#allocation3 + $0x88] sm:$0xff] %vm668_vm2, %v1599_v37  ;;  %v9261_v37 = vld [vmem:[#allocation13_spill] sm:$0xff]  ;;  %v4667_v16 = vsel %vm1678_vm4, %v4613_v54, %v4614_v58  ;;  %v4618_v18 = vrot.slane %v7870_v22, 1 }
 0x237   : > { %1630 = vst.msk [vmem:[#allocation3 + $0x80] sm:$0xff] %vm668_vm2, %v1598_v6  ;;  %v1569_v44 = vld [vmem:[#allocation3 + $0x98] sm:$0xff]  ;;  %v6337_v57 = vpop.f32.mrb[22].mxu1  ;;  %v8339_v63 = vpop.f32.mrb[84].mxu0  ;;  %v4665_v22 = vsel %vm1678_vm4, %v4615_v31, %v4616_v29 }
 0x238   : > { %v1601_v42 = vadd.f32 %v9260_v46, %v1569_v44  ;;  %v1568_v15 = vld [vmem:[#allocation3 + $0x90] sm:$0xff]  ;;  %1218 = vst.msk [vmem:[#allocation3 + $0xb8] sm:$0xff] %vm668_vm2, %v6337_v57  ;;  %v1146_v0 = vpop.f32.mrb[23].mxu1  ;;  %v8346_v9 = vpop.f32.mrb[85].mxu0  ;;  %6703 = vmatmul.mubr.msk.f32.vlgmr.msra.gmra.mrb[128].mxu1 %vm668_vm2, %v4674_v61  ;;  %v9262_v44 = vld [vmem:[#allocation14_spill] sm:$0xff] }
 0x239   : > { %v1600_v53 = vadd.f32 %v1568_v15, %v9261_v37  ;;  %1217 = vst.msk [vmem:[#allocation3 + $0xb0] sm:$0xff] %vm668_vm2, %v1146_v0  ;;  %6705 = vmatprep.mubr.msk.f32.mxu1 %vm668_vm2, %v4669_v10  ;;  %v9263_v15 = vld [vmem:[#allocation15_spill] sm:$0xff] }
 0x23a   : > { %1633 = vst.msk [vmem:[#allocation3 + $0x98] sm:$0xff] %vm668_vm2, %v1601_v42  ;;  %v4666_v42 = vsel %vm1678_vm4, %v4614_v58, %v4615_v31  ;;  %v4619_v58 = vrot.slane %v7876_v24, 1  ;;  %v4620_v24 = vrot.slane %v7882_v28, 1  ;;  %v4663_v28 = vsel %vm1678_vm4, %v4617_v49, %v4618_v18 }
 0x23b   : > { %1632 = vst.msk [vmem:[#allocation3 + $0x90] sm:$0xff] %vm668_vm2, %v1600_v53  ;;  %v1571_v4 = vld [vmem:[#allocation3 + $0xa8] sm:$0xff]  ;;  %v6340_v41 = vpop.f32.mrb[24].mxu1  ;;  %v8359_v6 = vpop.f32.mrb[86].mxu0  ;;  %v4678_v54 = vsel %vm743_vm6, %v4666_v42, 0.0 }
 0x23c   : > { %v1603_v57 = vadd.f32 %v9262_v44, %v1571_v4  ;;  %v1570_v61 = vld [vmem:[#allocation3 + $0xa0] sm:$0xff]  ;;  %1220 = vst.msk [vmem:[#allocation3 + $0xc8] sm:$0xff] %vm668_vm2, %v6340_v41  ;;  %v1156_v8 = vpop.f32.mrb[25].mxu1  ;;  %v8366_v46 = vpop.f32.mrb[87].mxu0  ;;  %6706 = vmatmul.mubr.msk.f32.gmra.mrb[130].mxu1 %vm668_vm2, %v4676_v33  ;;  %v9264_v53 = vld [vmem:[#allocation16_spill] sm:$0xff] }
 0x23d   : > { %v1602_v0 = vadd.f32 %v1570_v61, %v9263_v15  ;;  %1219 = vst.msk [vmem:[#allocation3 + $0xc0] sm:$0xff] %vm668_vm2, %v1156_v8  ;;  %6708 = vmatprep.mubr.msk.f32.mxu1 %vm668_vm2, %v4667_v16  ;;  %v9265_v61 = vld [vmem:[#allocation17_spill] sm:$0xff] }
 0x23e   : > { %1635 = vst.msk [vmem:[#allocation3 + $0xa8] sm:$0xff] %vm668_vm2, %v1603_v57  ;;  %v4664_v57 = vsel %vm1678_vm4, %v4616_v29, %v4617_v49  ;;  %v9266_v29 = vld [vmem:[#allocation9_spill] sm:$0xff] }
 0x23f   : > { %1634 = vst.msk [vmem:[#allocation3 + $0xa0] sm:$0xff] %vm668_vm2, %v1602_v0  ;;  %v1573_v10 = vld [vmem:[#allocation3 + $0xb8] sm:$0xff]  ;;  %v6343_v27 = vpop.f32.mrb[26].mxu1  ;;  %v8379_v37 = vpop.f32.mrb[88].mxu0  ;;  %v4680_v31 = vsel %vm743_vm6, %v4664_v57, 0.0  ;;  %v4621_v0 = vrot.slane %v9266_v29, 1 }
 0x240   : > { %v1605_v4 = vadd.f32 %v9264_v53, %v1573_v10  ;;  %v1572_v41 = vld [vmem:[#allocation3 + $0xb0] sm:$0xff]  ;;  %1222 = vst.msk [vmem:[#allocation3 + $0xd8] sm:$0xff] %vm668_vm2, %v6343_v27  ;;  %v1166_v33 = vpop.f32.mrb[27].mxu1  ;;  %v8386_v44 = vpop.f32.mrb[89].mxu0  ;;  %6709 = vmatmul.mubr.msk.f32.gmra.mrb[132].mxu1 %vm668_vm2, %v4678_v54  ;;  %v9267_v10 = vld [vmem:[#allocation18_spill] sm:$0xff]  ;;  %v4622_v57 = vrot.slane %v7898_v34, 1  ;;  %v4661_v34 = vsel %vm1678_vm4, %v4619_v58, %v4620_v24 }
 0x241   : > { %v1604_v8 = vadd.f32 %v1572_v41, %v9265_v61  ;;  %1221 = vst.msk [vmem:[#allocation3 + $0xd0] sm:$0xff] %vm668_vm2, %v1166_v33  ;;  %6711 = vmatprep.mubr.msk.f32.mxu1 %vm668_vm2, %v4665_v22  ;;  %v4662_v41 = vsel %vm1678_vm4, %v4618_v18, %v4619_v58  ;;  %v9268_v33 = vld [vmem:[#allocation19_spill] sm:$0xff]  ;;  %v4623_v18 = vrot.slane %v7906_v39, 1  ;;  %v4624_v39 = vrot.slane %v7914_v48, 1 }
 0x242   : > { %1637 = vst.msk [vmem:[#allocation3 + $0xb8] sm:$0xff] %vm668_vm2, %v1605_v4  ;;  %v4682_v49 = vsel %vm743_vm6, %v4662_v41, 0.0  ;;  %v4625_v41 = vrot.slane %v7922_v52, 1  ;;  %v2067_v58 = vld [vmem:[#allocation3 + $0x8] sm:$0xff]  ;;  %v2066_v48 = vld [vmem:[#allocation3] sm:$0xff]  ;;  %v4659_v52 = vsel %vm1678_vm4, %v4621_v0, %v4622_v57 }
 0x243   : > { %1636 = vst.msk [vmem:[#allocation3 + $0xb0] sm:$0xff] %vm668_vm2, %v1604_v8  ;;  %v1575_v16 = vld [vmem:[#allocation3 + $0xc8] sm:$0xff]  ;;  %v6346_v42 = vpop.f32.mrb[28].mxu1  ;;  %v8399_v15 = vpop.f32.mrb[90].mxu0 }
 0x244   : > { %v1607_v27 = vadd.f32 %v9267_v10, %v1575_v16  ;;  %v1574_v54 = vld [vmem:[#allocation3 + $0xc0] sm:$0xff]  ;;  %1224 = vst.msk [vmem:[#allocation3 + $0xe8] sm:$0xff] %vm668_vm2, %v6346_v42  ;;  %v1176_v53 = vpop.f32.mrb[29].mxu1  ;;  %v8406_v4 = vpop.f32.mrb[91].mxu0  ;;  %6712 = vmatmul.mubr.msk.f32.gmra.mrb[134].mxu1 %vm668_vm2, %v4680_v31  ;;  %v9269_v42 = vld [vmem:[#allocation20_spill] sm:$0xff] }
 0x245   : > { %v1606_v22 = vadd.f32 %v1574_v54, %v9268_v33  ;;  %1223 = vst.msk [vmem:[#allocation3 + $0xe0] sm:$0xff] %vm668_vm2, %v1176_v53  ;;  %6714 = vmatprep.mubr.msk.f32.mxu1 %vm668_vm2, %v4663_v28  ;;  %v4660_v54 = vsel %vm1678_vm4, %v4620_v24, %v4621_v0  ;;  %v9270_v53 = vld [vmem:[#allocation21_spill] sm:$0xff] }
 0x246   : > { %1639 = vst.msk [vmem:[#allocation3 + $0xc8] sm:$0xff] %vm668_vm2, %v1607_v27  ;;  %v4684_v24 = vsel %vm743_vm6, %v4660_v54, 0.0 }
 0x247   : > { %1638 = vst.msk [vmem:[#allocation3 + $0xc0] sm:$0xff] %vm668_vm2, %v1606_v22  ;;  %v1577_v61 = vld [vmem:[#allocation3 + $0xd8] sm:$0xff]  ;;  %v6349_v8 = vpop.f32.mrb[30].mxu1  ;;  %v8419_v16 = vpop.f32.mrb[92].mxu0 }
 0x248   : > { %v1609_v31 = vadd.f32 %v9269_v42, %v1577_v61  ;;  %v1576_v29 = vld [vmem:[#allocation3 + $0xd0] sm:$0xff]  ;;  %1226 = vst.msk [vmem:[#allocation3 + $0xf8] sm:$0xff] %vm668_vm2, %v6349_v8  ;;  %v1186_v10 = vpop.f32.mrb[31].mxu1  ;;  %v8426_v27 = vpop.f32.mrb[93].mxu0  ;;  %6715 = vmatmul.mubr.msk.f32.gmra.mrb[136].mxu1 %vm668_vm2, %v4682_v49  ;;  %v9271_v8 = vld [vmem:[#allocation22_spill] sm:$0xff] }
 0x249   : > { %v1608_v28 = vadd.f32 %v1576_v29, %v9270_v53  ;;  %1225 = vst.msk [vmem:[#allocation3 + $0xf0] sm:$0xff] %vm668_vm2, %v1186_v10  ;;  %6717 = vmatprep.mubr.msk.f32.mxu1 %vm668_vm2, %v4661_v34  ;;  %v4658_v34 = vsel %vm1678_vm4, %v4622_v57, %v4623_v18  ;;  %v9273_v53 = vld [vmem:[#allocation23_spill] sm:$0xff]  ;;  %v2069_v57 = vld [vmem:[#allocation3 + $0x18] sm:$0xff] }
 0x24a   : > { %1641 = vst.msk [vmem:[#allocation3 + $0xd8] sm:$0xff] %vm668_vm2, %v1609_v31 }
 0x24b   : > { %1640 = vst.msk [vmem:[#allocation3 + $0xd0] sm:$0xff] %vm668_vm2, %v1608_v28  ;;  %v1579_v33 = vld [vmem:[#allocation3 + $0xe8] sm:$0xff]  ;;  %v6404_v22 = vpop.f32.mrb[32].mxu1  ;;  %v8442_v61 = vpop.f32.mrb[94].mxu0 }
 0x24c   : > { %v1611_v49 = vadd.f32 %v9271_v8, %v1579_v33  ;;  %v1578_v42 = vld [vmem:[#allocation3 + $0xe0] sm:$0xff]  ;;  %v2099_v29 = vadd.f32 %v6404_v22, %v2067_v58  ;;  %v1907_v10 = vpop.f32.mrb[33].mxu1  ;;  %6718 = vmatmul.mubr.msk.f32.gmra.mrb[138].mxu1 %vm668_vm2, %v4684_v24  ;;  %v8448_v31 = vpop.f32.mrb[95].mxu0 }
 0x24d   : > { %9272 = vst [vmem:[#allocation8_spill] sm:$0xff] %v8448_v31  ;;  %v1610_v54 = vadd.f32 %v1578_v42, %v9273_v53  ;;  %v2098_v28 = vadd.f32 %v2066_v48, %v1907_v10  ;;  %6720 = vmatprep.mubr.msk.f32.mxu1 %vm668_vm2, %v4659_v52  ;;  %v9274_v33 = vld [vmem:[#allocation10_spill] sm:$0xff]  ;;  %v9275_v22 = vld [vmem:[#allocation11_spill] sm:$0xff]  ;;  %v4686_v42 = vsel %vm743_vm6, %v4658_v34, 0.0  ;;  %v9277_v10 = vld [vmem:[#allocation24_spill] sm:$0xff]  ;;  %v4628_v34 = vrot.slane %v7946_v2, 1 }
 0x24e   : > { %v4626_v8 = vrot.slane %v9274_v33, 1  ;;  %1643 = vst.msk [vmem:[#allocation3 + $0xe8] sm:$0xff] %vm668_vm2, %v1611_v49  ;;  %2131 = vst.msk [vmem:[#allocation3 + $0x8] sm:$0xff] %vm668_vm2, %v2099_v29  ;;  %v4627_v58 = vrot.slane %v9275_v22, 1  ;;  %v2068_v29 = vld [vmem:[#allocation3 + $0x10] sm:$0xff] }
 0x24f   : > { %1642 = vst.msk [vmem:[#allocation3 + $0xe0] sm:$0xff] %vm668_vm2, %v1610_v54  ;;  %v1581_v0 = vld [vmem:[#allocation3 + $0xf8] sm:$0xff]  ;;  %2130 = vst.msk [vmem:[#allocation3] sm:$0xff] %vm668_vm2, %v2098_v28  ;;  %v6407_v24 = vpop.f32.mrb[34].mxu1  ;;  %v8460_v50 = vpop.f32.mrb[96].mxu0  ;;  %v4657_v54 = vsel %vm1678_vm4, %v4623_v18, %v4624_v39  ;;  %v4656_v28 = vsel %vm1678_vm4, %v4624_v39, %v4625_v41  ;;  %v2071_v18 = vld [vmem:[#allocation3 + $0x28] sm:$0xff] }
 0x250   : > { %9276 = vst [vmem:[#allocation12_spill] sm:$0xff] %v8460_v50  ;;  %v1613_v48 = vadd.f32 %v9277_v10, %v1581_v0  ;;  %v1580_v52 = vld [vmem:[#allocation3 + $0xf0] sm:$0xff]  ;;  %v2101_v49 = vadd.f32 %v6407_v24, %v2069_v57  ;;  %v1917_v53 = vpop.f32.mrb[35].mxu1  ;;  %v8465_v33 = vpop.f32.mrb[97].mxu0  ;;  %6721 = vmatmul.mubr.msk.f32.gmra.mrb[140].mxu1 %vm668_vm2, %v4686_v42  ;;  %v4688_v39 = vsel %vm743_vm6, %v4656_v28, 0.0  ;;  %v4629_v57 = vrot.slane %v7954_v5, 1 }
 0x251   : > { %v9278_v22 = vld [vmem:[#allocation25_spill] sm:$0xff]  ;;  %v2100_v31 = vadd.f32 %v2068_v29, %v1917_v53  ;;  %6723 = vmatprep.mubr.msk.f32.mxu1 %vm668_vm2, %v4657_v54  ;;  %v4655_v2 = vsel %vm1678_vm4, %v4625_v41, %v4626_v8  ;;  %v9279_v5 = vld [vmem:[#allocation26_spill] sm:$0xff]  ;;  %v4630_v54 = vrot.slane %v7962_v11, 1  ;;  %v4653_v11 = vsel %vm1678_vm4, %v4627_v58, %v4628_v34 }
 0x252   : > { %v1612_v50 = vadd.f32 %v1580_v52, %v9278_v22  ;;  %1645 = vst.msk [vmem:[#allocation3 + $0xf8] sm:$0xff] %vm668_vm2, %v1613_v48  ;;  %2133 = vst.msk [vmem:[#allocation3 + $0x18] sm:$0xff] %vm668_vm2, %v2101_v49  ;;  %v2070_v48 = vld [vmem:[#allocation3 + $0x20] sm:$0xff]  ;;  %v2073_v22 = vld [vmem:[#allocation3 + $0x38] sm:$0xff] }
 0x253   : > { %2132 = vst.msk [vmem:[#allocation3 + $0x10] sm:$0xff] %vm668_vm2, %v2100_v31  ;;  %v6410_v0 = vpop.f32.mrb[36].mxu1  ;;  %v8479_v24 = vpop.f32.mrb[98].mxu0 }
 0x254   : > { %1644 = vst.msk [vmem:[#allocation3 + $0xf0] sm:$0xff] %vm668_vm2, %v1612_v50  ;;  %v2103_v42 = vadd.f32 %v6410_v0, %v2071_v18  ;;  %v1927_v10 = vpop.f32.mrb[37].mxu1  ;;  %v8484_v52 = vpop.f32.mrb[99].mxu0  ;;  %6724 = vmatmul.mubr.msk.f32.gmra.mrb[142].mxu1 %vm668_vm2, %v4688_v39  ;;  %v4654_v50 = vsel %vm1678_vm4, %v4626_v8, %v4627_v58  ;;  %v9280_v8 = vld [vmem:[#allocation27_spill] sm:$0xff]  ;;  %v4631_v39 = vrot.slane %v7970_v14, 1 }
 0x255   : > { %v2102_v31 = vadd.f32 %v2070_v48, %v1927_v10  ;;  %6726 = vmatprep.mubr.msk.f32.mxu1 %vm668_vm2, %v4655_v2  ;;  %v2614_v49 = vld [vmem:[#allocation3 + $0x8] sm:$0xff]  ;;  %v4690_v41 = vsel %vm743_vm6, %v4654_v50, 0.0  ;;  %v2072_v48 = vld [vmem:[#allocation3 + $0x30] sm:$0xff] }
 0x256   : > { %2135 = vst.msk [vmem:[#allocation3 + $0x28] sm:$0xff] %vm668_vm2, %v2103_v42  ;;  %v2646_v53 = vadd.f32 %v9279_v5, %v2614_v49  ;;  %v2613_v29 = vld [vmem:[#allocation3] sm:$0xff]  ;;  %v9281_v49 = vld [vmem:[#allocation28_spill] sm:$0xff] }
 0x257   : > { %2134 = vst.msk [vmem:[#allocation3 + $0x20] sm:$0xff] %vm668_vm2, %v2102_v31  ;;  %v6413_v28 = vpop.f32.mrb[38].mxu1  ;;  %v8496_v0 = vpop.f32.mrb[100].mxu0  ;;  %v2645_v18 = vadd.f32 %v2613_v29, %v9280_v8  ;;  %v4652_v31 = vsel %vm1678_vm4, %v4628_v34, %v4629_v57  ;;  %v4633_v8 = vrot.slane %v7986_v23, 1 }
 0x258   : > { %v2105_v10 = vadd.f32 %v6413_v28, %v2073_v22  ;;  %v1937_v42 = vpop.f32.mrb[39].mxu1  ;;  %v8502_v2 = vpop.f32.mrb[101].mxu0  ;;  %6727 = vmatmul.mubr.msk.f32.gmra.mrb[144].mxu1 %vm668_vm2, %v4690_v41  ;;  %2678 = vst.msk [vmem:[#allocation3 + $0x8] sm:$0xff] %vm668_vm2, %v2646_v53  ;;  %v4632_v28 = vrot.slane %v7978_v20, 1  ;;  %v2075_v22 = vld [vmem:[#allocation3 + $0x48] sm:$0xff]  ;;  %v4692_v53 = vsel %vm743_vm6, %v4652_v31, 0.0  ;;  %v4651_v20 = vsel %vm1678_vm4, %v4629_v57, %v4630_v54 }
 0x259   : > { %v2104_v50 = vadd.f32 %v2072_v48, %v1937_v42  ;;  %6729 = vmatprep.mubr.msk.f32.mxu1 %vm668_vm2, %v4653_v11  ;;  %2677 = vst.msk [vmem:[#allocation3] sm:$0xff] %vm668_vm2, %v2645_v18  ;;  %v2616_v14 = vld [vmem:[#allocation3 + $0x18] sm:$0xff]  ;;  %v2074_v42 = vld [vmem:[#allocation3 + $0x40] sm:$0xff]  ;;  %v4650_v11 = vsel %vm1678_vm4, %v4630_v54, %v4631_v39 }
 0x25a   : > { %2137 = vst.msk [vmem:[#allocation3 + $0x38] sm:$0xff] %vm668_vm2, %v2105_v10  ;;  %v2648_v5 = vadd.f32 %v9281_v49, %v2616_v14  ;;  %v2615_v29 = vld [vmem:[#allocation3 + $0x10] sm:$0xff]  ;;  %v4634_v14 = vrot.slane %v7996_v51, 1  ;;  %v2077_v49 = vld [vmem:[#allocation3 + $0x58] sm:$0xff]  ;;  %v4649_v51 = vsel %vm1678_vm4, %v4631_v39, %v4632_v28  ;;  %v2079_v39 = vld [vmem:[#allocation3 + $0x68] sm:$0xff] }
 0x25b   : > { %2136 = vst.msk [vmem:[#allocation3 + $0x30] sm:$0xff] %vm668_vm2, %v2104_v50  ;;  %v6416_v58 = vpop.f32.mrb[40].mxu1  ;;  %v8516_v34 = vpop.f32.mrb[102].mxu0  ;;  %v2647_v41 = vadd.f32 %v2615_v29, %v8162_v59 }
 0x25c   : > { %v2107_v18 = vadd.f32 %v6416_v58, %v2075_v22  ;;  %v1947_v10 = vpop.f32.mrb[41].mxu1  ;;  %v8522_v48 = vpop.f32.mrb[103].mxu0  ;;  %6730 = vmatmul.mubr.msk.f32.gmra.mrb[146].mxu1 %vm668_vm2, %v4692_v53  ;;  %2680 = vst.msk [vmem:[#allocation3 + $0x18] sm:$0xff] %vm668_vm2, %v2648_v5  ;;  %v4694_v5 = vsel %vm743_vm6, %v4650_v11, 0.0  ;;  %v4635_v58 = vrot.slane %v8004_v32, 1 }
 0x25d   : > { %v2106_v31 = vadd.f32 %v2074_v42, %v1947_v10  ;;  %6732 = vmatprep.mubr.msk.f32.mxu1 %vm668_vm2, %v4651_v20  ;;  %2679 = vst.msk [vmem:[#allocation3 + $0x10] sm:$0xff] %vm668_vm2, %v2647_v41  ;;  %v2618_v59 = vld [vmem:[#allocation3 + $0x28] sm:$0xff]  ;;  %v2076_v41 = vld [vmem:[#allocation3 + $0x50] sm:$0xff] }
 0x25e   : > { %2139 = vst.msk [vmem:[#allocation3 + $0x48] sm:$0xff] %vm668_vm2, %v2107_v18  ;;  %v2650_v23 = vadd.f32 %v8176_v3, %v2618_v59  ;;  %v2617_v50 = vld [vmem:[#allocation3 + $0x20] sm:$0xff]  ;;  %v4648_v18 = vsel %vm1678_vm4, %v4632_v28, %v4633_v8  ;;  %v4636_v59 = vrot.slane %v8014_v60, 1 }
 0x25f   : > { %2138 = vst.msk [vmem:[#allocation3 + $0x40] sm:$0xff] %vm668_vm2, %v2106_v31  ;;  %v6419_v57 = vpop.f32.mrb[42].mxu1  ;;  %v8536_v54 = vpop.f32.mrb[104].mxu0  ;;  %v2649_v29 = vadd.f32 %v2617_v50, %v8182_v7  ;;  %v4696_v28 = vsel %vm743_vm6, %v4648_v18, 0.0 }
 0x260   : > { %v2109_v22 = vadd.f32 %v6419_v57, %v2077_v49  ;;  %v1957_v53 = vpop.f32.mrb[43].mxu1  ;;  %v8542_v3 = vpop.f32.mrb[105].mxu0  ;;  %6733 = vmatmul.mubr.msk.f32.gmra.mrb[148].mxu1 %vm668_vm2, %v4694_v5  ;;  %2682 = vst.msk [vmem:[#allocation3 + $0x28] sm:$0xff] %vm668_vm2, %v2650_v23  ;;  %v2078_v57 = vld [vmem:[#allocation3 + $0x60] sm:$0xff]  ;;  %v4646_v5 = vsel %vm1678_vm4, %v4634_v14, %v4635_v58 }
 0x261   : > { %v2108_v10 = vadd.f32 %v2076_v41, %v1957_v53  ;;  %6735 = vmatprep.mubr.msk.f32.mxu1 %vm668_vm2, %v4649_v51  ;;  %2681 = vst.msk [vmem:[#allocation3 + $0x20] sm:$0xff] %vm668_vm2, %v2649_v29  ;;  %v2620_v32 = vld [vmem:[#allocation3 + $0x38] sm:$0xff]  ;;  %v4638_v53 = vrot.slane %v8034_v35, 1  ;;  %v4698_v51 = vsel %vm743_vm6, %v4646_v5, 0.0  ;;  %v4645_v35 = vsel %vm1678_vm4, %v4635_v58, %v4636_v59 }
 0x262   : > { %2141 = vst.msk [vmem:[#allocation3 + $0x58] sm:$0xff] %vm668_vm2, %v2109_v22  ;;  %v2652_v7 = vadd.f32 %v8196_v17, %v2620_v32  ;;  %v2619_v42 = vld [vmem:[#allocation3 + $0x30] sm:$0xff]  ;;  %v4647_v17 = vsel %vm1678_vm4, %v4633_v8, %v4634_v14  ;;  %v2081_v41 = vld [vmem:[#allocation3 + $0x78] sm:$0xff] }
 0x263   : > { %2140 = vst.msk [vmem:[#allocation3 + $0x50] sm:$0xff] %vm668_vm2, %v2108_v10  ;;  %v6422_v20 = vpop.f32.mrb[44].mxu1  ;;  %v8555_v11 = vpop.f32.mrb[106].mxu0  ;;  %v2651_v31 = vadd.f32 %v2619_v42, %v8202_v30 }
 0x264   : > { %v2111_v23 = vadd.f32 %v6422_v20, %v2079_v39  ;;  %v1967_v50 = vpop.f32.mrb[45].mxu1  ;;  %v8561_v49 = vpop.f32.mrb[107].mxu0  ;;  %6736 = vmatmul.mubr.msk.f32.gmra.mrb[150].mxu1 %vm668_vm2, %v4696_v28  ;;  %2684 = vst.msk [vmem:[#allocation3 + $0x38] sm:$0xff] %vm668_vm2, %v2652_v7  ;;  %v2080_v7 = vld [vmem:[#allocation3 + $0x70] sm:$0xff]  ;;  %v4639_v39 = vrot.slane %v8044_v40, 1 }
 0x265   : > { %v2110_v29 = vadd.f32 %v2078_v57, %v1967_v50  ;;  %6738 = vmatprep.mubr.msk.f32.mxu1 %vm668_vm2, %v4647_v17  ;;  %2683 = vst.msk [vmem:[#allocation3 + $0x30] sm:$0xff] %vm668_vm2, %v2651_v31  ;;  %v2622_v60 = vld [vmem:[#allocation3 + $0x48] sm:$0xff] }
 0x266   : > { %2143 = vst.msk [vmem:[#allocation3 + $0x68] sm:$0xff] %vm668_vm2, %v2111_v23  ;;  %v2654_v30 = vadd.f32 %v8216_v36, %v2622_v60  ;;  %v2621_v22 = vld [vmem:[#allocation3 + $0x40] sm:$0xff]  ;;  %v2083_v50 = vld [vmem:[#allocation3 + $0x88] sm:$0xff] }
 0x267   : > { %2142 = vst.msk [vmem:[#allocation3 + $0x60] sm:$0xff] %vm668_vm2, %v2110_v29  ;;  %v6425_v8 = vpop.f32.mrb[46].mxu1  ;;  %v8575_v14 = vpop.f32.mrb[108].mxu0  ;;  %v2653_v18 = vadd.f32 %v2621_v22, %v8222_v1  ;;  %v9282_v36 = vld [vmem:[#allocation7_spill] sm:$0xff]  ;;  %v6790_v22 = vld [vmem:[#allocation2 + $0x118] sm:$0xff] }
 0x268   : > { %v2113_v10 = vadd.f32 %v6425_v8, %v2081_v41  ;;  %v1977_v32 = vpop.f32.mrb[47].mxu1  ;;  %v8580_v42 = vpop.f32.mrb[109].mxu0  ;;  %6739 = vmatmul.mubr.msk.f32.gmra.mrb[152].mxu1 %vm668_vm2, %v4698_v51  ;;  %v4644_v20 = vsel %vm1678_vm4, %v4636_v59, %v9282_v36  ;;  %2686 = vst.msk [vmem:[#allocation3 + $0x48] sm:$0xff] %vm668_vm2, %v2654_v30  ;;  %v2082_v29 = vld [vmem:[#allocation3 + $0x80] sm:$0xff]  ;;  %v4642_v30 = vsel %vm1678_vm4, %v4638_v53, %v4639_v39  ;;  %v4640_v8 = vrot.slane %v6790_v22, 1 }
 0x269   : > { %v2112_v28 = vadd.f32 %v2080_v7, %v1977_v32  ;;  %6741 = vmatprep.mubr.msk.f32.mxu1 %vm668_vm2, %v4645_v35  ;;  %2685 = vst.msk [vmem:[#allocation3 + $0x40] sm:$0xff] %vm668_vm2, %v2653_v18  ;;  %v2624_v1 = vld [vmem:[#allocation3 + $0x58] sm:$0xff]  ;;  %v4700_v40 = vsel %vm743_vm6, %v4644_v20, 0.0  ;;  %v4702_v35 = vsel %vm743_vm6, %v4642_v30, 0.0 }
 0x26a   : > { %2145 = vst.msk [vmem:[#allocation3 + $0x78] sm:$0xff] %vm668_vm2, %v2113_v10  ;;  %v2656_v31 = vadd.f32 %v8236_v13, %v2624_v1  ;;  %v2623_v23 = vld [vmem:[#allocation3 + $0x50] sm:$0xff]  ;;  %v4643_v13 = vsel %vm1678_vm4, %v9282_v36, %v4638_v53  ;;  %v4641_v51 = vsel %vm1678_vm4, %v4639_v39, %v4640_v8  ;;  %v2085_v32 = vld [vmem:[#allocation3 + $0x98] sm:$0xff] }
 0x26b   : > { %2144 = vst.msk [vmem:[#allocation3 + $0x70] sm:$0xff] %vm668_vm2, %v2112_v28  ;;  %v6428_v58 = vpop.f32.mrb[48].mxu1  ;;  %v8595_v59 = vpop.f32.mrb[110].mxu0  ;;  %v2655_v57 = vadd.f32 %v2623_v23, %v8242_v21  ;;  %v2084_v1 = vld [vmem:[#allocation3 + $0x90] sm:$0xff] }
 0x26c   : > { %v2115_v17 = vadd.f32 %v6428_v58, %v2083_v50  ;;  %v1987_v5 = vpop.f32.mrb[49].mxu1  ;;  %v8600_v60 = vpop.f32.mrb[111].mxu0  ;;  %6742 = vmatmul.mubr.msk.f32.gmra.mrb[154].mxu1 %vm668_vm2, %v4700_v40  ;;  %2688 = vst.msk [vmem:[#allocation3 + $0x58] sm:$0xff] %vm668_vm2, %v2656_v31 }
 0x26d   : > { %v2114_v41 = vadd.f32 %v2082_v29, %v1987_v5  ;;  %6744 = vmatprep.mubr.msk.f32.mxu1 %vm668_vm2, %v4643_v13  ;;  %2687 = vst.msk [vmem:[#allocation3 + $0x50] sm:$0xff] %vm668_vm2, %v2655_v57  ;;  %v2626_v21 = vld [vmem:[#allocation3 + $0x68] sm:$0xff]  ;;  %v2086_v13 = vld [vmem:[#allocation3 + $0xa0] sm:$0xff] }
 0x26e   : > { %2147 = vst.msk [vmem:[#allocation3 + $0x88] sm:$0xff] %vm668_vm2, %v2115_v17  ;;  %v2658_v18 = vadd.f32 %v8255_v12, %v2626_v21  ;;  %v2625_v10 = vld [vmem:[#allocation3 + $0x60] sm:$0xff]  ;;  %v9283_v12 = vrot.slane %v7817_v62, 1  ;;  %v2087_v62 = vld [vmem:[#allocation3 + $0xa8] sm:$0xff] }
 0x26f   : > { %2146 = vst.msk [vmem:[#allocation3 + $0x80] sm:$0xff] %vm668_vm2, %v2114_v41  ;;  %v6431_v53 = vpop.f32.mrb[50].mxu1  ;;  %v8616_v7 = vpop.f32.mrb[112].mxu0  ;;  %v2657_v36 = vadd.f32 %v2625_v10, %v8261_v43  ;;  %v2089_v41 = vld [vmem:[#allocation3 + $0xb8] sm:$0xff] }
 0x270   : > { %v2117_v20 = vadd.f32 %v6431_v53, %v2085_v32  ;;  %v1997_v28 = vpop.f32.mrb[51].mxu1  ;;  %v8621_v31 = vpop.f32.mrb[113].mxu0  ;;  %6745 = vmatmul.mubr.msk.f32.gmra.mrb[156].mxu1 %vm668_vm2, %v4702_v35  ;;  %v4672_v39 = vsel %vm1678_vm4, %v4640_v8, %v9283_v12  ;;  %2690 = vst.msk [vmem:[#allocation3 + $0x68] sm:$0xff] %vm668_vm2, %v2658_v18  ;;  %v2088_v53 = vld [vmem:[#allocation3 + $0xb0] sm:$0xff] }
 0x271   : > { %v2116_v23 = vadd.f32 %v2084_v1, %v1997_v28  ;;  %6747 = vmatprep.mubr.msk.f32.mxu1 %vm668_vm2, %v4641_v51  ;;  %2689 = vst.msk [vmem:[#allocation3 + $0x60] sm:$0xff] %vm668_vm2, %v2657_v36  ;;  %v2628_v43 = vld [vmem:[#allocation3 + $0x78] sm:$0xff]  ;;  %v4704_v38 = vsel %vm743_vm6, %v4672_v39, 0.0 }
 0x272   : > { %2149 = vst.msk [vmem:[#allocation3 + $0x98] sm:$0xff] %vm668_vm2, %v2117_v20  ;;  %v2660_v58 = vadd.f32 %v8276_v19, %v2628_v43  ;;  %v2627_v50 = vld [vmem:[#allocation3 + $0x70] sm:$0xff]  ;;  %v2090_v43 = vld [vmem:[#allocation3 + $0xc0] sm:$0xff] }
 0x273   : > { %2148 = vst.msk [vmem:[#allocation3 + $0x90] sm:$0xff] %vm668_vm2, %v2116_v23  ;;  %v6434_v40 = vpop.f32.mrb[52].mxu1  ;;  %v8634_v57 = vpop.f32.mrb[114].mxu0  ;;  %v2659_v17 = vadd.f32 %v2627_v50, %v8282_v47 }
 0x274   : > { %v2119_v5 = vadd.f32 %v6434_v40, %v2087_v62  ;;  %v2007_v29 = vpop.f32.mrb[53].mxu1  ;;  %v8639_v30 = vpop.f32.mrb[115].mxu0  ;;  %6748 = vmatmul.mubr.msk.f32.gmra.mrb[158].mxu1 %vm668_vm2, %v4704_v38  ;;  %2692 = vst.msk [vmem:[#allocation3 + $0x78] sm:$0xff] %vm668_vm2, %v2660_v58 }
 0x275   : > { %v2118_v19 = vadd.f32 %v2086_v13, %v2007_v29  ;;  %2691 = vst.msk [vmem:[#allocation3 + $0x70] sm:$0xff] %vm668_vm2, %v2659_v17  ;;  %v2630_v22 = vld [vmem:[#allocation3 + $0x88] sm:$0xff] }
 0x276   : > { %2151 = vst.msk [vmem:[#allocation3 + $0xa8] sm:$0xff] %vm668_vm2, %v2119_v5  ;;  %v2662_v25 = vadd.f32 %v8295_v56, %v2630_v22  ;;  %v2629_v8 = vld [vmem:[#allocation3 + $0x80] sm:$0xff] }
 0x277   : > { %2150 = vst.msk [vmem:[#allocation3 + $0xa0] sm:$0xff] %vm668_vm2, %v2118_v19  ;;  %v6437_v47 = vpop.f32.mrb[54].mxu1  ;;  %v8647_v21 = vpop.f32.mrb[116].mxu0  ;;  %v2661_v51 = vadd.f32 %v2629_v8, %v8303_v55  ;;  %v2091_v55 = vld [vmem:[#allocation3 + $0xc8] sm:$0xff]  ;;  %v2092_v19 = vld [vmem:[#allocation3 + $0xd0] sm:$0xff] }
 0x278   : > { %v2121_v18 = vadd.f32 %v6437_v47, %v2089_v41  ;;  %v2017_v10 = vpop.f32.mrb[55].mxu1  ;;  %v8650_v32 = vpop.f32.mrb[117].mxu0  ;;  %2694 = vst.msk [vmem:[#allocation3 + $0x88] sm:$0xff] %vm668_vm2, %v2662_v25 }
 0x279   : > { %v2120_v35 = vadd.f32 %v2088_v53, %v2017_v10  ;;  %2693 = vst.msk [vmem:[#allocation3 + $0x80] sm:$0xff] %vm668_vm2, %v2661_v51  ;;  %v2632_v56 = vld [vmem:[#allocation3 + $0x98] sm:$0xff] }
 0x27a   : > { %2153 = vst.msk [vmem:[#allocation3 + $0xb8] sm:$0xff] %vm668_vm2, %v2121_v18  ;;  %v2664_v36 = vadd.f32 %v8319_v26, %v2632_v56  ;;  %v2631_v20 = vld [vmem:[#allocation3 + $0x90] sm:$0xff] }
 0x27b   : > { %2152 = vst.msk [vmem:[#allocation3 + $0xb0] sm:$0xff] %vm668_vm2, %v2120_v35  ;;  %v6440_v28 = vpop.f32.mrb[56].mxu1  ;;  %v8657_v1 = vpop.f32.mrb[118].mxu0  ;;  %v2663_v12 = vadd.f32 %v2631_v20, %v8324_v45  ;;  %v2093_v45 = vld [vmem:[#allocation3 + $0xd8] sm:$0xff]  ;;  %v2094_v35 = vld [vmem:[#allocation3 + $0xe0] sm:$0xff] }
 0x27c   : > { %v2123_v39 = vadd.f32 %v6440_v28, %v2091_v55  ;;  %v2027_v23 = vpop.f32.mrb[57].mxu1  ;;  %v8660_v58 = vpop.f32.mrb[119].mxu0  ;;  %2696 = vst.msk [vmem:[#allocation3 + $0x98] sm:$0xff] %vm668_vm2, %v2664_v36 }
 0x27d   : > { %v2122_v50 = vadd.f32 %v2090_v43, %v2027_v23  ;;  %2695 = vst.msk [vmem:[#allocation3 + $0x90] sm:$0xff] %vm668_vm2, %v2663_v12  ;;  %v2634_v26 = vld [vmem:[#allocation3 + $0xa8] sm:$0xff] }
 0x27e   : > { %2155 = vst.msk [vmem:[#allocation3 + $0xc8] sm:$0xff] %vm668_vm2, %v2123_v39  ;;  %v2666_v40 = vadd.f32 %v8339_v63, %v2634_v26  ;;  %v2633_v62 = vld [vmem:[#allocation3 + $0xa0] sm:$0xff] }
 0x27f   : > { %2154 = vst.msk [vmem:[#allocation3 + $0xc0] sm:$0xff] %vm668_vm2, %v2122_v50  ;;  %v6443_v38 = vpop.f32.mrb[58].mxu1  ;;  %v8667_v17 = vpop.f32.mrb[120].mxu0  ;;  %v2665_v5 = vadd.f32 %v2633_v62, %v8346_v9  ;;  %v2095_v9 = vld [vmem:[#allocation3 + $0xe8] sm:$0xff]  ;;  %v2096_v50 = vld [vmem:[#allocation3 + $0xf0] sm:$0xff] }
 0x280   : > { %v2125_v29 = vadd.f32 %v6443_v38, %v2093_v45  ;;  %v2037_v13 = vpop.f32.mrb[59].mxu1  ;;  %v8670_v22 = vpop.f32.mrb[121].mxu0  ;;  %2698 = vst.msk [vmem:[#allocation3 + $0xa8] sm:$0xff] %vm668_vm2, %v2666_v40 }
 0x281   : > { %v2124_v25 = vadd.f32 %v2092_v19, %v2037_v13  ;;  %2697 = vst.msk [vmem:[#allocation3 + $0xa0] sm:$0xff] %vm668_vm2, %v2665_v5  ;;  %v2636_v63 = vld [vmem:[#allocation3 + $0xb8] sm:$0xff] }
 0x282   : > { %2157 = vst.msk [vmem:[#allocation3 + $0xd8] sm:$0xff] %vm668_vm2, %v2125_v29  ;;  %v2668_v8 = vadd.f32 %v8359_v6, %v2636_v63  ;;  %v2635_v47 = vld [vmem:[#allocation3 + $0xb0] sm:$0xff] }
 0x283   : > { %2156 = vst.msk [vmem:[#allocation3 + $0xd0] sm:$0xff] %vm668_vm2, %v2124_v25  ;;  %v6446_v41 = vpop.f32.mrb[60].mxu1  ;;  %v8677_v51 = vpop.f32.mrb[122].mxu0  ;;  %v2667_v18 = vadd.f32 %v2635_v47, %v8366_v46  ;;  %v2097_v46 = vld [vmem:[#allocation3 + $0xf8] sm:$0xff]  ;;  %v3032_v25 = vld [vmem:[#allocation3] sm:$0xff] }
 0x284   : > { %v2127_v10 = vadd.f32 %v6446_v41, %v2095_v9  ;;  %v2047_v53 = vpop.f32.mrb[61].mxu1  ;;  %v8680_v56 = vpop.f32.mrb[123].mxu0  ;;  %2700 = vst.msk [vmem:[#allocation3 + $0xb8] sm:$0xff] %vm668_vm2, %v2668_v8 }
 0x285   : > { %v2126_v36 = vadd.f32 %v2094_v35, %v2047_v53  ;;  %2699 = vst.msk [vmem:[#allocation3 + $0xb0] sm:$0xff] %vm668_vm2, %v2667_v18  ;;  %v2638_v6 = vld [vmem:[#allocation3 + $0xc8] sm:$0xff] }
 0x286   : > { %2159 = vst.msk [vmem:[#allocation3 + $0xe8] sm:$0xff] %vm668_vm2, %v2127_v10  ;;  %v2670_v20 = vadd.f32 %v8379_v37, %v2638_v6  ;;  %v2637_v28 = vld [vmem:[#allocation3 + $0xc0] sm:$0xff] }
 0x287   : > { %2158 = vst.msk [vmem:[#allocation3 + $0xe0] sm:$0xff] %vm668_vm2, %v2126_v36  ;;  %v6449_v55 = vpop.f32.mrb[62].mxu1  ;;  %v8687_v12 = vpop.f32.mrb[124].mxu0  ;;  %v2669_v39 = vadd.f32 %v2637_v28, %v8386_v44  ;;  %v3033_v44 = vld [vmem:[#allocation3 + $0x8] sm:$0xff]  ;;  %v3034_v36 = vld [vmem:[#allocation3 + $0x10] sm:$0xff] }
 0x288   : > { %v2129_v23 = vadd.f32 %v6449_v55, %v2097_v46  ;;  %v2057_v43 = vpop.f32.mrb[63].mxu1  ;;  %v8690_v26 = vpop.f32.mrb[125].mxu0  ;;  %2702 = vst.msk [vmem:[#allocation3 + $0xc8] sm:$0xff] %vm668_vm2, %v2670_v20 }
 0x289   : > { %v2128_v40 = vadd.f32 %v2096_v50, %v2057_v43  ;;  %2701 = vst.msk [vmem:[#allocation3 + $0xc0] sm:$0xff] %vm668_vm2, %v2669_v39  ;;  %v2640_v37 = vld [vmem:[#allocation3 + $0xd8] sm:$0xff] }
 0x28a   : > { %2161 = vst.msk [vmem:[#allocation3 + $0xf8] sm:$0xff] %vm668_vm2, %v2129_v23  ;;  %v2672_v62 = vadd.f32 %v8399_v15, %v2640_v37  ;;  %v2639_v38 = vld [vmem:[#allocation3 + $0xd0] sm:$0xff]  ;;  %v3036_v37 = vld [vmem:[#allocation3 + $0x20] sm:$0xff] }
 0x28b   : > { %2160 = vst.msk [vmem:[#allocation3 + $0xf0] sm:$0xff] %vm668_vm2, %v2128_v40  ;;  %v6504_v45 = vpop.f32.mrb[64].mxu1  ;;  %v8697_v5 = vpop.f32.mrb[126].mxu0  ;;  %v2671_v29 = vadd.f32 %v2639_v38, %v8406_v4  ;;  %v3035_v4 = vld [vmem:[#allocation3 + $0x18] sm:$0xff]  ;;  %v9284_v23 = vld [vmem:[#allocation8_spill] sm:$0xff] }
 0x28c   : > { %v3065_v13 = vadd.f32 %v6504_v45, %v3033_v44  ;;  %v2873_v19 = vpop.f32.mrb[65].mxu1  ;;  %v8700_v63 = vpop.f32.mrb[127].mxu0  ;;  %2704 = vst.msk [vmem:[#allocation3 + $0xd8] sm:$0xff] %vm668_vm2, %v2672_v62  ;;  %v9285_v45 = vld [vmem:[#allocation12_spill] sm:$0xff] }
 0x28d   : > { %v3064_v8 = vadd.f32 %v3032_v25, %v2873_v19  ;;  %2703 = vst.msk [vmem:[#allocation3 + $0xd0] sm:$0xff] %vm668_vm2, %v2671_v29  ;;  %v2642_v15 = vld [vmem:[#allocation3 + $0xe8] sm:$0xff]  ;;  %v3039_v19 = vld [vmem:[#allocation3 + $0x38] sm:$0xff] }
 0x28e   : > { %3097 = vst.msk [vmem:[#allocation3 + $0x8] sm:$0xff] %vm668_vm2, %v3065_v13  ;;  %v2674_v47 = vadd.f32 %v8419_v16, %v2642_v15  ;;  %v2641_v41 = vld [vmem:[#allocation3 + $0xe0] sm:$0xff] }
 0x28f   : > { %3096 = vst.msk [vmem:[#allocation3] sm:$0xff] %vm668_vm2, %v3064_v8  ;;  %v6507_v9 = vpop.f32.mrb[66].mxu1  ;;  %v8707_v18 = vpop.f32.mrb[128].mxu0  ;;  %v2673_v10 = vadd.f32 %v2641_v41, %v8426_v27  ;;  %v3037_v27 = vld [vmem:[#allocation3 + $0x28] sm:$0xff]  ;;  %v3038_v41 = vld [vmem:[#allocation3 + $0x30] sm:$0xff] }
 0x290   : > { %v3067_v53 = vadd.f32 %v6507_v9, %v3035_v4  ;;  %v2883_v35 = vpop.f32.mrb[67].mxu1  ;;  %v8710_v6 = vpop.f32.mrb[129].mxu0  ;;  %2706 = vst.msk [vmem:[#allocation3 + $0xe8] sm:$0xff] %vm668_vm2, %v2674_v47 }
 0x291   : > { %v3066_v20 = vadd.f32 %v3034_v36, %v2883_v35  ;;  %2705 = vst.msk [vmem:[#allocation3 + $0xe0] sm:$0xff] %vm668_vm2, %v2673_v10  ;;  %v2644_v16 = vld [vmem:[#allocation3 + $0xf8] sm:$0xff] }
 0x292   : > { %3099 = vst.msk [vmem:[#allocation3 + $0x18] sm:$0xff] %vm668_vm2, %v3067_v53  ;;  %v2676_v28 = vadd.f32 %v8442_v61, %v2644_v16  ;;  %v2643_v55 = vld [vmem:[#allocation3 + $0xf0] sm:$0xff] }
 0x293   : > { %3098 = vst.msk [vmem:[#allocation3 + $0x10] sm:$0xff] %vm668_vm2, %v3066_v20  ;;  %v6510_v46 = vpop.f32.mrb[68].mxu1  ;;  %v8717_v39 = vpop.f32.mrb[130].mxu0  ;;  %v2675_v43 = vadd.f32 %v2643_v55, %v9284_v23 }
 0x294   : > { %v3069_v50 = vadd.f32 %v6510_v46, %v3037_v27  ;;  %v2893_v40 = vpop.f32.mrb[69].mxu1  ;;  %v8720_v62 = vpop.f32.mrb[131].mxu0  ;;  %2708 = vst.msk [vmem:[#allocation3 + $0xf8] sm:$0xff] %vm668_vm2, %v2676_v28  ;;  %v3040_v46 = vld [vmem:[#allocation3 + $0x40] sm:$0xff] }
 0x295   : > { %v3068_v38 = vadd.f32 %v3036_v37, %v2893_v40  ;;  %2707 = vst.msk [vmem:[#allocation3 + $0xf0] sm:$0xff] %vm668_vm2, %v2675_v43  ;;  %v3548_v61 = vld [vmem:[#allocation3 + $0x8] sm:$0xff] }
 0x296   : > { %3101 = vst.msk [vmem:[#allocation3 + $0x28] sm:$0xff] %vm668_vm2, %v3069_v50  ;;  %v3580_v44 = vadd.f32 %v9285_v45, %v3548_v61  ;;  %v3547_v29 = vld [vmem:[#allocation3] sm:$0xff] }
 0x297   : > { %3100 = vst.msk [vmem:[#allocation3 + $0x20] sm:$0xff] %vm668_vm2, %v3068_v38  ;;  %v6513_v13 = vpop.f32.mrb[70].mxu1  ;;  %v8727_v25 = vpop.f32.mrb[132].mxu0  ;;  %v3579_v8 = vadd.f32 %v3547_v29, %v8465_v33  ;;  %v3041_v33 = vld [vmem:[#allocation3 + $0x48] sm:$0xff] }
 0x298   : > { %v3071_v15 = vadd.f32 %v6513_v13, %v3039_v19  ;;  %v2903_v47 = vpop.f32.mrb[71].mxu1  ;;  %v8730_v9 = vpop.f32.mrb[133].mxu0  ;;  %3612 = vst.msk [vmem:[#allocation3 + $0x8] sm:$0xff] %vm668_vm2, %v3580_v44  ;;  %v3042_v44 = vld [vmem:[#allocation3 + $0x50] sm:$0xff] }
 0x299   : > { %v3070_v4 = vadd.f32 %v3038_v41, %v2903_v47  ;;  %3611 = vst.msk [vmem:[#allocation3] sm:$0xff] %vm668_vm2, %v3579_v8  ;;  %v3550_v10 = vld [vmem:[#allocation3 + $0x18] sm:$0xff] }
 0x29a   : > { %3103 = vst.msk [vmem:[#allocation3 + $0x38] sm:$0xff] %vm668_vm2, %v3071_v15  ;;  %v3582_v53 = vadd.f32 %v8479_v24, %v3550_v10  ;;  %v3549_v35 = vld [vmem:[#allocation3 + $0x10] sm:$0xff] }
 0x29b   : > { %3102 = vst.msk [vmem:[#allocation3 + $0x30] sm:$0xff] %vm668_vm2, %v3070_v4  ;;  %v6516_v36 = vpop.f32.mrb[72].mxu1  ;;  %v8737_v20 = vpop.f32.mrb[134].mxu0  ;;  %v3581_v16 = vadd.f32 %v3549_v35, %v8484_v52  ;;  %v3043_v52 = vld [vmem:[#allocation3 + $0x58] sm:$0xff] }
 0x29c   : > { %v3073_v28 = vadd.f32 %v6516_v36, %v3041_v33  ;;  %v2913_v55 = vpop.f32.mrb[73].mxu1  ;;  %v8740_v27 = vpop.f32.mrb[135].mxu0  ;;  %3614 = vst.msk [vmem:[#allocation3 + $0x18] sm:$0xff] %vm668_vm2, %v3582_v53  ;;  %v3044_v53 = vld [vmem:[#allocation3 + $0x60] sm:$0xff] }
 0x29d   : > { %v3072_v23 = vadd.f32 %v3040_v46, %v2913_v55  ;;  %3613 = vst.msk [vmem:[#allocation3 + $0x10] sm:$0xff] %vm668_vm2, %v3581_v16  ;;  %v3552_v24 = vld [vmem:[#allocation3 + $0x28] sm:$0xff] }
 0x29e   : > { %3105 = vst.msk [vmem:[#allocation3 + $0x48] sm:$0xff] %vm668_vm2, %v3073_v28  ;;  %v3584_v43 = vadd.f32 %v8496_v0, %v3552_v24  ;;  %v3551_v50 = vld [vmem:[#allocation3 + $0x20] sm:$0xff] }
 0x29f   : > { %3104 = vst.msk [vmem:[#allocation3 + $0x40] sm:$0xff] %vm668_vm2, %v3072_v23  ;;  %v6519_v40 = vpop.f32.mrb[74].mxu1  ;;  %v8747_v37 = vpop.f32.mrb[136].mxu0  ;;  %v3583_v38 = vadd.f32 %v3551_v50, %v8502_v2  ;;  %v3045_v2 = vld [vmem:[#allocation3 + $0x68] sm:$0xff] }
 0x2a0   : > { %v3075_v61 = vadd.f32 %v6519_v40, %v3043_v52  ;;  %v2923_v45 = vpop.f32.mrb[75].mxu1  ;;  %v8750_v29 = vpop.f32.mrb[137].mxu0  ;;  %3616 = vst.msk [vmem:[#allocation3 + $0x28] sm:$0xff] %vm668_vm2, %v3584_v43  ;;  %v3046_v43 = vld [vmem:[#allocation3 + $0x70] sm:$0xff] }
 0x2a1   : > { %v3074_v13 = vadd.f32 %v3042_v44, %v2923_v45  ;;  %3615 = vst.msk [vmem:[#allocation3 + $0x20] sm:$0xff] %vm668_vm2, %v3583_v38  ;;  %v3554_v0 = vld [vmem:[#allocation3 + $0x38] sm:$0xff] }
 0x2a2   : > { %3107 = vst.msk [vmem:[#allocation3 + $0x58] sm:$0xff] %vm668_vm2, %v3075_v61  ;;  %v3586_v19 = vadd.f32 %v8516_v34, %v3554_v0  ;;  %v3553_v8 = vld [vmem:[#allocation3 + $0x30] sm:$0xff] }
 0x2a3   : > { %3106 = vst.msk [vmem:[#allocation3 + $0x50] sm:$0xff] %vm668_vm2, %v3074_v13  ;;  %v6522_v15 = vpop.f32.mrb[76].mxu1  ;;  %v8757_v47 = vpop.f32.mrb[138].mxu0  ;;  %v3585_v41 = vadd.f32 %v3553_v8, %v8522_v48  ;;  %v3047_v48 = vld [vmem:[#allocation3 + $0x78] sm:$0xff] }
 0x2a4   : > { %v3077_v4 = vadd.f32 %v6522_v15, %v3045_v2  ;;  %v2933_v10 = vpop.f32.mrb[77].mxu1  ;;  %v8760_v35 = vpop.f32.mrb[139].mxu0  ;;  %3618 = vst.msk [vmem:[#allocation3 + $0x38] sm:$0xff] %vm668_vm2, %v3586_v19  ;;  %v3048_v19 = vld [vmem:[#allocation3 + $0x80] sm:$0xff] }
 0x2a5   : > { %v3076_v36 = vadd.f32 %v3044_v53, %v2933_v10  ;;  %3617 = vst.msk [vmem:[#allocation3 + $0x30] sm:$0xff] %vm668_vm2, %v3585_v41  ;;  %v3556_v34 = vld [vmem:[#allocation3 + $0x48] sm:$0xff] }
 0x2a6   : > { %3109 = vst.msk [vmem:[#allocation3 + $0x68] sm:$0xff] %vm668_vm2, %v3077_v4  ;;  %v3588_v33 = vadd.f32 %v8536_v54, %v3556_v34  ;;  %v3555_v16 = vld [vmem:[#allocation3 + $0x40] sm:$0xff] }
 0x2a7   : > { %3108 = vst.msk [vmem:[#allocation3 + $0x60] sm:$0xff] %vm668_vm2, %v3076_v36  ;;  %v6525_v28 = vpop.f32.mrb[78].mxu1  ;;  %v8767_v55 = vpop.f32.mrb[140].mxu0  ;;  %v3587_v46 = vadd.f32 %v3555_v16, %v8542_v3  ;;  %v3049_v3 = vld [vmem:[#allocation3 + $0x88] sm:$0xff] }
 0x2a8   : > { %v3079_v23 = vadd.f32 %v6525_v28, %v3047_v48  ;;  %v2943_v24 = vpop.f32.mrb[79].mxu1  ;;  %v8770_v50 = vpop.f32.mrb[141].mxu0  ;;  %3620 = vst.msk [vmem:[#allocation3 + $0x48] sm:$0xff] %vm668_vm2, %v3588_v33  ;;  %v3050_v33 = vld [vmem:[#allocation3 + $0x90] sm:$0xff] }
 0x2a9   : > { %v3078_v40 = vadd.f32 %v3046_v43, %v2943_v24  ;;  %3619 = vst.msk [vmem:[#allocation3 + $0x40] sm:$0xff] %vm668_vm2, %v3587_v46  ;;  %v3558_v54 = vld [vmem:[#allocation3 + $0x58] sm:$0xff] }
 0x2aa   : > { %3111 = vst.msk [vmem:[#allocation3 + $0x78] sm:$0xff] %vm668_vm2, %v3079_v23  ;;  %v3590_v52 = vadd.f32 %v8555_v11, %v3558_v54  ;;  %v3557_v38 = vld [vmem:[#allocation3 + $0x50] sm:$0xff] }
 0x2ab   : > { %3110 = vst.msk [vmem:[#allocation3 + $0x70] sm:$0xff] %vm668_vm2, %v3078_v40  ;;  %v6528_v61 = vpop.f32.mrb[80].mxu1  ;;  %v8777_v45 = vpop.f32.mrb[142].mxu0  ;;  %v3589_v44 = vadd.f32 %v3557_v38, %v8561_v49  ;;  %v3051_v49 = vld [vmem:[#allocation3 + $0x98] sm:$0xff] }
 0x2ac   : > { %v3081_v13 = vadd.f32 %v6528_v61, %v3049_v3  ;;  %v2953_v0 = vpop.f32.mrb[81].mxu1  ;;  %v8780_v8 = vpop.f32.mrb[143].mxu0  ;;  %3622 = vst.msk [vmem:[#allocation3 + $0x58] sm:$0xff] %vm668_vm2, %v3590_v52  ;;  %v3052_v52 = vld [vmem:[#allocation3 + $0xa0] sm:$0xff] }
 0x2ad   : > { %v3080_v15 = vadd.f32 %v3048_v19, %v2953_v0  ;;  %3621 = vst.msk [vmem:[#allocation3 + $0x50] sm:$0xff] %vm668_vm2, %v3589_v44  ;;  %v3560_v11 = vld [vmem:[#allocation3 + $0x68] sm:$0xff] }
 0x2ae   : > { %3113 = vst.msk [vmem:[#allocation3 + $0x88] sm:$0xff] %vm668_vm2, %v3081_v13  ;;  %v3592_v2 = vadd.f32 %v8575_v14, %v3560_v11  ;;  %v3559_v41 = vld [vmem:[#allocation3 + $0x60] sm:$0xff] }
 0x2af   : > { %3112 = vst.msk [vmem:[#allocation3 + $0x80] sm:$0xff] %vm668_vm2, %v3080_v15  ;;  %v6531_v4 = vpop.f32.mrb[82].mxu1  ;;  %v8787_v10 = vpop.f32.mrb[144].mxu0  ;;  %v3591_v53 = vadd.f32 %v3559_v41, %v8580_v42  ;;  %v3053_v42 = vld [vmem:[#allocation3 + $0xa8] sm:$0xff] }
 0x2b0   : > { %v3083_v36 = vadd.f32 %v6531_v4, %v3051_v49  ;;  %v2963_v34 = vpop.f32.mrb[83].mxu1  ;;  %v8790_v16 = vpop.f32.mrb[145].mxu0  ;;  %3624 = vst.msk [vmem:[#allocation3 + $0x68] sm:$0xff] %vm668_vm2, %v3592_v2  ;;  %v3054_v2 = vld [vmem:[#allocation3 + $0xb0] sm:$0xff] }
 0x2b1   : > { %v3082_v28 = vadd.f32 %v3050_v33, %v2963_v34  ;;  %3623 = vst.msk [vmem:[#allocation3 + $0x60] sm:$0xff] %vm668_vm2, %v3591_v53  ;;  %v3562_v14 = vld [vmem:[#allocation3 + $0x78] sm:$0xff] }
 0x2b2   : > { %3115 = vst.msk [vmem:[#allocation3 + $0x98] sm:$0xff] %vm668_vm2, %v3083_v36  ;;  %v3594_v48 = vadd.f32 %v8595_v59, %v3562_v14  ;;  %v3561_v46 = vld [vmem:[#allocation3 + $0x70] sm:$0xff] }
 0x2b3   : > { %3114 = vst.msk [vmem:[#allocation3 + $0x90] sm:$0xff] %vm668_vm2, %v3082_v28  ;;  %v6534_v23 = vpop.f32.mrb[84].mxu1  ;;  %v8797_v24 = vpop.f32.mrb[146].mxu0  ;;  %v3593_v43 = vadd.f32 %v3561_v46, %v8600_v60  ;;  %v3055_v60 = vld [vmem:[#allocation3 + $0xb8] sm:$0xff] }
 0x2b4   : > { %v3085_v40 = vadd.f32 %v6534_v23, %v3053_v42  ;;  %v2973_v54 = vpop.f32.mrb[85].mxu1  ;;  %v8800_v38 = vpop.f32.mrb[147].mxu0  ;;  %3626 = vst.msk [vmem:[#allocation3 + $0x78] sm:$0xff] %vm668_vm2, %v3594_v48  ;;  %v3056_v48 = vld [vmem:[#allocation3 + $0xc0] sm:$0xff] }
 0x2b5   : > { %v3084_v61 = vadd.f32 %v3052_v52, %v2973_v54  ;;  %3625 = vst.msk [vmem:[#allocation3 + $0x70] sm:$0xff] %vm668_vm2, %v3593_v43  ;;  %v3564_v59 = vld [vmem:[#allocation3 + $0x88] sm:$0xff] }
 0x2b6   : > { %3117 = vst.msk [vmem:[#allocation3 + $0xa8] sm:$0xff] %vm668_vm2, %v3085_v40  ;;  %v3596_v3 = vadd.f32 %v8616_v7, %v3564_v59  ;;  %v3563_v44 = vld [vmem:[#allocation3 + $0x80] sm:$0xff] }
 0x2b7   : > { %3116 = vst.msk [vmem:[#allocation3 + $0xa0] sm:$0xff] %vm668_vm2, %v3084_v61  ;;  %v6537_v13 = vpop.f32.mrb[86].mxu1  ;;  %v8807_v0 = vpop.f32.mrb[148].mxu0  ;;  %v3595_v19 = vadd.f32 %v3563_v44, %v8621_v31  ;;  %v3057_v31 = vld [vmem:[#allocation3 + $0xc8] sm:$0xff] }
 0x2b8   : > { %v3087_v15 = vadd.f32 %v6537_v13, %v3055_v60  ;;  %v2983_v11 = vpop.f32.mrb[87].mxu1  ;;  %v8810_v41 = vpop.f32.mrb[149].mxu0  ;;  %3628 = vst.msk [vmem:[#allocation3 + $0x88] sm:$0xff] %vm668_vm2, %v3596_v3  ;;  %v3058_v3 = vld [vmem:[#allocation3 + $0xd0] sm:$0xff] }
 0x2b9   : > { %v3086_v4 = vadd.f32 %v3054_v2, %v2983_v11  ;;  %3627 = vst.msk [vmem:[#allocation3 + $0x80] sm:$0xff] %vm668_vm2, %v3595_v19  ;;  %v3566_v7 = vld [vmem:[#allocation3 + $0x98] sm:$0xff] }
 0x2ba   : > { %3119 = vst.msk [vmem:[#allocation3 + $0xb8] sm:$0xff] %vm668_vm2, %v3087_v15  ;;  %v3598_v49 = vadd.f32 %v8634_v57, %v3566_v7  ;;  %v3565_v53 = vld [vmem:[#allocation3 + $0x90] sm:$0xff] }
 0x2bb   : > { %3118 = vst.msk [vmem:[#allocation3 + $0xb0] sm:$0xff] %vm668_vm2, %v3086_v4  ;;  %v6540_v36 = vpop.f32.mrb[88].mxu1  ;;  %v8817_v34 = vpop.f32.mrb[150].mxu0  ;;  %v3597_v33 = vadd.f32 %v3565_v53, %v8639_v30  ;;  %v3059_v30 = vld [vmem:[#allocation3 + $0xd8] sm:$0xff] }
 0x2bc   : > { %v3089_v28 = vadd.f32 %v6540_v36, %v3057_v31  ;;  %v2993_v14 = vpop.f32.mrb[89].mxu1  ;;  %v8820_v46 = vpop.f32.mrb[151].mxu0  ;;  %3630 = vst.msk [vmem:[#allocation3 + $0x98] sm:$0xff] %vm668_vm2, %v3598_v49  ;;  %v3060_v49 = vld [vmem:[#allocation3 + $0xe0] sm:$0xff] }
 0x2bd   : > { %v3088_v23 = vadd.f32 %v3056_v48, %v2993_v14  ;;  %3629 = vst.msk [vmem:[#allocation3 + $0x90] sm:$0xff] %vm668_vm2, %v3597_v33  ;;  %v3568_v57 = vld [vmem:[#allocation3 + $0xa8] sm:$0xff] }
 0x2be   : > { %3121 = vst.msk [vmem:[#allocation3 + $0xc8] sm:$0xff] %vm668_vm2, %v3089_v28  ;;  %v3600_v42 = vadd.f32 %v8647_v21, %v3568_v57  ;;  %v3567_v43 = vld [vmem:[#allocation3 + $0xa0] sm:$0xff] }
 0x2bf   : > { %3120 = vst.msk [vmem:[#allocation3 + $0xc0] sm:$0xff] %vm668_vm2, %v3088_v23  ;;  %v6543_v40 = vpop.f32.mrb[90].mxu1  ;;  %v8827_v54 = vpop.f32.mrb[152].mxu0  ;;  %v3599_v52 = vadd.f32 %v3567_v43, %v8650_v32  ;;  %v3061_v32 = vld [vmem:[#allocation3 + $0xe8] sm:$0xff] }
 0x2c0   : > { %v3091_v61 = vadd.f32 %v6543_v40, %v3059_v30  ;;  %v3003_v59 = vpop.f32.mrb[91].mxu1  ;;  %v8830_v44 = vpop.f32.mrb[153].mxu0  ;;  %3632 = vst.msk [vmem:[#allocation3 + $0xa8] sm:$0xff] %vm668_vm2, %v3600_v42  ;;  %v3062_v42 = vld [vmem:[#allocation3 + $0xf0] sm:$0xff] }
 0x2c1   : > { %v3090_v13 = vadd.f32 %v3058_v3, %v3003_v59  ;;  %3631 = vst.msk [vmem:[#allocation3 + $0xa0] sm:$0xff] %vm668_vm2, %v3599_v52  ;;  %v3570_v21 = vld [vmem:[#allocation3 + $0xb8] sm:$0xff] }
 0x2c2   : > { %3123 = vst.msk [vmem:[#allocation3 + $0xd8] sm:$0xff] %vm668_vm2, %v3091_v61  ;;  %v3602_v60 = vadd.f32 %v8657_v1, %v3570_v21  ;;  %v3569_v19 = vld [vmem:[#allocation3 + $0xb0] sm:$0xff] }
 0x2c3   : > { %3122 = vst.msk [vmem:[#allocation3 + $0xd0] sm:$0xff] %vm668_vm2, %v3090_v13  ;;  %v6546_v15 = vpop.f32.mrb[92].mxu1  ;;  %v8837_v11 = vpop.f32.mrb[154].mxu0  ;;  %v3601_v2 = vadd.f32 %v3569_v19, %v8660_v58  ;;  %v3063_v58 = vld [vmem:[#allocation3 + $0xf8] sm:$0xff] }
 0x2c4   : > { %v3093_v4 = vadd.f32 %v6546_v15, %v3061_v32  ;;  %v3013_v7 = vpop.f32.mrb[93].mxu1  ;;  %v8840_v53 = vpop.f32.mrb[155].mxu0  ;;  %3634 = vst.msk [vmem:[#allocation3 + $0xb8] sm:$0xff] %vm668_vm2, %v3602_v60  ;;  %v4094_v60 = vld [vmem:[#allocation3] sm:$0xff] }
 0x2c5   : > { %v3092_v36 = vadd.f32 %v3060_v49, %v3013_v7  ;;  %3633 = vst.msk [vmem:[#allocation3 + $0xb0] sm:$0xff] %vm668_vm2, %v3601_v2  ;;  %v3572_v1 = vld [vmem:[#allocation3 + $0xc8] sm:$0xff] }
 0x2c6   : > { %3125 = vst.msk [vmem:[#allocation3 + $0xe8] sm:$0xff] %vm668_vm2, %v3093_v4  ;;  %v3604_v31 = vadd.f32 %v8667_v17, %v3572_v1  ;;  %v3571_v33 = vld [vmem:[#allocation3 + $0xc0] sm:$0xff]  ;;  %v4097_v4 = vld [vmem:[#allocation3 + $0x18] sm:$0xff]  ;;  %v4096_v1 = vld [vmem:[#allocation3 + $0x10] sm:$0xff] }
 0x2c7   : > { %3124 = vst.msk [vmem:[#allocation3 + $0xe0] sm:$0xff] %vm668_vm2, %v3092_v36  ;;  %v6549_v28 = vpop.f32.mrb[94].mxu1  ;;  %v8847_v14 = vpop.f32.mrb[156].mxu0  ;;  %v3603_v48 = vadd.f32 %v3571_v33, %v8670_v22  ;;  %v4095_v22 = vld [vmem:[#allocation3 + $0x8] sm:$0xff] }
 0x2c8   : > { %v3095_v23 = vadd.f32 %v6549_v28, %v3063_v58  ;;  %v3023_v57 = vpop.f32.mrb[95].mxu1  ;;  %v8850_v43 = vpop.f32.mrb[157].mxu0  ;;  %3636 = vst.msk [vmem:[#allocation3 + $0xc8] sm:$0xff] %vm668_vm2, %v3604_v31 }
 0x2c9   : > { %v3094_v40 = vadd.f32 %v3062_v42, %v3023_v57  ;;  %3635 = vst.msk [vmem:[#allocation3 + $0xc0] sm:$0xff] %vm668_vm2, %v3603_v48  ;;  %v3574_v17 = vld [vmem:[#allocation3 + $0xd8] sm:$0xff]  ;;  %v4099_v48 = vld [vmem:[#allocation3 + $0x28] sm:$0xff]  ;;  %v4098_v42 = vld [vmem:[#allocation3 + $0x20] sm:$0xff] }
 0x2ca   : > { %3127 = vst.msk [vmem:[#allocation3 + $0xf8] sm:$0xff] %vm668_vm2, %v3095_v23  ;;  %v3606_v30 = vadd.f32 %v8677_v51, %v3574_v17  ;;  %v3573_v52 = vld [vmem:[#allocation3 + $0xd0] sm:$0xff] }
 0x2cb   : > { %3126 = vst.msk [vmem:[#allocation3 + $0xf0] sm:$0xff] %vm668_vm2, %v3094_v40  ;;  %v6604_v61 = vpop.f32.mrb[96].mxu1  ;;  %v3605_v59 = vadd.f32 %v3573_v52, %v8680_v56  ;;  %v8858_v3 = vpop.f32.mrb[158].mxu0 }
 0x2cc   : > { %v4127_v13 = vadd.f32 %v6604_v61, %v4095_v22  ;;  %v3935_v21 = vpop.f32.mrb[97].mxu1  ;;  %3638 = vst.msk [vmem:[#allocation3 + $0xd8] sm:$0xff] %vm668_vm2, %v3606_v30  ;;  %v8861_v19 = vpop.f32.mrb[159].mxu0  ;;  %v4101_v61 = vld [vmem:[#allocation3 + $0x38] sm:$0xff] }
 0x2cd   : > { %v4126_v15 = vadd.f32 %v4094_v60, %v3935_v21  ;;  %3637 = vst.msk [vmem:[#allocation3 + $0xd0] sm:$0xff] %vm668_vm2, %v3605_v59  ;;  %v3576_v51 = vld [vmem:[#allocation3 + $0xe8] sm:$0xff] }
 0x2ce   : > { %4159 = vst.msk [vmem:[#allocation3 + $0x8] sm:$0xff] %vm668_vm2, %v4127_v13  ;;  %v3608_v32 = vadd.f32 %v8687_v12, %v3576_v51  ;;  %v3575_v2 = vld [vmem:[#allocation3 + $0xe0] sm:$0xff]  ;;  %v4100_v13 = vld [vmem:[#allocation3 + $0x30] sm:$0xff] }
 0x2cf   : > { %4158 = vst.msk [vmem:[#allocation3] sm:$0xff] %vm668_vm2, %v4126_v15  ;;  %v6607_v56 = vpop.f32.mrb[98].mxu1  ;;  %v3607_v7 = vadd.f32 %v3575_v2, %v8690_v26 }
 0x2d0   : > { %v4129_v49 = vadd.f32 %v6607_v56, %v4097_v4  ;;  %v3945_v36 = vpop.f32.mrb[99].mxu1  ;;  %3640 = vst.msk [vmem:[#allocation3 + $0xe8] sm:$0xff] %vm668_vm2, %v3608_v32  ;;  %v4103_v32 = vld [vmem:[#allocation3 + $0x48] sm:$0xff]  ;;  %v4102_v4 = vld [vmem:[#allocation3 + $0x40] sm:$0xff] }
 0x2d1   : > { %v4128_v31 = vadd.f32 %v4096_v1, %v3945_v36  ;;  %3639 = vst.msk [vmem:[#allocation3 + $0xe0] sm:$0xff] %vm668_vm2, %v3607_v7  ;;  %v3578_v33 = vld [vmem:[#allocation3 + $0xf8] sm:$0xff] }
 0x2d2   : > { %4161 = vst.msk [vmem:[#allocation3 + $0x18] sm:$0xff] %vm668_vm2, %v4129_v49  ;;  %v3610_v12 = vadd.f32 %v8697_v5, %v3578_v33  ;;  %v3577_v28 = vld [vmem:[#allocation3 + $0xf0] sm:$0xff] }
 0x2d3   : > { %4160 = vst.msk [vmem:[#allocation3 + $0x10] sm:$0xff] %vm668_vm2, %v4128_v31  ;;  %v6610_v58 = vpop.f32.mrb[100].mxu1  ;;  %v3609_v26 = vadd.f32 %v3577_v28, %v8700_v63  ;;  %v4105_v31 = vld [vmem:[#allocation3 + $0x58] sm:$0xff]  ;;  %v4104_v28 = vld [vmem:[#allocation3 + $0x50] sm:$0xff] }
 0x2d4   : > { %v4131_v23 = vadd.f32 %v6610_v58, %v4099_v48  ;;  %v3955_v57 = vpop.f32.mrb[101].mxu1  ;;  %3642 = vst.msk [vmem:[#allocation3 + $0xf8] sm:$0xff] %vm668_vm2, %v3610_v12 }
 0x2d5   : > { %v4130_v40 = vadd.f32 %v4098_v42, %v3955_v57  ;;  %3641 = vst.msk [vmem:[#allocation3 + $0xf0] sm:$0xff] %vm668_vm2, %v3609_v26  ;;  %v4514_v17 = vld [vmem:[#allocation3 + $0x8] sm:$0xff] }
 0x2d6   : > { %4163 = vst.msk [vmem:[#allocation3 + $0x28] sm:$0xff] %vm668_vm2, %v4131_v23  ;;  %v4546_v5 = vadd.f32 %v8707_v18, %v4514_v17  ;;  %v4513_v30 = vld [vmem:[#allocation3] sm:$0xff]  ;;  %v4107_v57 = vld [vmem:[#allocation3 + $0x68] sm:$0xff] }
 0x2d7   : > { %4162 = vst.msk [vmem:[#allocation3 + $0x20] sm:$0xff] %vm668_vm2, %v4130_v40  ;;  %v6613_v52 = vpop.f32.mrb[102].mxu1  ;;  %v4545_v63 = vadd.f32 %v4513_v30, %v8710_v6  ;;  %v4106_v17 = vld [vmem:[#allocation3 + $0x60] sm:$0xff] }
 0x2d8   : > { %v4133_v22 = vadd.f32 %v6613_v52, %v4101_v61  ;;  %v3965_v59 = vpop.f32.mrb[103].mxu1  ;;  %4578 = vst.msk [vmem:[#allocation3 + $0x8] sm:$0xff] %vm668_vm2, %v4546_v5 }
 0x2d9   : > { %v4132_v21 = vadd.f32 %v4100_v13, %v3965_v59  ;;  %4577 = vst.msk [vmem:[#allocation3] sm:$0xff] %vm668_vm2, %v4545_v63  ;;  %v4516_v60 = vld [vmem:[#allocation3 + $0x18] sm:$0xff]  ;;  %v4108_v13 = vld [vmem:[#allocation3 + $0x70] sm:$0xff] }
 0x2da   : > { %4165 = vst.msk [vmem:[#allocation3 + $0x38] sm:$0xff] %vm668_vm2, %v4133_v22  ;;  %v4548_v18 = vadd.f32 %v8717_v39, %v4516_v60  ;;  %v4515_v15 = vld [vmem:[#allocation3 + $0x10] sm:$0xff]  ;;  %v4109_v63 = vld [vmem:[#allocation3 + $0x78] sm:$0xff] }
 0x2db   : > { %4164 = vst.msk [vmem:[#allocation3 + $0x30] sm:$0xff] %vm668_vm2, %v4132_v21  ;;  %v6616_v51 = vpop.f32.mrb[104].mxu1  ;;  %v4547_v6 = vadd.f32 %v4515_v15, %v8720_v62 }
 0x2dc   : > { %v4135_v2 = vadd.f32 %v6616_v51, %v4103_v32  ;;  %v3975_v56 = vpop.f32.mrb[105].mxu1  ;;  %4580 = vst.msk [vmem:[#allocation3 + $0x18] sm:$0xff] %vm668_vm2, %v4548_v18  ;;  %v4111_v51 = vld [vmem:[#allocation3 + $0x88] sm:$0xff] }
 0x2dd   : > { %v4134_v7 = vadd.f32 %v4102_v4, %v3975_v56  ;;  %4579 = vst.msk [vmem:[#allocation3 + $0x10] sm:$0xff] %vm668_vm2, %v4547_v6  ;;  %v4518_v49 = vld [vmem:[#allocation3 + $0x28] sm:$0xff] }
 0x2de   : > { %4167 = vst.msk [vmem:[#allocation3 + $0x48] sm:$0xff] %vm668_vm2, %v4135_v2  ;;  %v4550_v39 = vadd.f32 %v8727_v25, %v4518_v49  ;;  %v4517_v36 = vld [vmem:[#allocation3 + $0x20] sm:$0xff] }
 0x2df   : > { %4166 = vst.msk [vmem:[#allocation3 + $0x40] sm:$0xff] %vm668_vm2, %v4134_v7  ;;  %v6619_v1 = vpop.f32.mrb[106].mxu1  ;;  %v4549_v62 = vadd.f32 %v4517_v36, %v8730_v9  ;;  %v4110_v2 = vld [vmem:[#allocation3 + $0x80] sm:$0xff] }
 0x2e0   : > { %v4137_v33 = vadd.f32 %v6619_v1, %v4105_v31  ;;  %v3985_v12 = vpop.f32.mrb[107].mxu1  ;;  %4582 = vst.msk [vmem:[#allocation3 + $0x28] sm:$0xff] %vm668_vm2, %v4550_v39  ;;  %v4113_v39 = vld [vmem:[#allocation3 + $0x98] sm:$0xff]  ;;  %v4112_v31 = vld [vmem:[#allocation3 + $0x90] sm:$0xff] }
 0x2e1   : > { %v4136_v58 = vadd.f32 %v4104_v28, %v3985_v12  ;;  %4581 = vst.msk [vmem:[#allocation3 + $0x20] sm:$0xff] %vm668_vm2, %v4549_v62  ;;  %v4520_v48 = vld [vmem:[#allocation3 + $0x38] sm:$0xff] }
 0x2e2   : > { %4169 = vst.msk [vmem:[#allocation3 + $0x58] sm:$0xff] %vm668_vm2, %v4137_v33  ;;  %v4552_v25 = vadd.f32 %v8737_v20, %v4520_v48  ;;  %v4519_v26 = vld [vmem:[#allocation3 + $0x30] sm:$0xff] }
 0x2e3   : > { %4168 = vst.msk [vmem:[#allocation3 + $0x50] sm:$0xff] %vm668_vm2, %v4136_v58  ;;  %v6622_v23 = vpop.f32.mrb[108].mxu1  ;;  %v4551_v9 = vadd.f32 %v4519_v26, %v8740_v27  ;;  %v4115_v58 = vld [vmem:[#allocation3 + $0xa8] sm:$0xff]  ;;  %v4114_v26 = vld [vmem:[#allocation3 + $0xa0] sm:$0xff] }
 0x2e4   : > { %v4139_v42 = vadd.f32 %v6622_v23, %v4107_v57  ;;  %v3995_v40 = vpop.f32.mrb[109].mxu1  ;;  %4584 = vst.msk [vmem:[#allocation3 + $0x38] sm:$0xff] %vm668_vm2, %v4552_v25 }
 0x2e5   : > { %v4138_v5 = vadd.f32 %v4106_v17, %v3995_v40  ;;  %4583 = vst.msk [vmem:[#allocation3 + $0x30] sm:$0xff] %vm668_vm2, %v4551_v9  ;;  %v4522_v30 = vld [vmem:[#allocation3 + $0x48] sm:$0xff]  ;;  %v4117_v40 = vld [vmem:[#allocation3 + $0xb8] sm:$0xff] }
 0x2e6   : > { %4171 = vst.msk [vmem:[#allocation3 + $0x68] sm:$0xff] %vm668_vm2, %v4139_v42  ;;  %v4554_v20 = vadd.f32 %v8747_v37, %v4522_v30  ;;  %v4521_v52 = vld [vmem:[#allocation3 + $0x40] sm:$0xff]  ;;  %v4116_v30 = vld [vmem:[#allocation3 + $0xb0] sm:$0xff] }
 0x2e7   : > { %4170 = vst.msk [vmem:[#allocation3 + $0x60] sm:$0xff] %vm668_vm2, %v4138_v5  ;;  %v6625_v61 = vpop.f32.mrb[110].mxu1  ;;  %v4553_v27 = vadd.f32 %v4521_v52, %v8750_v29 }
 0x2e8   : > { %v4141_v22 = vadd.f32 %v6625_v61, %v4109_v63  ;;  %v4005_v59 = vpop.f32.mrb[111].mxu1  ;;  %4586 = vst.msk [vmem:[#allocation3 + $0x48] sm:$0xff] %vm668_vm2, %v4554_v20 }
 0x2e9   : > { %v4140_v21 = vadd.f32 %v4108_v13, %v4005_v59  ;;  %4585 = vst.msk [vmem:[#allocation3 + $0x40] sm:$0xff] %vm668_vm2, %v4553_v27  ;;  %v4524_v60 = vld [vmem:[#allocation3 + $0x58] sm:$0xff]  ;;  %v4119_v27 = vld [vmem:[#allocation3 + $0xc8] sm:$0xff]  ;;  %v4118_v13 = vld [vmem:[#allocation3 + $0xc0] sm:$0xff] }
 0x2ea   : > { %4173 = vst.msk [vmem:[#allocation3 + $0x78] sm:$0xff] %vm668_vm2, %v4141_v22  ;;  %v4556_v37 = vadd.f32 %v8757_v47, %v4524_v60  ;;  %v4523_v18 = vld [vmem:[#allocation3 + $0x50] sm:$0xff] }
 0x2eb   : > { %4172 = vst.msk [vmem:[#allocation3 + $0x70] sm:$0xff] %vm668_vm2, %v4140_v21  ;;  %v6628_v15 = vpop.f32.mrb[112].mxu1  ;;  %v4555_v29 = vadd.f32 %v4523_v18, %v8760_v35 }
 0x2ec   : > { %v4143_v32 = vadd.f32 %v6628_v15, %v4111_v51  ;;  %v4015_v6 = vpop.f32.mrb[113].mxu1  ;;  %4588 = vst.msk [vmem:[#allocation3 + $0x58] sm:$0xff] %vm668_vm2, %v4556_v37  ;;  %v4121_v15 = vld [vmem:[#allocation3 + $0xd8] sm:$0xff] }
 0x2ed   : > { %v4142_v56 = vadd.f32 %v4110_v2, %v4015_v6  ;;  %4587 = vst.msk [vmem:[#allocation3 + $0x50] sm:$0xff] %vm668_vm2, %v4555_v29  ;;  %v4526_v4 = vld [vmem:[#allocation3 + $0x68] sm:$0xff] }
 0x2ee   : > { %4175 = vst.msk [vmem:[#allocation3 + $0x88] sm:$0xff] %vm668_vm2, %v4143_v32  ;;  %v4558_v47 = vadd.f32 %v8767_v55, %v4526_v4  ;;  %v4525_v7 = vld [vmem:[#allocation3 + $0x60] sm:$0xff]  ;;  %v4120_v32 = vld [vmem:[#allocation3 + $0xd0] sm:$0xff] }
 0x2ef   : > { %4174 = vst.msk [vmem:[#allocation3 + $0x80] sm:$0xff] %vm668_vm2, %v4142_v56  ;;  %v6631_v49 = vpop.f32.mrb[114].mxu1  ;;  %v4557_v35 = vadd.f32 %v4525_v7, %v8770_v50 }
 0x2f0   : > { %v4145_v36 = vadd.f32 %v6631_v49, %v4113_v39  ;;  %v4025_v1 = vpop.f32.mrb[115].mxu1  ;;  %4590 = vst.msk [vmem:[#allocation3 + $0x68] sm:$0xff] %vm668_vm2, %v4558_v47  ;;  %v4123_v47 = vld [vmem:[#allocation3 + $0xe8] sm:$0xff]  ;;  %v4122_v39 = vld [vmem:[#allocation3 + $0xe0] sm:$0xff] }
 0x2f1   : > { %v4144_v62 = vadd.f32 %v4112_v31, %v4025_v1  ;;  %4589 = vst.msk [vmem:[#allocation3 + $0x60] sm:$0xff] %vm668_vm2, %v4557_v35  ;;  %v4528_v33 = vld [vmem:[#allocation3 + $0x78] sm:$0xff] }
 0x2f2   : > { %4177 = vst.msk [vmem:[#allocation3 + $0x98] sm:$0xff] %vm668_vm2, %v4145_v36  ;;  %v4560_v55 = vadd.f32 %v8777_v45, %v4528_v33  ;;  %v4527_v12 = vld [vmem:[#allocation3 + $0x70] sm:$0xff] }
 0x2f3   : > { %4176 = vst.msk [vmem:[#allocation3 + $0x90] sm:$0xff] %vm668_vm2, %v4144_v62  ;;  %v6634_v28 = vpop.f32.mrb[116].mxu1  ;;  %v4559_v50 = vadd.f32 %v4527_v12, %v8780_v8  ;;  %v4125_v62 = vld [vmem:[#allocation3 + $0xf8] sm:$0xff]  ;;  %v4124_v12 = vld [vmem:[#allocation3 + $0xf0] sm:$0xff] }
 0x2f4   : > { %v4147_v48 = vadd.f32 %v6634_v28, %v4115_v58  ;;  %v4035_v25 = vpop.f32.mrb[117].mxu1  ;;  %4592 = vst.msk [vmem:[#allocation3 + $0x78] sm:$0xff] %vm668_vm2, %v4560_v55 }
 0x2f5   : > { %v4146_v23 = vadd.f32 %v4114_v26, %v4035_v25  ;;  %4591 = vst.msk [vmem:[#allocation3 + $0x70] sm:$0xff] %vm668_vm2, %v4559_v50  ;;  %v4530_v57 = vld [vmem:[#allocation3 + $0x88] sm:$0xff] }
 0x2f6   : > { %4179 = vst.msk [vmem:[#allocation3 + $0xa8] sm:$0xff] %vm668_vm2, %v4147_v48  ;;  %v4562_v45 = vadd.f32 %v8787_v10, %v4530_v57  ;;  %v4529_v9 = vld [vmem:[#allocation3 + $0x80] sm:$0xff]  ;;  %v5029_v25 = vld [vmem:[#allocation3 + $0x8] sm:$0xff] }
 0x2f7   : > { %4178 = vst.msk [vmem:[#allocation3 + $0xa0] sm:$0xff] %vm668_vm2, %v4146_v23  ;;  %v6637_v42 = vpop.f32.mrb[118].mxu1  ;;  %v4561_v8 = vadd.f32 %v4529_v9, %v8790_v16  ;;  %v5028_v57 = vld [vmem:[#allocation3] sm:$0xff] }
 0x2f8   : > { %v4149_v17 = vadd.f32 %v6637_v42, %v4117_v40  ;;  %v4045_v5 = vpop.f32.mrb[119].mxu1  ;;  %4594 = vst.msk [vmem:[#allocation3 + $0x88] sm:$0xff] %vm668_vm2, %v4562_v45 }
 0x2f9   : > { %v4148_v20 = vadd.f32 %v4116_v30, %v4045_v5  ;;  %4593 = vst.msk [vmem:[#allocation3 + $0x80] sm:$0xff] %vm668_vm2, %v4561_v8  ;;  %v4532_v52 = vld [vmem:[#allocation3 + $0x98] sm:$0xff]  ;;  %v5030_v30 = vld [vmem:[#allocation3 + $0x10] sm:$0xff] }
 0x2fa   : > { %4181 = vst.msk [vmem:[#allocation3 + $0xb8] sm:$0xff] %vm668_vm2, %v4149_v17  ;;  %v4564_v10 = vadd.f32 %v8797_v24, %v4532_v52  ;;  %v4531_v61 = vld [vmem:[#allocation3 + $0x90] sm:$0xff]  ;;  %v5031_v8 = vld [vmem:[#allocation3 + $0x18] sm:$0xff] }
 0x2fb   : > { %4180 = vst.msk [vmem:[#allocation3 + $0xb0] sm:$0xff] %vm668_vm2, %v4148_v20  ;;  %v6640_v63 = vpop.f32.mrb[120].mxu1  ;;  %v4563_v16 = vadd.f32 %v4531_v61, %v8800_v38  ;;  %v8971_v61 = vld [vmem:[%s9222_s4] ss:$0 sm:$0xff] }
 0x2fc   : > { %v4151_v22 = vadd.f32 %v6640_v63, %v4119_v27  ;;  %v4055_v59 = vpop.f32.mrb[121].mxu1  ;;  %4596 = vst.msk [vmem:[#allocation3 + $0x98] sm:$0xff] %vm668_vm2, %v4564_v10  ;;  %v5033_v27 = vld [vmem:[#allocation3 + $0x28] sm:$0xff] }
 0x2fd   : > { %v4150_v21 = vadd.f32 %v4118_v13, %v4055_v59  ;;  %4595 = vst.msk [vmem:[#allocation3 + $0x90] sm:$0xff] %vm668_vm2, %v4563_v16  ;;  %v4534_v60 = vld [vmem:[#allocation3 + $0xa8] sm:$0xff]  ;;  %v5032_v59 = vld [vmem:[#allocation3 + $0x20] sm:$0xff] }
 0x2fe   : > { %4183 = vst.msk [vmem:[#allocation3 + $0xc8] sm:$0xff] %vm668_vm2, %v4151_v22  ;;  %v4566_v24 = vadd.f32 %v8807_v0, %v4534_v60  ;;  %v4533_v37 = vld [vmem:[#allocation3 + $0xa0] sm:$0xff] }
 0x2ff   : > { %4182 = vst.msk [vmem:[#allocation3 + $0xc0] sm:$0xff] %vm668_vm2, %v4150_v21  ;;  %v6643_v18 = vpop.f32.mrb[122].mxu1  ;;  %v4565_v38 = vadd.f32 %v4533_v37, %v8810_v41  ;;  %v5035_v37 = vld [vmem:[#allocation3 + $0x38] sm:$0xff] }
 0x300   : > { %v4153_v51 = vadd.f32 %v6643_v18, %v4121_v15  ;;  %v4065_v29 = vpop.f32.mrb[123].mxu1  ;;  %4598 = vst.msk [vmem:[#allocation3 + $0xa8] sm:$0xff] %vm668_vm2, %v4566_v24 }
 0x301   : > { %v4152_v6 = vadd.f32 %v4120_v32, %v4065_v29  ;;  %4597 = vst.msk [vmem:[#allocation3 + $0xa0] sm:$0xff] %vm668_vm2, %v4565_v38  ;;  %v4536_v2 = vld [vmem:[#allocation3 + $0xb8] sm:$0xff] }
 0x302   : > { %4185 = vst.msk [vmem:[#allocation3 + $0xd8] sm:$0xff] %vm668_vm2, %v4153_v51  ;;  %v4568_v0 = vadd.f32 %v8817_v34, %v4536_v2  ;;  %v4535_v56 = vld [vmem:[#allocation3 + $0xb0] sm:$0xff] }
 0x303   : > { %4184 = vst.msk [vmem:[#allocation3 + $0xd0] sm:$0xff] %vm668_vm2, %v4152_v6  ;;  %v6646_v4 = vpop.f32.mrb[124].mxu1  ;;  %v4567_v41 = vadd.f32 %v4535_v56, %v8820_v46  ;;  %v5034_v51 = vld [vmem:[#allocation3 + $0x30] sm:$0xff] }
 0x304   : > { %v4155_v7 = vadd.f32 %v6646_v4, %v4123_v47  ;;  %v4075_v49 = vpop.f32.mrb[125].mxu1  ;;  %4600 = vst.msk [vmem:[#allocation3 + $0xb8] sm:$0xff] %vm668_vm2, %v4568_v0 }
 0x305   : > { %v4154_v35 = vadd.f32 %v4122_v39, %v4075_v49  ;;  %4599 = vst.msk [vmem:[#allocation3 + $0xb0] sm:$0xff] %vm668_vm2, %v4567_v41  ;;  %v4538_v36 = vld [vmem:[#allocation3 + $0xc8] sm:$0xff] }
 0x306   : > { %4187 = vst.msk [vmem:[#allocation3 + $0xe8] sm:$0xff] %vm668_vm2, %v4155_v7  ;;  %v4570_v34 = vadd.f32 %v8827_v54, %v4538_v36  ;;  %v4537_v1 = vld [vmem:[#allocation3 + $0xc0] sm:$0xff]  ;;  %v5037_v39 = vld [vmem:[#allocation3 + $0x48] sm:$0xff] }
 0x307   : > { %4186 = vst.msk [vmem:[#allocation3 + $0xe0] sm:$0xff] %vm668_vm2, %v4154_v35  ;;  %v6649_v31 = vpop.f32.mrb[126].mxu1  ;;  %v4569_v46 = vadd.f32 %v4537_v1, %v8830_v44  ;;  %v5036_v1 = vld [vmem:[#allocation3 + $0x40] sm:$0xff] }
 0x308   : > { %v4157_v33 = vadd.f32 %v6649_v31, %v4125_v62  ;;  %v4085_v55 = vpop.f32.mrb[127].mxu1  ;;  %4602 = vst.msk [vmem:[#allocation3 + $0xc8] sm:$0xff] %vm668_vm2, %v4570_v34 }
 0x309   : > { %v4156_v28 = vadd.f32 %v4124_v12, %v4085_v55  ;;  %4601 = vst.msk [vmem:[#allocation3 + $0xc0] sm:$0xff] %vm668_vm2, %v4569_v46  ;;  %v4540_v58 = vld [vmem:[#allocation3 + $0xd8] sm:$0xff] }
 0x30a   : > { %4189 = vst.msk [vmem:[#allocation3 + $0xf8] sm:$0xff] %vm668_vm2, %v4157_v33  ;;  %v4572_v54 = vadd.f32 %v8837_v11, %v4540_v58  ;;  %v4539_v50 = vld [vmem:[#allocation3 + $0xd0] sm:$0xff] }
 0x30b   : > { %4188 = vst.msk [vmem:[#allocation3 + $0xf0] sm:$0xff] %vm668_vm2, %v4156_v28  ;;  %v6704_v48 = vpop.f32.mrb[128].mxu1  ;;  %v4571_v44 = vadd.f32 %v4539_v50, %v8840_v53 }
 0x30c   : > { %v5061_v26 = vadd.f32 %v6704_v48, %v5029_v25  ;;  %v4869_v23 = vpop.f32.mrb[129].mxu1  ;;  %4604 = vst.msk [vmem:[#allocation3 + $0xd8] sm:$0xff] %vm668_vm2, %v4572_v54 }
 0x30d   : > { %v5060_v45 = vadd.f32 %v5028_v57, %v4869_v23  ;;  %4603 = vst.msk [vmem:[#allocation3 + $0xd0] sm:$0xff] %vm668_vm2, %v4571_v44  ;;  %v4542_v9 = vld [vmem:[#allocation3 + $0xe8] sm:$0xff] }
 0x30e   : > { %5093 = vst.msk [vmem:[#allocation3 + $0x8] sm:$0xff] %vm668_vm2, %v5061_v26  ;;  %v4574_v11 = vadd.f32 %v8847_v14, %v4542_v9  ;;  %v4541_v42 = vld [vmem:[#allocation3 + $0xe0] sm:$0xff]  ;;  %v5039_v26 = vld [vmem:[#allocation3 + $0x58] sm:$0xff] }
 0x30f   : > { %5092 = vst.msk [vmem:[#allocation3] sm:$0xff] %vm668_vm2, %v5060_v45  ;;  %v6707_v40 = vpop.f32.mrb[130].mxu1  ;;  %v4573_v53 = vadd.f32 %v4541_v42, %v8850_v43  ;;  %v5038_v42 = vld [vmem:[#allocation3 + $0x50] sm:$0xff] }
 0x310   : > { %v5063_v17 = vadd.f32 %v6707_v40, %v5031_v8  ;;  %v4879_v5 = vpop.f32.mrb[131].mxu1  ;;  %4606 = vst.msk [vmem:[#allocation3 + $0xe8] sm:$0xff] %vm668_vm2, %v4574_v11 }
 0x311   : > { %v5062_v20 = vadd.f32 %v5030_v30, %v4879_v5  ;;  %v4544_v52 = vld [vmem:[#allocation3 + $0xf8] sm:$0xff]  ;;  %4605 = vst.msk [vmem:[#allocation3 + $0xe0] sm:$0xff] %vm668_vm2, %v4573_v53 }
 0x312   : > { %5095 = vst.msk [vmem:[#allocation3 + $0x18] sm:$0xff] %vm668_vm2, %v5063_v17  ;;  %v4576_v14 = vadd.f32 %v8858_v3, %v4544_v52  ;;  %v4543_v10 = vld [vmem:[#allocation3 + $0xf0] sm:$0xff] }
 0x313   : > { %5094 = vst.msk [vmem:[#allocation3 + $0x10] sm:$0xff] %vm668_vm2, %v5062_v20  ;;  %v4575_v43 = vadd.f32 %v4543_v10, %v8861_v19  ;;  %v6710_v63 = vpop.f32.mrb[132].mxu1 }
 0x314   : > { %4608 = vst.msk [vmem:[#allocation3 + $0xf8] sm:$0xff] %vm668_vm2, %v4576_v14  ;;  %v5065_v16 = vadd.f32 %v6710_v63, %v5033_v27  ;;  %v4889_v22 = vpop.f32.mrb[133].mxu1 }
 0x315   : > { %v5125_v13 = vld [vmem:[#allocation3 + $0x8] sm:$0xff]  ;;  %4607 = vst.msk [vmem:[#allocation3 + $0xf0] sm:$0xff] %vm668_vm2, %v4575_v43  ;;  %v5064_v3 = vadd.f32 %v5032_v59, %v4889_v22 }
 0x316   : > { %v5164_v21 = vadd.f32 %v8971_v61, %v5125_v13  ;;  %v5124_v60 = vld [vmem:[#allocation3] sm:$0xff]  ;;  %5097 = vst.msk [vmem:[#allocation3 + $0x28] sm:$0xff] %vm668_vm2, %v5065_v16  ;;  %v5041_v59 = vld [vmem:[#allocation3 + $0x68] sm:$0xff] }
 0x317   : > { %v5163_v19 = vadd.f32 %v8971_v61, %v5124_v60  ;;  %5096 = vst.msk [vmem:[#allocation3 + $0x20] sm:$0xff] %vm668_vm2, %v5064_v3  ;;  %v6713_v24 = vpop.f32.mrb[134].mxu1 }
 0x318   : > { %v5196_v18 = vmax.f32 %v5164_v21, 0.0  ;;  %v5067_v15 = vadd.f32 %v6713_v24, %v5035_v37  ;;  %v4899_v38 = vpop.f32.mrb[135].mxu1  ;;  %v5040_v24 = vld [vmem:[#allocation3 + $0x60] sm:$0xff] }
 0x319   : > { %v5195_v29 = vmax.f32 %v5163_v19, 0.0  ;;  %v5127_v32 = vld [vmem:[#allocation3 + $0x18] sm:$0xff]  ;;  %v5066_v6 = vadd.f32 %v5034_v51, %v4899_v38 }
 0x31a   : > { %5228 = vst.msk [vmem:[%s8983_s21 + $0x8] sm:$0xff] %vm668_vm2, %v5196_v18  ;;  %v5331_v2 = vmul.f32 %v5196_v18, %v5196_v18  ;;  %v5166_v0 = vadd.f32 %v8971_v61, %v5127_v32  ;;  %v5126_v56 = vld [vmem:[#allocation3 + $0x10] sm:$0xff]  ;;  %5099 = vst.msk [vmem:[#allocation3 + $0x38] sm:$0xff] %vm668_vm2, %v5067_v15  ;;  %v5260_v4 = vsel %vm668_vm2, %v5196_v18, 0.0 }
 0x31b   : > { %5227 = vst.msk [vmem:[%s8983_s21] sm:$0xff] %vm668_vm2, %v5195_v29  ;;  %v5259_v47 = vsel %vm668_vm2, %v5195_v29, 0.0  ;;  %v5330_v41 = vmul.f32 %v5195_v29, %v5195_v29  ;;  %v5165_v7 = vadd.f32 %v8971_v61, %v5126_v56  ;;  %5098 = vst.msk [vmem:[#allocation3 + $0x30] sm:$0xff] %vm668_vm2, %v5066_v6  ;;  %v6716_v49 = vpop.f32.mrb[136].mxu1 }
 0x31c   : > { %v5198_v35 = vmax.f32 %v5166_v0, 0.0  ;;  %v5069_v36 = vadd.f32 %v6716_v49, %v5037_v39  ;;  %v4909_v34 = vpop.f32.mrb[137].mxu1  ;;  %v5363_v31 = vsel %vm668_vm2, %v5331_v2, 0.0  ;;  %v5261_v12 = vadd.f32 %v5260_v4, %v5259_v47 }
 0x31d   : > { %v5362_v62 = vsel %vm668_vm2, %v5330_v41, 0.0  ;;  %v5197_v46 = vmax.f32 %v5165_v7, 0.0  ;;  %v5129_v33 = vld [vmem:[#allocation3 + $0x28] sm:$0xff]  ;;  %v5068_v55 = vadd.f32 %v5036_v1, %v4909_v34  ;;  %v5042_v1 = vld [vmem:[#allocation3 + $0x70] sm:$0xff] }
 0x31e   : > { %5230 = vst.msk [vmem:[%s8983_s21 + $0x18] sm:$0xff] %vm668_vm2, %v5198_v35  ;;  %v5333_v28 = vmul.f32 %v5198_v35, %v5198_v35  ;;  %v5168_v58 = vadd.f32 %v8971_v61, %v5129_v33  ;;  %v5128_v54 = vld [vmem:[#allocation3 + $0x20] sm:$0xff]  ;;  %5101 = vst.msk [vmem:[#allocation3 + $0x48] sm:$0xff] %vm668_vm2, %v5069_v36  ;;  %v5364_v23 = vadd.f32 %v5363_v31, %v5362_v62  ;;  %v5264_v40 = vsel %vm668_vm2, %v5198_v35, 0.0  ;;  %v5043_v36 = vld [vmem:[#allocation3 + $0x78] sm:$0xff] }
 0x31f   : > { %5229 = vst.msk [vmem:[%s8983_s21 + $0x10] sm:$0xff] %vm668_vm2, %v5197_v46  ;;  %v5262_v50 = vsel %vm668_vm2, %v5197_v46, 0.0  ;;  %v5332_v48 = vmul.f32 %v5197_v46, %v5197_v46  ;;  %v5167_v25 = vadd.f32 %v8971_v61, %v5128_v54  ;;  %5100 = vst.msk [vmem:[#allocation3 + $0x40] sm:$0xff] %vm668_vm2, %v5068_v55  ;;  %v6719_v44 = vpop.f32.mrb[138].mxu1 }
 0x320   : > { %v5263_v57 = vadd.f32 %v5262_v50, %v5261_v12  ;;  %v5200_v45 = vmax.f32 %v5168_v58, 0.0  ;;  %v5071_v9 = vadd.f32 %v6719_v44, %v5039_v26  ;;  %v4919_v11 = vpop.f32.mrb[139].mxu1  ;;  %v5367_v30 = vsel %vm668_vm2, %v5333_v28, 0.0 }
 0x321   : > { %v5365_v8 = vsel %vm668_vm2, %v5332_v48, 0.0  ;;  %v5199_v53 = vmax.f32 %v5167_v25, 0.0  ;;  %v5131_v17 = vld [vmem:[#allocation3 + $0x38] sm:$0xff]  ;;  %v5070_v5 = vadd.f32 %v5038_v42, %v4919_v11 }
 0x322   : > { %v5366_v20 = vadd.f32 %v5365_v8, %v5364_v23  ;;  %5232 = vst.msk [vmem:[%s8983_s21 + $0x28] sm:$0xff] %vm668_vm2, %v5200_v45  ;;  %v5335_v52 = vmul.f32 %v5200_v45, %v5200_v45  ;;  %v5265_v14 = vadd.f32 %v5264_v40, %v5263_v57  ;;  %v5130_v10 = vld [vmem:[#allocation3 + $0x30] sm:$0xff]  ;;  %5103 = vst.msk [vmem:[#allocation3 + $0x58] sm:$0xff] %vm668_vm2, %v5071_v9  ;;  %v5268_v13 = vsel %vm668_vm2, %v5200_v45, 0.0  ;;  %v5045_v9 = vld [vmem:[#allocation3 + $0x88] sm:$0xff] }
 0x323   : > { %5231 = vst.msk [vmem:[%s8983_s21 + $0x20] sm:$0xff] %vm668_vm2, %v5199_v53  ;;  %v5266_v43 = vsel %vm668_vm2, %v5199_v53, 0.0  ;;  %v5334_v63 = vmul.f32 %v5199_v53, %v5199_v53  ;;  %v5170_v27 = vadd.f32 %v8971_v61, %v5131_v17  ;;  %v5169_v16 = vadd.f32 %v8971_v61, %v5130_v10  ;;  %5102 = vst.msk [vmem:[#allocation3 + $0x50] sm:$0xff] %vm668_vm2, %v5070_v5  ;;  %v6722_v22 = vpop.f32.mrb[140].mxu1  ;;  %v5044_v5 = vld [vmem:[#allocation3 + $0x80] sm:$0xff] }
 0x324   : > { %v5267_v3 = vadd.f32 %v5266_v43, %v5265_v14  ;;  %v5368_v21 = vadd.f32 %v5367_v30, %v5366_v20  ;;  %v5073_v60 = vadd.f32 %v6722_v22, %v5041_v59  ;;  %v4929_v19 = vpop.f32.mrb[141].mxu1  ;;  %v5371_v0 = vsel %vm668_vm2, %v5335_v52, 0.0 }
 0x325   : > { %v5369_v37 = vsel %vm668_vm2, %v5334_v63, 0.0  ;;  %v5202_v18 = vmax.f32 %v5170_v27, 0.0  ;;  %v5201_v15 = vmax.f32 %v5169_v16, 0.0  ;;  %v5133_v38 = vld [vmem:[#allocation3 + $0x48] sm:$0xff]  ;;  %v5072_v51 = vadd.f32 %v5040_v24, %v4929_v19 }
 0x326   : > { %v5370_v29 = vadd.f32 %v5369_v37, %v5368_v21  ;;  %v5269_v32 = vadd.f32 %v5268_v13, %v5267_v3  ;;  %v5172_v6 = vadd.f32 %v8971_v61, %v5133_v38  ;;  %v5132_v2 = vld [vmem:[#allocation3 + $0x40] sm:$0xff]  ;;  %5105 = vst.msk [vmem:[#allocation3 + $0x68] sm:$0xff] %vm668_vm2, %v5073_v60  ;;  %v5047_v60 = vld [vmem:[#allocation3 + $0x98] sm:$0xff] }
 0x327   : > { %5234 = vst.msk [vmem:[%s8983_s21 + $0x38] sm:$0xff] %vm668_vm2, %v5202_v18  ;;  %v5337_v56 = vmul.f32 %v5202_v18, %v5202_v18  ;;  %5233 = vst.msk [vmem:[%s8983_s21 + $0x30] sm:$0xff] %vm668_vm2, %v5201_v15  ;;  %v5270_v4 = vsel %vm668_vm2, %v5201_v15, 0.0  ;;  %v5336_v47 = vmul.f32 %v5201_v15, %v5201_v15  ;;  %v6725_v41 = vpop.f32.mrb[142].mxu1  ;;  %v5171_v35 = vadd.f32 %v8971_v61, %v5132_v2 }
 0x328   : > { %5104 = vst.msk [vmem:[#allocation3 + $0x60] sm:$0xff] %vm668_vm2, %v5072_v51  ;;  %v5271_v7 = vadd.f32 %v5270_v4, %v5269_v32  ;;  %v5372_v49 = vadd.f32 %v5371_v0, %v5370_v29  ;;  %v5204_v39 = vmax.f32 %v5172_v6, 0.0  ;;  %v4939_v34 = vpop.f32.mrb[143].mxu1  ;;  %v5075_v46 = vadd.f32 %v6725_v41, %v5043_v36 }
 0x329   : > { %v5373_v31 = vsel %vm668_vm2, %v5336_v47, 0.0  ;;  %v5135_v62 = vld [vmem:[#allocation3 + $0x58] sm:$0xff]  ;;  %v5074_v33 = vadd.f32 %v5042_v1, %v4939_v34  ;;  %v5272_v55 = vsel %vm668_vm2, %v5202_v18, 0.0  ;;  %v5375_v12 = vsel %vm668_vm2, %v5337_v56, 0.0  ;;  %v5046_v47 = vld [vmem:[#allocation3 + $0x90] sm:$0xff] }
 0x32a   : > { %v5374_v28 = vadd.f32 %v5373_v31, %v5372_v49  ;;  %5236 = vst.msk [vmem:[%s8983_s21 + $0x48] sm:$0xff] %vm668_vm2, %v5204_v39  ;;  %v5203_v58 = vmax.f32 %v5171_v35, 0.0  ;;  %v5134_v54 = vld [vmem:[#allocation3 + $0x50] sm:$0xff]  ;;  %v5339_v50 = vmul.f32 %v5204_v39, %v5204_v39  ;;  %v5273_v48 = vadd.f32 %v5272_v55, %v5271_v7  ;;  %5107 = vst.msk [vmem:[#allocation3 + $0x78] sm:$0xff] %vm668_vm2, %v5075_v46  ;;  %v5049_v46 = vld [vmem:[#allocation3 + $0xa8] sm:$0xff] }
 0x32b   : > { %v5174_v25 = vadd.f32 %v8971_v61, %v5135_v62  ;;  %v5173_v44 = vadd.f32 %v8971_v61, %v5134_v54  ;;  %5106 = vst.msk [vmem:[#allocation3 + $0x70] sm:$0xff] %vm668_vm2, %v5074_v33  ;;  %v6728_v26 = vpop.f32.mrb[144].mxu1  ;;  %v5276_v30 = vsel %vm668_vm2, %v5204_v39, 0.0  ;;  %v5048_v33 = vld [vmem:[#allocation3 + $0xa0] sm:$0xff] }
 0x32c   : > { %5235 = vst.msk [vmem:[%s8983_s21 + $0x40] sm:$0xff] %vm668_vm2, %v5203_v58  ;;  %v5274_v23 = vsel %vm668_vm2, %v5203_v58, 0.0  ;;  %v5338_v57 = vmul.f32 %v5203_v58, %v5203_v58  ;;  %v5376_v45 = vadd.f32 %v5375_v12, %v5374_v28  ;;  %v4949_v11 = vpop.f32.mrb[145].mxu1  ;;  %v5077_v17 = vadd.f32 %v6728_v26, %v5045_v9 }
 0x32d   : > { %v5275_v42 = vadd.f32 %v5274_v23, %v5273_v48  ;;  %v5206_v40 = vmax.f32 %v5174_v25, 0.0  ;;  %v5205_v8 = vmax.f32 %v5173_v44, 0.0  ;;  %v5137_v53 = vld [vmem:[#allocation3 + $0x68] sm:$0xff]  ;;  %v5076_v10 = vadd.f32 %v5044_v5, %v4949_v11 }
 0x32e   : > { %v5377_v20 = vsel %vm668_vm2, %v5338_v57, 0.0  ;;  %v5176_v52 = vadd.f32 %v8971_v61, %v5137_v53  ;;  %v5379_v43 = vsel %vm668_vm2, %v5339_v50, 0.0  ;;  %5109 = vst.msk [vmem:[#allocation3 + $0x88] sm:$0xff] %vm668_vm2, %v5077_v17 }
 0x32f   : > { %v5136_v14 = vld [vmem:[#allocation3 + $0x60] sm:$0xff]  ;;  %v5378_v63 = vadd.f32 %v5377_v20, %v5376_v45  ;;  %5238 = vst.msk [vmem:[%s8983_s21 + $0x58] sm:$0xff] %vm668_vm2, %v5206_v40  ;;  %v5341_v27 = vmul.f32 %v5206_v40, %v5206_v40  ;;  %5237 = vst.msk [vmem:[%s8983_s21 + $0x50] sm:$0xff] %vm668_vm2, %v5205_v8  ;;  %v5277_v16 = vadd.f32 %v5276_v30, %v5275_v42  ;;  %v6731_v22 = vpop.f32.mrb[146].mxu1  ;;  %v5278_v59 = vsel %vm668_vm2, %v5205_v8, 0.0  ;;  %v5051_v42 = vld [vmem:[#allocation3 + $0xb8] sm:$0xff] }
 0x330   : > { %v5340_v13 = vmul.f32 %v5205_v8, %v5205_v8  ;;  %v5208_v3 = vmax.f32 %v5176_v52, 0.0  ;;  %v5175_v21 = vadd.f32 %v8971_v61, %v5136_v14  ;;  %5108 = vst.msk [vmem:[#allocation3 + $0x80] sm:$0xff] %vm668_vm2, %v5076_v10  ;;  %v4959_v19 = vpop.f32.mrb[147].mxu1  ;;  %v5079_v18 = vadd.f32 %v6731_v22, %v5047_v60  ;;  %v5050_v30 = vld [vmem:[#allocation3 + $0xb0] sm:$0xff] }
 0x331   : > { %v5279_v24 = vadd.f32 %v5278_v59, %v5277_v16  ;;  %v5380_v37 = vadd.f32 %v5379_v43, %v5378_v63  ;;  %v5280_v15 = vsel %vm668_vm2, %v5206_v40, 0.0  ;;  %v5139_v32 = vld [vmem:[#allocation3 + $0x78] sm:$0xff]  ;;  %v5383_v7 = vsel %vm668_vm2, %v5341_v27, 0.0 }
 0x332   : > { %v5381_v38 = vsel %vm668_vm2, %v5340_v13, 0.0  ;;  %5240 = vst.msk [vmem:[%s8983_s21 + $0x68] sm:$0xff] %vm668_vm2, %v5208_v3  ;;  %v5343_v51 = vmul.f32 %v5208_v3, %v5208_v3  ;;  %v5207_v29 = vmax.f32 %v5175_v21, 0.0  ;;  %v5138_v6 = vld [vmem:[#allocation3 + $0x70] sm:$0xff]  ;;  %v5178_v56 = vadd.f32 %v8971_v61, %v5139_v32  ;;  %5111 = vst.msk [vmem:[#allocation3 + $0x98] sm:$0xff] %vm668_vm2, %v5079_v18  ;;  %v5053_v21 = vld [vmem:[#allocation3 + $0xc8] sm:$0xff] }
 0x333   : > { %v5382_v2 = vadd.f32 %v5381_v38, %v5380_v37  ;;  %v5281_v0 = vadd.f32 %v5280_v15, %v5279_v24  ;;  %v5177_v4 = vadd.f32 %v8971_v61, %v5138_v6  ;;  %v6734_v41 = vpop.f32.mrb[148].mxu1  ;;  %v5078_v35 = vadd.f32 %v5046_v47, %v4959_v19  ;;  %v5052_v19 = vld [vmem:[#allocation3 + $0xc0] sm:$0xff] }
 0x334   : > { %5239 = vst.msk [vmem:[%s8983_s21 + $0x60] sm:$0xff] %vm668_vm2, %v5207_v29  ;;  %v5282_v49 = vsel %vm668_vm2, %v5207_v29, 0.0  ;;  %v5342_v39 = vmul.f32 %v5207_v29, %v5207_v29  ;;  %v4969_v36 = vpop.f32.mrb[149].mxu1  ;;  %v5210_v31 = vmax.f32 %v5178_v56, 0.0  ;;  %v5284_v55 = vsel %vm668_vm2, %v5208_v3, 0.0 }
 0x335   : > { %v5283_v34 = vadd.f32 %v5282_v49, %v5281_v0  ;;  %v5384_v1 = vadd.f32 %v5383_v7, %v5382_v2  ;;  %v5209_v62 = vmax.f32 %v5177_v4, 0.0  ;;  %v5141_v28 = vld [vmem:[#allocation3 + $0x88] sm:$0xff]  ;;  %5110 = vst.msk [vmem:[#allocation3 + $0x90] sm:$0xff] %vm668_vm2, %v5078_v35  ;;  %v5081_v58 = vadd.f32 %v6734_v41, %v5049_v46  ;;  %v5055_v4 = vld [vmem:[#allocation3 + $0xd8] sm:$0xff] }
 0x336   : > { %v5385_v12 = vsel %vm668_vm2, %v5342_v39, 0.0  ;;  %v5080_v54 = vadd.f32 %v5048_v33, %v4969_v36  ;;  %v5387_v50 = vsel %vm668_vm2, %v5343_v51, 0.0  ;;  %5242 = vst.msk [vmem:[%s8983_s21 + $0x78] sm:$0xff] %vm668_vm2, %v5210_v31  ;;  %v5345_v25 = vmul.f32 %v5210_v31, %v5210_v31  ;;  %v5054_v36 = vld [vmem:[#allocation3 + $0xd0] sm:$0xff] }
 0x337   : > { %v5386_v48 = vadd.f32 %v5385_v12, %v5384_v1  ;;  %5241 = vst.msk [vmem:[%s8983_s21 + $0x70] sm:$0xff] %vm668_vm2, %v5209_v62  ;;  %v5285_v44 = vadd.f32 %v5284_v55, %v5283_v34  ;;  %v5140_v26 = vld [vmem:[#allocation3 + $0x80] sm:$0xff]  ;;  %v6737_v23 = vpop.f32.mrb[150].mxu1  ;;  %v5286_v57 = vsel %vm668_vm2, %v5209_v62, 0.0  ;;  %v5344_v45 = vmul.f32 %v5209_v62, %v5209_v62  ;;  %5113 = vst.msk [vmem:[#allocation3 + $0xa8] sm:$0xff] %vm668_vm2, %v5081_v58 }
 0x338   : > { %v5180_v9 = vadd.f32 %v8971_v61, %v5141_v28  ;;  %v5179_v11 = vadd.f32 %v8971_v61, %v5140_v26  ;;  %5112 = vst.msk [vmem:[#allocation3 + $0xa0] sm:$0xff] %vm668_vm2, %v5080_v54  ;;  %v4979_v40 = vpop.f32.mrb[151].mxu1  ;;  %v5288_v8 = vsel %vm668_vm2, %v5210_v31, 0.0  ;;  %v5083_v5 = vadd.f32 %v6737_v23, %v5051_v42  ;;  %v5057_v54 = vld [vmem:[#allocation3 + $0xe8] sm:$0xff]  ;;  %v5056_v23 = vld [vmem:[#allocation3 + $0xe0] sm:$0xff] }
 0x339   : > { %v5287_v53 = vadd.f32 %v5286_v57, %v5285_v44  ;;  %v5388_v17 = vadd.f32 %v5387_v50, %v5386_v48  ;;  %v5389_v20 = vsel %vm668_vm2, %v5344_v45, 0.0  ;;  %v5143_v10 = vld [vmem:[#allocation3 + $0x98] sm:$0xff]  ;;  %v5082_v43 = vadd.f32 %v5050_v30, %v4979_v40 }
 0x33a   : > { %v5212_v52 = vmax.f32 %v5180_v9, 0.0  ;;  %v5211_v14 = vmax.f32 %v5179_v11, 0.0  ;;  %v5182_v16 = vadd.f32 %v8971_v61, %v5143_v10  ;;  %5115 = vst.msk [vmem:[#allocation3 + $0xb8] sm:$0xff] %vm668_vm2, %v5083_v5  ;;  %v5391_v59 = vsel %vm668_vm2, %v5345_v25, 0.0 }
 0x33b   : > { %v5390_v63 = vadd.f32 %v5389_v20, %v5388_v17  ;;  %v5289_v27 = vadd.f32 %v5288_v8, %v5287_v53  ;;  %v6740_v22 = vpop.f32.mrb[152].mxu1  ;;  %5114 = vst.msk [vmem:[#allocation3 + $0xb0] sm:$0xff] %vm668_vm2, %v5082_v43 }
 0x33c   : > { %5244 = vst.msk [vmem:[%s8983_s21 + $0x88] sm:$0xff] %vm668_vm2, %v5212_v52  ;;  %5243 = vst.msk [vmem:[%s8983_s21 + $0x80] sm:$0xff] %vm668_vm2, %v5211_v14  ;;  %v5290_v13 = vsel %vm668_vm2, %v5211_v14, 0.0  ;;  %v5346_v3 = vmul.f32 %v5211_v14, %v5211_v14  ;;  %v4989_v60 = vpop.f32.mrb[153].mxu1  ;;  %v5214_v37 = vmax.f32 %v5182_v16, 0.0  ;;  %v5142_v18 = vld [vmem:[#allocation3 + $0x90] sm:$0xff]  ;;  %v5085_v15 = vadd.f32 %v6740_v22, %v5053_v21 }
 0x33d   : > { %v5291_v24 = vadd.f32 %v5290_v13, %v5289_v27  ;;  %v5084_v38 = vadd.f32 %v5052_v19, %v4989_v60  ;;  %v5292_v51 = vsel %vm668_vm2, %v5212_v52, 0.0  ;;  %v5181_v29 = vadd.f32 %v8971_v61, %v5142_v18  ;;  %v5059_v14 = vld [vmem:[#allocation3 + $0xf8] sm:$0xff] }
 0x33e   : > { %v5392_v32 = vadd.f32 %v5391_v59, %v5390_v63  ;;  %v5393_v6 = vsel %vm668_vm2, %v5346_v3, 0.0  ;;  %5246 = vst.msk [vmem:[%s8983_s21 + $0x98] sm:$0xff] %vm668_vm2, %v5214_v37  ;;  %v5145_v2 = vld [vmem:[#allocation3 + $0xa8] sm:$0xff]  ;;  %5117 = vst.msk [vmem:[#allocation3 + $0xc8] sm:$0xff] %vm668_vm2, %v5085_v15  ;;  %v5347_v34 = vmul.f32 %v5212_v52, %v5212_v52  ;;  %v5296_v57 = vsel %vm668_vm2, %v5214_v37, 0.0  ;;  %v5058_v59 = vld [vmem:[#allocation3 + $0xf0] sm:$0xff] }
 0x33f   : > { %v5144_v0 = vld [vmem:[#allocation3 + $0xa0] sm:$0xff]  ;;  %5116 = vst.msk [vmem:[#allocation3 + $0xc0] sm:$0xff] %vm668_vm2, %v5084_v38  ;;  %v6743_v56 = vpop.f32.mrb[154].mxu1  ;;  %v5293_v47 = vadd.f32 %v5292_v51, %v5291_v24  ;;  %v5213_v41 = vmax.f32 %v5181_v29, 0.0  ;;  %v5184_v7 = vadd.f32 %v8971_v61, %v5145_v2  ;;  %v5349_v5 = vmul.f32 %v5214_v37, %v5214_v37 }
 0x340   : > { %v5183_v49 = vadd.f32 %v8971_v61, %v5144_v0  ;;  %v5087_v39 = vadd.f32 %v6743_v56, %v5055_v4  ;;  %v4999_v35 = vpop.f32.mrb[155].mxu1  ;;  %v5394_v55 = vadd.f32 %v5393_v6, %v5392_v32  ;;  %v5395_v40 = vsel %vm668_vm2, %v5347_v34, 0.0 }
 0x341   : > { %v5086_v1 = vadd.f32 %v5054_v36, %v4999_v35  ;;  %5245 = vst.msk [vmem:[%s8983_s21 + $0x90] sm:$0xff] %vm668_vm2, %v5213_v41  ;;  %v5216_v31 = vmax.f32 %v5184_v7, 0.0  ;;  %v5147_v46 = vld [vmem:[#allocation3 + $0xb8] sm:$0xff]  ;;  %v5294_v33 = vsel %vm668_vm2, %v5213_v41, 0.0  ;;  %v5348_v12 = vmul.f32 %v5213_v41, %v5213_v41 }
 0x342   : > { %v5215_v62 = vmax.f32 %v5183_v49, 0.0  ;;  %5119 = vst.msk [vmem:[#allocation3 + $0xd8] sm:$0xff] %vm668_vm2, %v5087_v39  ;;  %v5146_v28 = vld [vmem:[#allocation3 + $0xb0] sm:$0xff]  ;;  %v5186_v50 = vadd.f32 %v8971_v61, %v5147_v46  ;;  %v5295_v48 = vadd.f32 %v5294_v33, %v5293_v47  ;;  %v5396_v20 = vadd.f32 %v5395_v40, %v5394_v55 }
 0x343   : > { %5118 = vst.msk [vmem:[#allocation3 + $0xd0] sm:$0xff] %vm668_vm2, %v5086_v1  ;;  %v6746_v58 = vpop.f32.mrb[156].mxu1  ;;  %5248 = vst.msk [vmem:[%s8983_s21 + $0xa8] sm:$0xff] %vm668_vm2, %v5216_v31  ;;  %v5185_v25 = vadd.f32 %v8971_v61, %v5146_v28  ;;  %v5397_v27 = vsel %vm668_vm2, %v5348_v12, 0.0  ;;  %v5300_v13 = vsel %vm668_vm2, %v5216_v31, 0.0  ;;  %v5351_v38 = vmul.f32 %v5216_v31, %v5216_v31 }
 0x344   : > { %5247 = vst.msk [vmem:[%s8983_s21 + $0xa0] sm:$0xff] %vm668_vm2, %v5215_v62  ;;  %v5089_v44 = vadd.f32 %v6746_v58, %v5057_v54  ;;  %v5009_v26 = vpop.f32.mrb[157].mxu1  ;;  %v5298_v45 = vsel %vm668_vm2, %v5215_v62, 0.0  ;;  %v5218_v11 = vmax.f32 %v5186_v50, 0.0  ;;  %v5297_v42 = vadd.f32 %v5296_v57, %v5295_v48 }
 0x345   : > { %v5088_v9 = vadd.f32 %v5056_v23, %v5009_v26  ;;  %v5217_v8 = vmax.f32 %v5185_v25, 0.0  ;;  %v5149_v17 = vld [vmem:[#allocation3 + $0xc8] sm:$0xff]  ;;  %v5350_v30 = vmul.f32 %v5215_v62, %v5215_v62  ;;  %v5398_v51 = vadd.f32 %v5397_v27, %v5396_v20 }
 0x346   : > { %5121 = vst.msk [vmem:[#allocation3 + $0xe8] sm:$0xff] %vm668_vm2, %v5089_v44  ;;  %v5148_v53 = vld [vmem:[#allocation3 + $0xc0] sm:$0xff]  ;;  %v5188_v43 = vadd.f32 %v8971_v61, %v5149_v17  ;;  %5250 = vst.msk [vmem:[%s8983_s21 + $0xb8] sm:$0xff] %vm668_vm2, %v5218_v11  ;;  %v5299_v63 = vadd.f32 %v5298_v45, %v5297_v42  ;;  %v5399_v29 = vsel %vm668_vm2, %v5349_v5, 0.0  ;;  %v5304_v4 = vsel %vm668_vm2, %v5218_v11, 0.0 }
 0x347   : > { %5120 = vst.msk [vmem:[#allocation3 + $0xe0] sm:$0xff] %vm668_vm2, %v5088_v9  ;;  %v6749_v52 = vpop.f32.mrb[158].mxu1  ;;  %v5187_v10 = vadd.f32 %v8971_v61, %v5148_v53  ;;  %5249 = vst.msk [vmem:[%s8983_s21 + $0xb0] sm:$0xff] %vm668_vm2, %v5217_v8  ;;  %v5302_v3 = vsel %vm668_vm2, %v5217_v8, 0.0  ;;  %v5352_v2 = vmul.f32 %v5217_v8, %v5217_v8  ;;  %v5401_v0 = vsel %vm668_vm2, %v5350_v30, 0.0 }
 0x348   : > { %v5091_v16 = vadd.f32 %v6749_v52, %v5059_v14  ;;  %v5019_v22 = vpop.f32.mrb[159].mxu1  ;;  %v5220_v24 = vmax.f32 %v5188_v43, 0.0  ;;  %v5301_v37 = vadd.f32 %v5300_v13, %v5299_v63  ;;  %v5400_v41 = vadd.f32 %v5399_v29, %v5398_v51 }
 0x349   : > { %v5090_v21 = vadd.f32 %v5058_v59, %v5019_v22  ;;  %v5151_v60 = vld [vmem:[#allocation3 + $0xd8] sm:$0xff]  ;;  %v5219_v19 = vmax.f32 %v5187_v10, 0.0  ;;  %v5353_v34 = vmul.f32 %v5218_v11, %v5218_v11  ;;  %v5403_v31 = vsel %vm668_vm2, %v5351_v38, 0.0 }
 0x34a   : > { %5123 = vst.msk [vmem:[#allocation3 + $0xf8] sm:$0xff] %vm668_vm2, %v5091_v16  ;;  %v5150_v18 = vld [vmem:[#allocation3 + $0xd0] sm:$0xff]  ;;  %v5190_v15 = vadd.f32 %v8971_v61, %v5151_v60  ;;  %5252 = vst.msk [vmem:[%s8983_s21 + $0xc8] sm:$0xff] %vm668_vm2, %v5220_v24  ;;  %v5303_v6 = vadd.f32 %v5302_v3, %v5301_v37  ;;  %v5402_v1 = vadd.f32 %v5401_v0, %v5400_v41  ;;  %v5405_v55 = vsel %vm668_vm2, %v5352_v2, 0.0 }
 0x34b   : > { %5122 = vst.msk [vmem:[#allocation3 + $0xf0] sm:$0xff] %vm668_vm2, %v5090_v21  ;;  %v5189_v32 = vadd.f32 %v8971_v61, %v5150_v18  ;;  %5251 = vst.msk [vmem:[%s8983_s21 + $0xc0] sm:$0xff] %vm668_vm2, %v5219_v19  ;;  %v5306_v47 = vsel %vm668_vm2, %v5219_v19, 0.0  ;;  %v5354_v33 = vmul.f32 %v5219_v19, %v5219_v19  ;;  %v5308_v28 = vsel %vm668_vm2, %v5220_v24, 0.0 }
 0x34c   : > { %v5222_v56 = vmax.f32 %v5190_v15, 0.0  ;;  %v5305_v39 = vadd.f32 %v5304_v4, %v5303_v6  ;;  %v5404_v54 = vadd.f32 %v5403_v31, %v5402_v1  ;;  %v5355_v23 = vmul.f32 %v5220_v24, %v5220_v24 }
 0x34d   : > { %v5153_v7 = vld [vmem:[#allocation3 + $0xe8] sm:$0xff]  ;;  %v5221_v49 = vmax.f32 %v5189_v32, 0.0  ;;  %v5407_v45 = vsel %vm668_vm2, %v5353_v34, 0.0  ;;  %v5409_v40 = vsel %vm668_vm2, %v5354_v33, 0.0 }
 0x34e   : > { %v5152_v35 = vld [vmem:[#allocation3 + $0xe0] sm:$0xff]  ;;  %v5192_v36 = vadd.f32 %v8971_v61, %v5153_v7  ;;  %5254 = vst.msk [vmem:[%s8983_s21 + $0xd8] sm:$0xff] %vm668_vm2, %v5222_v56  ;;  %v5307_v46 = vadd.f32 %v5306_v47, %v5305_v39  ;;  %v5406_v57 = vadd.f32 %v5405_v55, %v5404_v54  ;;  %v5312_v53 = vsel %vm668_vm2, %v5222_v56, 0.0 }
 0x34f   : > { %v5191_v62 = vadd.f32 %v8971_v61, %v5152_v35  ;;  %5253 = vst.msk [vmem:[%s8983_s21 + $0xd0] sm:$0xff] %vm668_vm2, %v5221_v49  ;;  %v5310_v58 = vsel %vm668_vm2, %v5221_v49, 0.0  ;;  %v5356_v42 = vmul.f32 %v5221_v49, %v5221_v49  ;;  %v5357_v52 = vmul.f32 %v5222_v56, %v5222_v56 }
 0x350   : > { %v5224_v12 = vmax.f32 %v5192_v36, 0.0  ;;  %v5309_v25 = vadd.f32 %v5308_v28, %v5307_v46  ;;  %v5408_v5 = vadd.f32 %v5407_v45, %v5406_v57  ;;  %v5411_v43 = vsel %vm668_vm2, %v5355_v23, 0.0 }
 0x351   : > { %v5155_v50 = vld [vmem:[#allocation3 + $0xf8] sm:$0xff]  ;;  %v5223_v48 = vmax.f32 %v5191_v62, 0.0  ;;  %v5413_v63 = vsel %vm668_vm2, %v5356_v42, 0.0  ;;  %v5415_v3 = vsel %vm668_vm2, %v5357_v52, 0.0 }
 0x352   : > { %v5154_v44 = vld [vmem:[#allocation3 + $0xf0] sm:$0xff]  ;;  %v5194_v26 = vadd.f32 %v8971_v61, %v5155_v50  ;;  %5256 = vst.msk [vmem:[%s8983_s21 + $0xe8] sm:$0xff] %vm668_vm2, %v5224_v12  ;;  %v5311_v11 = vadd.f32 %v5310_v58, %v5309_v25  ;;  %v5410_v14 = vadd.f32 %v5409_v40, %v5408_v5  ;;  %v5316_v27 = vsel %vm668_vm2, %v5224_v12, 0.0 }
 0x353   : > { %v5193_v9 = vadd.f32 %v8971_v61, %v5154_v44  ;;  %5255 = vst.msk [vmem:[%s8983_s21 + $0xe0] sm:$0xff] %vm668_vm2, %v5223_v48  ;;  %v5314_v17 = vsel %vm668_vm2, %v5223_v48, 0.0  ;;  %v5358_v10 = vmul.f32 %v5223_v48, %v5223_v48  ;;  %v5359_v60 = vmul.f32 %v5224_v12, %v5224_v12 }
 0x354   : > { %v5226_v8 = vmax.f32 %v5194_v26, 0.0  ;;  %v5313_v20 = vadd.f32 %v5312_v53, %v5311_v11  ;;  %v5412_v22 = vadd.f32 %v5411_v43, %v5410_v14 }
 0x355   : > { %v5225_v30 = vmax.f32 %v5193_v9, 0.0  ;;  %v5417_v24 = vsel %vm668_vm2, %v5358_v10, 0.0  ;;  %v5419_v32 = vsel %vm668_vm2, %v5359_v60, 0.0 }
 0x356   : > { %5258 = vst.msk [vmem:[%s8983_s21 + $0xf8] sm:$0xff] %vm668_vm2, %v5226_v8  ;;  %v5315_v61 = vadd.f32 %v5314_v17, %v5313_v20  ;;  %v5414_v13 = vadd.f32 %v5413_v63, %v5412_v22  ;;  %v5320_v37 = vsel %vm668_vm2, %v5226_v8, 0.0  ;;  %v5361_v29 = vmul.f32 %v5226_v8, %v5226_v8 }
 0x357   : > { %5257 = vst.msk [vmem:[%s8983_s21 + $0xf0] sm:$0xff] %vm668_vm2, %v5225_v30  ;;  %v5318_v16 = vsel %vm668_vm2, %v5225_v30, 0.0  ;;  %v5360_v19 = vmul.f32 %v5225_v30, %v5225_v30 }
 0x358   : > { %v5317_v59 = vadd.f32 %v5316_v27, %v5315_v61  ;;  %v5416_v18 = vadd.f32 %v5415_v3, %v5414_v13  ;;  %v5423_v47 = vsel %vm668_vm2, %v5361_v29, 0.0 }
 0x359   : > { %v5421_v6 = vsel %vm668_vm2, %v5360_v19, 0.0 }
 0x35a   : > { %v5319_v21 = vadd.f32 %v5318_v16, %v5317_v59  ;;  %v5418_v38 = vadd.f32 %v5417_v24, %v5416_v18 }
 0x35c   : > { %v5321_v15 = vadd.f32 %v5320_v37, %v5319_v21  ;;  %v5420_v2 = vadd.f32 %v5419_v32, %v5418_v38 }
 0x35e   : > { %v5322_v51 = vrot.slane %v5321_v15, 4  ;;  %v5422_v56 = vadd.f32 %v5421_v6, %v5420_v2 }
 0x360   : > { %v5323_v0 = vadd.f32 %v5322_v51, %v5321_v15  ;;  %v5424_v41 = vadd.f32 %v5423_v47, %v5422_v56 }
 0x362   : > { %v5324_v4 = vrot.slane %v5323_v0, 2  ;;  %v5425_v49 = vrot.slane %v5424_v41, 4 }
 0x364   : > { %v5325_v7 = vadd.f32 %v5324_v4, %v5323_v0  ;;  %v5426_v35 = vadd.f32 %v5425_v49, %v5424_v41 }
 0x366   : > { %v5326_v39 = vrot.slane %v5325_v7, 1  ;;  %v5427_v34 = vrot.slane %v5426_v35, 2 }
 0x368   : > { %v5327_v36 = vadd.f32 %v5326_v39, %v5325_v7  ;;  %v5428_v1 = vadd.f32 %v5427_v34, %v5426_v35 }
 0x36a   : > { %5329 = vst.msk [vmem:[%s286_s23] sm:$0x1] %vm5328_vm7, %v5327_v36  ;;  %v5429_v31 = vrot.slane %v5428_v1, 1 }
 0x36c   : > { %v5430_v62 = vadd.f32 %v5429_v31, %v5428_v1 }
 0x36e   : > { %5431 = vst.msk [vmem:[%s286_s23 + $0x1] sm:$0x1] %vm5328_vm7, %v5430_v62 }
 0x36f   : > { %6804 = shalt.err (!%p6801_p3)
}
 0x370   : > { %s6805_s20 = scalar_lea.hbm %s9176_s14, 32  ;;  %s6809_s22 = scalar_lea.hbm %s9225_s7, 64 }
 0x371   : > { %p6806_p4 = scmp.ne.s32.totalorder %s9176_s14, %s6805_s20  ;;  %p6810_p9 = scmp.lt.u32.totalorder %s9176_s14, %s9225_s7 }
 0x372   : > { %p6811_p10 = scmp.lt.u32.totalorder %s6809_s22, %s6805_s20  ;;  %p6813_p12 = scmp.lt.u32.totalorder %s6805_s20, %s9176_s14 }
 0x373   : > { %p6807_p7 = pnand %p6806_p4, %p6935_p5 }
 0x374   : > { %p6812_p11 = por %p6811_p10, %p6810_p9 }
 0x375   : > { %p6808_p8 = pneg %p6807_p7 }
 0x376   : > { %p6814_p13 = por %p6813_p12, %p6812_p11 }
 0x378   : > { %p6815_p0 = pnand %p6814_p13, %p6808_p8 }
 0x37a   : > { %6818 = shalt.err (!%p6815_p0)
}
 0x37b   : > { %6750 = dma.vmem_to_hbm [thread:$0]  (%p6935_p5), %s9178_s8, 32, %s9176_s14, %s5443_s15  }
 0x37c PF: > { %p6756_p1 = scmp.ge.s32.totalorder %s6853_s27, 2  ;;  %s5490_s9 = sand.u32 1, %s6841_s24  }
 0x37d   : > { %s5491_s13 = scalar_lea.sflag [#allocation5], %s5490_s9 }
 0x37e   : > { %p6753_p2 = pnand %p6756_p1, %p6939_p6 }
 0x380   : > { %6836 = dma.done.wait (!%p6753_p2), %s5491_s13, 32  }
 0x381   : > { %6838 = vsyncadd (!%p6753_p2), %s5491_s13, 4294967264  ;;  %p18_p3 = scmp.ge.s32.totalorder %s6922_s30, 4   ;;  %s9286_s24 = smov %s6845_s25 }
 0x382   : > { %s9287_s25 = smov %s6849_s26  ;;  %s9288_s26 = smov %s6933_s10 }
 0x383   : > { %s9289_s27 = smov %s6922_s30  ;;  %20 = sbr.rel (!%p18_p3) target bundleno = 3 (0x3), region = 107 }
 0x38a   :  { %5496 = vsyncpa [#allocation5], 1 }
 0x38b   :  { %5498 = vsyncpa [#allocation5 + $0x1], 1 }

</bundles_post_ra>
